<compile_context>
chip_gen: v7x
topology: tpu7x:2x2x1
jax: 0.10.0
libtpu: 0.0.40
codegen_flags: <defaults>
</compile_context>

<pallas_src>
import numpy as np
import jax
import jax.numpy as jnp
from jax import lax
from jax.experimental import pallas as pl
from jax.experimental.pallas import tpu as pltpu

EPS = 1e-5
_HIGHEST = lax.Precision.HIGHEST


# ---------------------------------------------------------------------------
# In-kernel building blocks (pure jnp on values)
# ---------------------------------------------------------------------------
def _conv3x3(x_pad, w9, H, W):
    """3x3 'same' conv on a zero-border padded-flat image.

    x_pad : (cin, Lp) with Lp=(H+2)*(W+2); exactly zero on the 1-px border.
    w9    : (n_out, 9*cin), K ordered (ky, kx, cin), BN scale pre-folded.
    Returns (n_out, Lp); entries are only valid at interior positions
    (border entries are garbage and are masked by the caller).
    """
    cin = x_pad.shape[0]
    Wp = W + 2
    Lp = (H + 2) * Wp
    G = Wp + 1                                    # max |tap shift|
    zg = jnp.zeros((cin, G), x_pad.dtype)
    ext = jnp.concatenate([zg, x_pad, zg], axis=1)          # (cin, Lp + 2G)
    taps = []
    for ky in range(3):
        for kx in range(3):
            s = (ky - 1) * Wp + (kx - 1)
            taps.append(lax.slice_in_dim(ext, G + s, G + s + Lp, axis=1))
    stacked = jnp.concatenate(taps, axis=0)                 # (9*cin, Lp)
    # One MXU dot with K = 9*cin (instead of 9 tiny K=cin dots).
    return jnp.dot(w9, stacked, precision=_HIGHEST,
                   preferred_element_type=jnp.float32)


def _maxpool_select(y, sel, H, W, ph, pw):
    """Floor-mode (ph, pw) max-pool of a padded-flat image + one-hot re-layout.

    y   : (c, Lp) with zero border (post-ReLU, so >= 0).
    sel : (Lp, L_dst) one-hot selector.  Columns for the destination border are
          all-zero, so the result is already the next layer's zero-border
          padded-flat input (or the plain flat output for the last layer).
    """
    c = y.shape[0]
    Wp = W + 2
    Lp = (H + 2) * Wp
    G = (ph - 1) * Wp + (pw - 1)
    ext = jnp.concatenate([y, jnp.zeros((c, G), y.dtype)], axis=1) if G > 0 else y
    wm = y
    for dy in range(ph):
        for dx in range(pw):
            if dy == 0 and dx == 0:
                continue
            s = dy * Wp + dx
            wm = jnp.maximum(wm, lax.slice_in_dim(ext, s, s + Lp, axis=1))
    return jnp.dot(wm, sel, precision=_HIGHEST,
                   preferred_element_type=jnp.float32)


# ---------------------------------------------------------------------------
# The single fused kernel: input BN + 3 Res2DMaxPool blocks
# ---------------------------------------------------------------------------
def _make_frontend_kernel(cfgs):
    """cfgs: tuple of per-layer dicts {H, W, cout, ph, pw, diff}."""
    n_layers = len(cfgs)

    def kernel(*refs):
        it = iter(refs)
        x_ref = next(it)
        in_s = next(it)[...]                     # (C8, 1)
        in_t = next(it)[...]                     # (C8, 1)
        masks = [next(it)[...] for _ in range(n_layers)]       # (1, Lp_l)
        layer_refs = [tuple(next(it) for _ in range(5)) for _ in range(n_layers)]
        o_ref = next(it)

        # Input BatchNorm (eval mode).  The interior mask keeps the 1-px zero
        # border exactly zero (== the conv's zero padding).
        x = (x_ref[0] * in_s + in_t) * masks[0]

        for cfg, mask, (wA, sA, wB, sB, sel) in zip(cfgs, masks, layer_refs):
            H, W, cout = cfg["H"], cfg["W"], cfg["cout"]
            # conv1 (+conv3 for the channel-changing block, fused along cout)
            accA = _conv3x3(x, wA[...], H, W) + sA[...]
            if cfg["diff"]:
                h = jnp.maximum(accA[:cout], 0.0) * mask        # relu(bn1(conv1 x))
                res = accA[cout:]                               # bn3(conv3 x)
            else:
                h = jnp.maximum(accA, 0.0) * mask
                res = x
            # conv2 + bn2 + residual + relu (+ re-zero border) + maxpool
            accB = _conv3x3(h, wB[...], H, W) + sB[...]
            y = jnp.maximum(accB + res, 0.0) * mask
            x = _maxpool_select(y, sel[...], H, W, cfg["ph"], cfg["pw"])

        o_ref[0] = x.astype(o_ref.dtype)

    return kernel


# ---------------------------------------------------------------------------
# Host-side prep (tiny, one-time): BN folding, interior masks, pool selectors
# ---------------------------------------------------------------------------
def _fold_conv_bn(w, b, g, beta, m, v):
    """conv bias + eval-mode BN folded into the conv weights.

    Returns (w9, shift): w9 (cout, 9*cin_pad) with K ordered (ky, kx, cin) and
    cin zero-padded to a multiple of 8 (sublane-aligned tap stacking);
    shift (cout, 1).  bn(conv(x)+b) == w9 @ taps(x) + shift.
    """
    cout, cin = w.shape[:2]
    cin_p = -(-cin // 8) * 8
    inv = g / jnp.sqrt(v + EPS)
    w = jnp.pad(w, ((0, 0), (0, cin_p - cin), (0, 0), (0, 0)))
    w9 = jnp.transpose(w, (0, 2, 3, 1)).reshape(cout, 9 * cin_p) * inv[:, None]
    shift = ((b - m) * inv + beta).reshape(cout, 1)
    return w9.astype(jnp.float32), shift.astype(jnp.float32)


def _interior_mask(H, W):
    m = np.zeros((H + 2, W + 2), np.float32)
    m[1:H + 1, 1:W + 1] = 1.0
    return jnp.asarray(m.reshape(1, -1))


def _pool_selector(H, W, ph, pw, pad_dst):
    """One-hot (Lp_src, L_dst): each pooling-window origin (padded-flat src)
    -> its slot in the next layer's padded-flat layout (pad_dst=True) or in the
    plain flat (Ho*Wo) output layout (final layer)."""
    Wp = W + 2
    Ho, Wo = H // ph, W // pw                    # floor mode, like MaxPool2d
    n_dst = (Ho + 2) * (Wo + 2) if pad_dst else Ho * Wo
    S = np.zeros(((H + 2) * Wp, n_dst), np.float32)
    for po in range(Ho):
        for qo in range(Wo):
            src = (1 + po * ph) * Wp + (1 + qo * pw)
            dst = (po + 1) * (Wo + 2) + (qo + 1) if pad_dst else po * Wo + qo
            S[src, dst] = 1.0
    return jnp.asarray(S), Ho, Wo


# ---------------------------------------------------------------------------
# Forward: ONE pallas_call for the whole ResFrontEnd
# ---------------------------------------------------------------------------
def res_frontend_forward(hcqt, params):
    N, C, H, W = hcqt.shape
    cout = params["layer1"]["w1"].shape[0]
    # TODO(synk): if out_channels % 8 != 0, also pad cout for aligned stacking.

    in_s = params["in_g"] / jnp.sqrt(params["in_v"] + EPS)
    in_t = params["in_b"] - params["in_m"] * in_s
    C8 = -(-C // 8) * 8                          # sublane-aligned channel count
    in_s = jnp.pad(in_s, (0, C8 - C)).reshape(C8, 1).astype(jnp.float32)
    in_t = jnp.pad(in_t, (0, C8 - C)).reshape(C8, 1).astype(jnp.float32)

    cfgs, masks, flat = [], [], []
    h, w = H, W
    for idx, (lname, pname) in enumerate(
            (("layer1", "pool1"), ("layer2", "pool2"), ("layer3", "pool3"))):
        p = params[lname]
        ph, pw = params[pname]
        w1, s1 = _fold_conv_bn(p["w1"], p["b1"], p["g1"], p["be1"], p["m1"], p["v1"])
        if p["diff"]:
            w3, s3 = _fold_conv_bn(p["w3"], p["b3"], p["g3"], p["be3"], p["m3"], p["v3"])
            wA = jnp.concatenate([w1, w3], axis=0)       # conv1 & conv3 fused
            sA = jnp.concatenate([s1, s3], axis=0)
        else:
            wA, sA = w1, s1
        wB, sB = _fold_conv_bn(p["w2"], p["b2"], p["g2"], p["be2"], p["m2"], p["v2"])
        sel, Ho, Wo = _pool_selector(h, w, ph, pw, pad_dst=(idx < 2))
        cfgs.append(dict(H=h, W=w, cout=cout, ph=ph, pw=pw, diff=p["diff"]))
        masks.append(_interior_mask(h, w))
        flat.extend([wA, sA, wB, sB, sel])
        h, w = Ho, Wo

    # Single host-side pad of the *model input* into the padded-flat layout
    # (no pads / HBM round trips between layers — they all stay in-kernel).
    Lp1 = (H + 2) * (W + 2)
    x = jnp.pad(hcqt.astype(jnp.float32),
                ((0, 0), (0, C8 - C), (1, 1), (1, 1))).reshape(N, C8, Lp1)

    consts = [in_s, in_t, *masks, *flat]
    out_hw = h * w
    out = pl.pallas_call(
        _make_frontend_kernel(tuple(cfgs)),
        out_shape=jax.ShapeDtypeStruct((N, cout, out_hw), jnp.float32),
        grid=(N,),
        in_specs=[pl.BlockSpec((1, C8, Lp1), lambda n: (n, 0, 0))]
                 + [pl.BlockSpec(c.shape, lambda n: (0, 0)) for c in consts],
        out_specs=pl.BlockSpec((1, cout, out_hw), lambda n: (n, 0, 0)),
        compiler_params=pltpu.CompilerParams(
            dimension_semantics=("parallel",)),
    )(x, *consts)
    return out.reshape(N, cout, h, w)


# ---------------------------------------------------------------------------
# Deterministic parameter init (synthetic — no checkpoint load)
# ---------------------------------------------------------------------------
def _conv_bn_params(key, cin, cout):
    ks = jax.random.split(key, 6)
    return dict(
        w=0.1 * jax.random.normal(ks[0], (cout, cin, 3, 3), jnp.float32),
        b=0.1 * jax.random.normal(ks[1], (cout,), jnp.float32),
        g=1.0 + 0.1 * jax.random.normal(ks[2], (cout,), jnp.float32),
        be=0.1 * jax.random.normal(ks[3], (cout,), jnp.float32),
        m=0.1 * jax.random.normal(ks[4], (cout,), jnp.float32),
        v=1.0 + 0.5 * jax.random.uniform(ks[5], (cout,), jnp.float32),
    )


def _block_params(key, cin, cout):
    k1, k2, k3 = jax.random.split(key, 3)
    p = {f"{k}1": v for k, v in _conv_bn_params(k1, cin, cout).items()}
    p.update({f"{k}2": v for k, v in _conv_bn_params(k2, cout, cout).items()})
    p["diff"] = cin != cout
    if p["diff"]:
        p.update({f"{k}3": v for k, v in _conv_bn_params(k3, cin, cout).items()})
    return p


def init_res_frontend(key, in_channels, out_channels, freq_pooling, time_pooling):
    kbn, k1, k2, k3 = jax.random.split(key, 4)
    kg, kb, km, kv = jax.random.split(kbn, 4)
    return dict(
        in_g=1.0 + 0.1 * jax.random.normal(kg, (in_channels,), jnp.float32),
        in_b=0.1 * jax.random.normal(kb, (in_channels,), jnp.float32),
        in_m=0.1 * jax.random.normal(km, (in_channels,), jnp.float32),
        in_v=1.0 + 0.5 * jax.random.uniform(kv, (in_channels,), jnp.float32),
        layer1=_block_params(k1, in_channels, out_channels),
        layer2=_block_params(k2, out_channels, out_channels),
        layer3=_block_params(k3, out_channels, out_channels),
        pool1=(freq_pooling[0], time_pooling[0]),
        pool2=(freq_pooling[1], time_pooling[1]),
        pool3=(freq_pooling[2], time_pooling[2]),
    )


# ---------------------------------------------------------------------------
# Pure-JAX reference (correctness check only)
# ---------------------------------------------------------------------------
def _ref_bn(x, g, b, m, v):
    return ((x - m[None, :, None, None])
            / jnp.sqrt(v[None, :, None, None] + EPS)
            * g[None, :, None, None] + b[None, :, None, None])


def _ref_conv(x, w, b):
    y = lax.conv_general_dilated(x, w, (1, 1), ((1, 1), (1, 1)),
                                 dimension_numbers=("NCHW", "OIHW", "NCHW"),
                                 precision=lax.Precision.HIGHEST)
    return y + b[None, :, None, None]


def _ref_block(x, p, pooling):
    h = jax.nn.relu(_ref_bn(_ref_conv(x, p["w1"], p["b1"]),
                            p["g1"], p["be1"], p["m1"], p["v1"]))
    out = _ref_bn(_ref_conv(h, p["w2"], p["b2"]),
                  p["g2"], p["be2"], p["m2"], p["v2"])
    res = x
    if p["diff"]:
        res = _ref_bn(_ref_conv(x, p["w3"], p["b3"]),
                      p["g3"], p["be3"], p["m3"], p["v3"])
    out = jax.nn.relu(res + out)
    ph, pw = pooling
    return lax.reduce_window(out, -jnp.inf, lax.max,
                             (1, 1, ph, pw), (1, 1, ph, pw), "VALID")


def _ref_forward(x, params):
    out = _ref_bn(x, params["in_g"], params["in_b"],
                  params["in_m"], params["in_v"])
    out = _ref_block(out, params["layer1"], params["pool1"])
    out = _ref_block(out, params["layer2"], params["pool2"])
    out = _ref_block(out, params["layer3"], params["pool3"])
    return out


# ---------------------------------------------------------------------------
if __name__ == "__main__":
    B, F, K, T = 2, 4, 16, 16                    # hcqt: [B, F=in_channels, K, T]
    in_channels, out_channels = F, 8
    freq_pooling = (2, 2, 2)
    time_pooling = (2, 2, 2)

    key = jax.random.PRNGKey(0)
    pkey, xkey = jax.random.split(key)
    params = init_res_frontend(pkey, in_channels, out_channels,
                               freq_pooling, time_pooling)
    hcqt = jax.random.normal(xkey, (B, F, K, T), jnp.float32)

    out = res_frontend_forward(hcqt, params)
    out = jax.block_until_ready(out)

    ref = _ref_forward(hcqt, params)
    assert out.shape == ref.shape == (B, out_channels, K // 8, T // 8), out.shape
    err = float(jnp.max(jnp.abs(out - ref)))
    assert err < 1e-3, f"max abs err {err}"

    print("KERNEL_OK")
</pallas_src>

<mosaic_0001>
module attributes {stable_mosaic.version = 11 : i64} {
  func.func @kernel(%arg0: i32, %arg1: memref<1x8x324xf32, #tpu.memory_space<vmem>>, %arg2: memref<8x1xf32, #tpu.memory_space<vmem>>, %arg3: memref<8x1xf32, #tpu.memory_space<vmem>>, %arg4: memref<1x324xf32, #tpu.memory_space<vmem>>, %arg5: memref<1x100xf32, #tpu.memory_space<vmem>>, %arg6: memref<1x36xf32, #tpu.memory_space<vmem>>, %arg7: memref<16x72xf32, #tpu.memory_space<vmem>>, %arg8: memref<16x1xf32, #tpu.memory_space<vmem>>, %arg9: memref<8x72xf32, #tpu.memory_space<vmem>>, %arg10: memref<8x1xf32, #tpu.memory_space<vmem>>, %arg11: memref<324x100xf32, #tpu.memory_space<vmem>>, %arg12: memref<8x72xf32, #tpu.memory_space<vmem>>, %arg13: memref<8x1xf32, #tpu.memory_space<vmem>>, %arg14: memref<8x72xf32, #tpu.memory_space<vmem>>, %arg15: memref<8x1xf32, #tpu.memory_space<vmem>>, %arg16: memref<100x36xf32, #tpu.memory_space<vmem>>, %arg17: memref<8x72xf32, #tpu.memory_space<vmem>>, %arg18: memref<8x1xf32, #tpu.memory_space<vmem>>, %arg19: memref<8x72xf32, #tpu.memory_space<vmem>>, %arg20: memref<8x1xf32, #tpu.memory_space<vmem>>, %arg21: memref<36x4xf32, #tpu.memory_space<vmem>>, %arg22: memref<1x8x4xf32, #tpu.memory_space<vmem>>) attributes {dimension_semantics = [#tpu.dimension_semantics<parallel>], iteration_bounds = array<i64: 2>, scalar_prefetch = 0 : i64, scratch_operands = 0 : i64, tpu.core_type = #tpu.core_type<tc>, window_params = [{transform_indices = @transform_0, window_bounds = array<i64: 1, 8, 324>}, {pipeline_mode = #tpu.pipeline_mode<synchronous>, transform_indices = @transform_1, window_bounds = array<i64: 8, 1>}, {pipeline_mode = #tpu.pipeline_mode<synchronous>, transform_indices = @transform_2, window_bounds = array<i64: 8, 1>}, {pipeline_mode = #tpu.pipeline_mode<synchronous>, transform_indices = @transform_3, window_bounds = array<i64: 1, 324>}, {pipeline_mode = #tpu.pipeline_mode<synchronous>, transform_indices = @transform_4, window_bounds = array<i64: 1, 100>}, {pipeline_mode = #tpu.pipeline_mode<synchronous>, transform_indices = @transform_5, window_bounds = array<i64: 1, 36>}, {pipeline_mode = #tpu.pipeline_mode<synchronous>, transform_indices = @transform_6, window_bounds = array<i64: 16, 72>}, {pipeline_mode = #tpu.pipeline_mode<synchronous>, transform_indices = @transform_7, window_bounds = array<i64: 16, 1>}, {pipeline_mode = #tpu.pipeline_mode<synchronous>, transform_indices = @transform_8, window_bounds = array<i64: 8, 72>}, {pipeline_mode = #tpu.pipeline_mode<synchronous>, transform_indices = @transform_9, window_bounds = array<i64: 8, 1>}, {pipeline_mode = #tpu.pipeline_mode<synchronous>, transform_indices = @transform_10, window_bounds = array<i64: 324, 100>}, {pipeline_mode = #tpu.pipeline_mode<synchronous>, transform_indices = @transform_11, window_bounds = array<i64: 8, 72>}, {pipeline_mode = #tpu.pipeline_mode<synchronous>, transform_indices = @transform_12, window_bounds = array<i64: 8, 1>}, {pipeline_mode = #tpu.pipeline_mode<synchronous>, transform_indices = @transform_13, window_bounds = array<i64: 8, 72>}, {pipeline_mode = #tpu.pipeline_mode<synchronous>, transform_indices = @transform_14, window_bounds = array<i64: 8, 1>}, {pipeline_mode = #tpu.pipeline_mode<synchronous>, transform_indices = @transform_15, window_bounds = array<i64: 100, 36>}, {pipeline_mode = #tpu.pipeline_mode<synchronous>, transform_indices = @transform_16, window_bounds = array<i64: 8, 72>}, {pipeline_mode = #tpu.pipeline_mode<synchronous>, transform_indices = @transform_17, window_bounds = array<i64: 8, 1>}, {pipeline_mode = #tpu.pipeline_mode<synchronous>, transform_indices = @transform_18, window_bounds = array<i64: 8, 72>}, {pipeline_mode = #tpu.pipeline_mode<synchronous>, transform_indices = @transform_19, window_bounds = array<i64: 8, 1>}, {pipeline_mode = #tpu.pipeline_mode<synchronous>, transform_indices = @transform_20, window_bounds = array<i64: 36, 4>}, {transform_indices = @transform_21, window_bounds = array<i64: 1, 8, 4>}]} {
    %c0 = arith.constant 0 : index
    %c0_0 = arith.constant 0 : index
    %0 = vector.load %arg2[%c0, %c0_0] : memref<8x1xf32, #tpu.memory_space<vmem>>, vector<8x1xf32>
    %c0_1 = arith.constant 0 : index
    %c0_2 = arith.constant 0 : index
    %1 = vector.load %arg3[%c0_1, %c0_2] : memref<8x1xf32, #tpu.memory_space<vmem>>, vector<8x1xf32>
    %c0_3 = arith.constant 0 : index
    %c0_4 = arith.constant 0 : index
    %2 = vector.load %arg4[%c0_3, %c0_4] : memref<1x324xf32, #tpu.memory_space<vmem>>, vector<1x324xf32>
    %c0_5 = arith.constant 0 : index
    %c0_6 = arith.constant 0 : index
    %3 = vector.load %arg5[%c0_5, %c0_6] : memref<1x100xf32, #tpu.memory_space<vmem>>, vector<1x100xf32>
    %c0_7 = arith.constant 0 : index
    %c0_8 = arith.constant 0 : index
    %4 = vector.load %arg6[%c0_7, %c0_8] : memref<1x36xf32, #tpu.memory_space<vmem>>, vector<1x36xf32>
    %c0_9 = arith.constant 0 : index
    %c0_10 = arith.constant 0 : index
    %c0_11 = arith.constant 0 : index
    %5 = vector.load %arg1[%c0_9, %c0_10, %c0_11] : memref<1x8x324xf32, #tpu.memory_space<vmem>>, vector<1x8x324xf32>
    %6 = vector.shape_cast %5 : vector<1x8x324xf32> to vector<8x324xf32>
    %7 = vector.broadcast %0 : vector<8x1xf32> to vector<8x324xf32>
    %8 = arith.mulf %6, %7 : vector<8x324xf32>
    %9 = vector.broadcast %1 : vector<8x1xf32> to vector<8x324xf32>
    %10 = arith.addf %8, %9 : vector<8x324xf32>
    %11 = vector.broadcast %2 : vector<1x324xf32> to vector<8x324xf32>
    %12 = arith.mulf %10, %11 : vector<8x324xf32>
    %c0_12 = arith.constant 0 : index
    %c0_13 = arith.constant 0 : index
    %13 = vector.load %arg7[%c0_12, %c0_13] : memref<16x72xf32, #tpu.memory_space<vmem>>, vector<16x72xf32>
    %cst = arith.constant 0.000000e+00 : f32
    %14 = vector.broadcast %cst : f32 to vector<8x19xf32>
    %15 = tpu.concatenate %14, %12, %14 in 1 : vector<8x19xf32>, vector<8x324xf32>, vector<8x19xf32> -> vector<8x362xf32>
    %16 = vector.extract_strided_slice %15 {offsets = [0, 0], sizes = [8, 324], strides = [1, 1]} : vector<8x362xf32> to vector<8x324xf32>
    %17 = vector.extract_strided_slice %15 {offsets = [0, 1], sizes = [8, 324], strides = [1, 1]} : vector<8x362xf32> to vector<8x324xf32>
    %18 = vector.extract_strided_slice %15 {offsets = [0, 2], sizes = [8, 324], strides = [1, 1]} : vector<8x362xf32> to vector<8x324xf32>
    %19 = vector.extract_strided_slice %15 {offsets = [0, 18], sizes = [8, 324], strides = [1, 1]} : vector<8x362xf32> to vector<8x324xf32>
    %20 = vector.extract_strided_slice %15 {offsets = [0, 19], sizes = [8, 324], strides = [1, 1]} : vector<8x362xf32> to vector<8x324xf32>
    %21 = vector.extract_strided_slice %15 {offsets = [0, 20], sizes = [8, 324], strides = [1, 1]} : vector<8x362xf32> to vector<8x324xf32>
    %22 = vector.extract_strided_slice %15 {offsets = [0, 36], sizes = [8, 324], strides = [1, 1]} : vector<8x362xf32> to vector<8x324xf32>
    %23 = vector.extract_strided_slice %15 {offsets = [0, 37], sizes = [8, 324], strides = [1, 1]} : vector<8x362xf32> to vector<8x324xf32>
    %24 = vector.extract_strided_slice %15 {offsets = [0, 38], sizes = [8, 324], strides = [1, 1]} : vector<8x362xf32> to vector<8x324xf32>
    %25 = tpu.concatenate %16, %17, %18, %19, %20, %21, %22, %23, %24 in 0 : vector<8x324xf32>, vector<8x324xf32>, vector<8x324xf32>, vector<8x324xf32>, vector<8x324xf32>, vector<8x324xf32>, vector<8x324xf32>, vector<8x324xf32>, vector<8x324xf32> -> vector<72x324xf32>
    %cst_14 = arith.constant dense<0.000000e+00> : vector<16x324xf32>
    %26 = tpu.matmul %13, %25, %cst_14 {dimension_numbers = #tpu.dot_dimension_numbers<[1], [0], [0], [1], [0, 0, 1, 1], [], []>, precision = #tpu.contract_precision<fp32>} : vector<16x72xf32>, vector<72x324xf32>, vector<16x324xf32> -> vector<16x324xf32>
    %c0_15 = arith.constant 0 : index
    %c0_16 = arith.constant 0 : index
    %27 = vector.load %arg8[%c0_15, %c0_16] : memref<16x1xf32, #tpu.memory_space<vmem>>, vector<16x1xf32>
    %28 = vector.broadcast %27 : vector<16x1xf32> to vector<16x324xf32>
    %29 = arith.addf %26, %28 : vector<16x324xf32>
    %30 = vector.extract_strided_slice %29 {offsets = [0, 0], sizes = [8, 324], strides = [1, 1]} : vector<16x324xf32> to vector<8x324xf32>
    %cst_17 = arith.constant 0.000000e+00 : f32
    %31 = vector.broadcast %cst_17 : f32 to vector<8x324xf32>
    %32 = arith.maximumf %30, %31 : vector<8x324xf32>
    %33 = vector.broadcast %2 : vector<1x324xf32> to vector<8x324xf32>
    %34 = arith.mulf %32, %33 : vector<8x324xf32>
    %35 = vector.extract_strided_slice %29 {offsets = [8, 0], sizes = [8, 324], strides = [1, 1]} : vector<16x324xf32> to vector<8x324xf32>
    %c0_18 = arith.constant 0 : index
    %c0_19 = arith.constant 0 : index
    %36 = vector.load %arg9[%c0_18, %c0_19] : memref<8x72xf32, #tpu.memory_space<vmem>>, vector<8x72xf32>
    %cst_20 = arith.constant 0.000000e+00 : f32
    %37 = vector.broadcast %cst_20 : f32 to vector<8x19xf32>
    %38 = tpu.concatenate %37, %34, %37 in 1 : vector<8x19xf32>, vector<8x324xf32>, vector<8x19xf32> -> vector<8x362xf32>
    %39 = vector.extract_strided_slice %38 {offsets = [0, 0], sizes = [8, 324], strides = [1, 1]} : vector<8x362xf32> to vector<8x324xf32>
    %40 = vector.extract_strided_slice %38 {offsets = [0, 1], sizes = [8, 324], strides = [1, 1]} : vector<8x362xf32> to vector<8x324xf32>
    %41 = vector.extract_strided_slice %38 {offsets = [0, 2], sizes = [8, 324], strides = [1, 1]} : vector<8x362xf32> to vector<8x324xf32>
    %42 = vector.extract_strided_slice %38 {offsets = [0, 18], sizes = [8, 324], strides = [1, 1]} : vector<8x362xf32> to vector<8x324xf32>
    %43 = vector.extract_strided_slice %38 {offsets = [0, 19], sizes = [8, 324], strides = [1, 1]} : vector<8x362xf32> to vector<8x324xf32>
    %44 = vector.extract_strided_slice %38 {offsets = [0, 20], sizes = [8, 324], strides = [1, 1]} : vector<8x362xf32> to vector<8x324xf32>
    %45 = vector.extract_strided_slice %38 {offsets = [0, 36], sizes = [8, 324], strides = [1, 1]} : vector<8x362xf32> to vector<8x324xf32>
    %46 = vector.extract_strided_slice %38 {offsets = [0, 37], sizes = [8, 324], strides = [1, 1]} : vector<8x362xf32> to vector<8x324xf32>
    %47 = vector.extract_strided_slice %38 {offsets = [0, 38], sizes = [8, 324], strides = [1, 1]} : vector<8x362xf32> to vector<8x324xf32>
    %48 = tpu.concatenate %39, %40, %41, %42, %43, %44, %45, %46, %47 in 0 : vector<8x324xf32>, vector<8x324xf32>, vector<8x324xf32>, vector<8x324xf32>, vector<8x324xf32>, vector<8x324xf32>, vector<8x324xf32>, vector<8x324xf32>, vector<8x324xf32> -> vector<72x324xf32>
    %cst_21 = arith.constant dense<0.000000e+00> : vector<8x324xf32>
    %49 = tpu.matmul %36, %48, %cst_21 {dimension_numbers = #tpu.dot_dimension_numbers<[1], [0], [0], [1], [0, 0, 1, 1], [], []>, precision = #tpu.contract_precision<fp32>} : vector<8x72xf32>, vector<72x324xf32>, vector<8x324xf32> -> vector<8x324xf32>
    %c0_22 = arith.constant 0 : index
    %c0_23 = arith.constant 0 : index
    %50 = vector.load %arg10[%c0_22, %c0_23] : memref<8x1xf32, #tpu.memory_space<vmem>>, vector<8x1xf32>
    %51 = vector.broadcast %50 : vector<8x1xf32> to vector<8x324xf32>
    %52 = arith.addf %49, %51 : vector<8x324xf32>
    %53 = arith.addf %52, %35 : vector<8x324xf32>
    %cst_24 = arith.constant 0.000000e+00 : f32
    %54 = vector.broadcast %cst_24 : f32 to vector<8x324xf32>
    %55 = arith.maximumf %53, %54 : vector<8x324xf32>
    %56 = vector.broadcast %2 : vector<1x324xf32> to vector<8x324xf32>
    %57 = arith.mulf %55, %56 : vector<8x324xf32>
    %c0_25 = arith.constant 0 : index
    %c0_26 = arith.constant 0 : index
    %58 = vector.load %arg11[%c0_25, %c0_26] : memref<324x100xf32, #tpu.memory_space<vmem>>, vector<324x100xf32>
    %cst_27 = arith.constant 0.000000e+00 : f32
    %59 = vector.broadcast %cst_27 : f32 to vector<8x19xf32>
    %60 = tpu.concatenate %57, %59 in 1 : vector<8x324xf32>, vector<8x19xf32> -> vector<8x343xf32>
    %61 = vector.extract_strided_slice %60 {offsets = [0, 1], sizes = [8, 324], strides = [1, 1]} : vector<8x343xf32> to vector<8x324xf32>
    %62 = arith.maximumf %57, %61 : vector<8x324xf32>
    %63 = vector.extract_strided_slice %60 {offsets = [0, 18], sizes = [8, 324], strides = [1, 1]} : vector<8x343xf32> to vector<8x324xf32>
    %64 = arith.maximumf %62, %63 : vector<8x324xf32>
    %65 = vector.extract_strided_slice %60 {offsets = [0, 19], sizes = [8, 324], strides = [1, 1]} : vector<8x343xf32> to vector<8x324xf32>
    %66 = arith.maximumf %64, %65 : vector<8x324xf32>
    %cst_28 = arith.constant dense<0.000000e+00> : vector<8x100xf32>
    %67 = tpu.matmul %66, %58, %cst_28 {dimension_numbers = #tpu.dot_dimension_numbers<[1], [0], [0], [1], [0, 0, 1, 1], [], []>, precision = #tpu.contract_precision<fp32>} : vector<8x324xf32>, vector<324x100xf32>, vector<8x100xf32> -> vector<8x100xf32>
    %c0_29 = arith.constant 0 : index
    %c0_30 = arith.constant 0 : index
    %68 = vector.load %arg12[%c0_29, %c0_30] : memref<8x72xf32, #tpu.memory_space<vmem>>, vector<8x72xf32>
    %cst_31 = arith.constant 0.000000e+00 : f32
    %69 = vector.broadcast %cst_31 : f32 to vector<8x11xf32>
    %70 = tpu.concatenate %69, %67, %69 in 1 : vector<8x11xf32>, vector<8x100xf32>, vector<8x11xf32> -> vector<8x122xf32>
    %71 = vector.extract_strided_slice %70 {offsets = [0, 0], sizes = [8, 100], strides = [1, 1]} : vector<8x122xf32> to vector<8x100xf32>
    %72 = vector.extract_strided_slice %70 {offsets = [0, 1], sizes = [8, 100], strides = [1, 1]} : vector<8x122xf32> to vector<8x100xf32>
    %73 = vector.extract_strided_slice %70 {offsets = [0, 2], sizes = [8, 100], strides = [1, 1]} : vector<8x122xf32> to vector<8x100xf32>
    %74 = vector.extract_strided_slice %70 {offsets = [0, 10], sizes = [8, 100], strides = [1, 1]} : vector<8x122xf32> to vector<8x100xf32>
    %75 = vector.extract_strided_slice %70 {offsets = [0, 11], sizes = [8, 100], strides = [1, 1]} : vector<8x122xf32> to vector<8x100xf32>
    %76 = vector.extract_strided_slice %70 {offsets = [0, 12], sizes = [8, 100], strides = [1, 1]} : vector<8x122xf32> to vector<8x100xf32>
    %77 = vector.extract_strided_slice %70 {offsets = [0, 20], sizes = [8, 100], strides = [1, 1]} : vector<8x122xf32> to vector<8x100xf32>
    %78 = vector.extract_strided_slice %70 {offsets = [0, 21], sizes = [8, 100], strides = [1, 1]} : vector<8x122xf32> to vector<8x100xf32>
    %79 = vector.extract_strided_slice %70 {offsets = [0, 22], sizes = [8, 100], strides = [1, 1]} : vector<8x122xf32> to vector<8x100xf32>
    %80 = tpu.concatenate %71, %72, %73, %74, %75, %76, %77, %78, %79 in 0 : vector<8x100xf32>, vector<8x100xf32>, vector<8x100xf32>, vector<8x100xf32>, vector<8x100xf32>, vector<8x100xf32>, vector<8x100xf32>, vector<8x100xf32>, vector<8x100xf32> -> vector<72x100xf32>
    %cst_32 = arith.constant dense<0.000000e+00> : vector<8x100xf32>
    %81 = tpu.matmul %68, %80, %cst_32 {dimension_numbers = #tpu.dot_dimension_numbers<[1], [0], [0], [1], [0, 0, 1, 1], [], []>, precision = #tpu.contract_precision<fp32>} : vector<8x72xf32>, vector<72x100xf32>, vector<8x100xf32> -> vector<8x100xf32>
    %c0_33 = arith.constant 0 : index
    %c0_34 = arith.constant 0 : index
    %82 = vector.load %arg13[%c0_33, %c0_34] : memref<8x1xf32, #tpu.memory_space<vmem>>, vector<8x1xf32>
    %83 = vector.broadcast %82 : vector<8x1xf32> to vector<8x100xf32>
    %84 = arith.addf %81, %83 : vector<8x100xf32>
    %cst_35 = arith.constant 0.000000e+00 : f32
    %85 = vector.broadcast %cst_35 : f32 to vector<8x100xf32>
    %86 = arith.maximumf %84, %85 : vector<8x100xf32>
    %87 = vector.broadcast %3 : vector<1x100xf32> to vector<8x100xf32>
    %88 = arith.mulf %86, %87 : vector<8x100xf32>
    %c0_36 = arith.constant 0 : index
    %c0_37 = arith.constant 0 : index
    %89 = vector.load %arg14[%c0_36, %c0_37] : memref<8x72xf32, #tpu.memory_space<vmem>>, vector<8x72xf32>
    %cst_38 = arith.constant 0.000000e+00 : f32
    %90 = vector.broadcast %cst_38 : f32 to vector<8x11xf32>
    %91 = tpu.concatenate %90, %88, %90 in 1 : vector<8x11xf32>, vector<8x100xf32>, vector<8x11xf32> -> vector<8x122xf32>
    %92 = vector.extract_strided_slice %91 {offsets = [0, 0], sizes = [8, 100], strides = [1, 1]} : vector<8x122xf32> to vector<8x100xf32>
    %93 = vector.extract_strided_slice %91 {offsets = [0, 1], sizes = [8, 100], strides = [1, 1]} : vector<8x122xf32> to vector<8x100xf32>
    %94 = vector.extract_strided_slice %91 {offsets = [0, 2], sizes = [8, 100], strides = [1, 1]} : vector<8x122xf32> to vector<8x100xf32>
    %95 = vector.extract_strided_slice %91 {offsets = [0, 10], sizes = [8, 100], strides = [1, 1]} : vector<8x122xf32> to vector<8x100xf32>
    %96 = vector.extract_strided_slice %91 {offsets = [0, 11], sizes = [8, 100], strides = [1, 1]} : vector<8x122xf32> to vector<8x100xf32>
    %97 = vector.extract_strided_slice %91 {offsets = [0, 12], sizes = [8, 100], strides = [1, 1]} : vector<8x122xf32> to vector<8x100xf32>
    %98 = vector.extract_strided_slice %91 {offsets = [0, 20], sizes = [8, 100], strides = [1, 1]} : vector<8x122xf32> to vector<8x100xf32>
    %99 = vector.extract_strided_slice %91 {offsets = [0, 21], sizes = [8, 100], strides = [1, 1]} : vector<8x122xf32> to vector<8x100xf32>
    %100 = vector.extract_strided_slice %91 {offsets = [0, 22], sizes = [8, 100], strides = [1, 1]} : vector<8x122xf32> to vector<8x100xf32>
    %101 = tpu.concatenate %92, %93, %94, %95, %96, %97, %98, %99, %100 in 0 : vector<8x100xf32>, vector<8x100xf32>, vector<8x100xf32>, vector<8x100xf32>, vector<8x100xf32>, vector<8x100xf32>, vector<8x100xf32>, vector<8x100xf32>, vector<8x100xf32> -> vector<72x100xf32>
    %cst_39 = arith.constant dense<0.000000e+00> : vector<8x100xf32>
    %102 = tpu.matmul %89, %101, %cst_39 {dimension_numbers = #tpu.dot_dimension_numbers<[1], [0], [0], [1], [0, 0, 1, 1], [], []>, precision = #tpu.contract_precision<fp32>} : vector<8x72xf32>, vector<72x100xf32>, vector<8x100xf32> -> vector<8x100xf32>
    %c0_40 = arith.constant 0 : index
    %c0_41 = arith.constant 0 : index
    %103 = vector.load %arg15[%c0_40, %c0_41] : memref<8x1xf32, #tpu.memory_space<vmem>>, vector<8x1xf32>
    %104 = vector.broadcast %103 : vector<8x1xf32> to vector<8x100xf32>
    %105 = arith.addf %102, %104 : vector<8x100xf32>
    %106 = arith.addf %105, %67 : vector<8x100xf32>
    %cst_42 = arith.constant 0.000000e+00 : f32
    %107 = vector.broadcast %cst_42 : f32 to vector<8x100xf32>
    %108 = arith.maximumf %106, %107 : vector<8x100xf32>
    %109 = vector.broadcast %3 : vector<1x100xf32> to vector<8x100xf32>
    %110 = arith.mulf %108, %109 : vector<8x100xf32>
    %c0_43 = arith.constant 0 : index
    %c0_44 = arith.constant 0 : index
    %111 = vector.load %arg16[%c0_43, %c0_44] : memref<100x36xf32, #tpu.memory_space<vmem>>, vector<100x36xf32>
    %cst_45 = arith.constant 0.000000e+00 : f32
    %112 = vector.broadcast %cst_45 : f32 to vector<8x11xf32>
    %113 = tpu.concatenate %110, %112 in 1 : vector<8x100xf32>, vector<8x11xf32> -> vector<8x111xf32>
    %114 = vector.extract_strided_slice %113 {offsets = [0, 1], sizes = [8, 100], strides = [1, 1]} : vector<8x111xf32> to vector<8x100xf32>
    %115 = arith.maximumf %110, %114 : vector<8x100xf32>
    %116 = vector.extract_strided_slice %113 {offsets = [0, 10], sizes = [8, 100], strides = [1, 1]} : vector<8x111xf32> to vector<8x100xf32>
    %117 = arith.maximumf %115, %116 : vector<8x100xf32>
    %118 = vector.extract_strided_slice %113 {offsets = [0, 11], sizes = [8, 100], strides = [1, 1]} : vector<8x111xf32> to vector<8x100xf32>
    %119 = arith.maximumf %117, %118 : vector<8x100xf32>
    %cst_46 = arith.constant dense<0.000000e+00> : vector<8x36xf32>
    %120 = tpu.matmul %119, %111, %cst_46 {dimension_numbers = #tpu.dot_dimension_numbers<[1], [0], [0], [1], [0, 0, 1, 1], [], []>, precision = #tpu.contract_precision<fp32>} : vector<8x100xf32>, vector<100x36xf32>, vector<8x36xf32> -> vector<8x36xf32>
    %c0_47 = arith.constant 0 : index
    %c0_48 = arith.constant 0 : index
    %121 = vector.load %arg17[%c0_47, %c0_48] : memref<8x72xf32, #tpu.memory_space<vmem>>, vector<8x72xf32>
    %cst_49 = arith.constant 0.000000e+00 : f32
    %122 = vector.broadcast %cst_49 : f32 to vector<8x7xf32>
    %123 = tpu.concatenate %122, %120, %122 in 1 : vector<8x7xf32>, vector<8x36xf32>, vector<8x7xf32> -> vector<8x50xf32>
    %124 = vector.extract_strided_slice %123 {offsets = [0, 0], sizes = [8, 36], strides = [1, 1]} : vector<8x50xf32> to vector<8x36xf32>
    %125 = vector.extract_strided_slice %123 {offsets = [0, 1], sizes = [8, 36], strides = [1, 1]} : vector<8x50xf32> to vector<8x36xf32>
    %126 = vector.extract_strided_slice %123 {offsets = [0, 2], sizes = [8, 36], strides = [1, 1]} : vector<8x50xf32> to vector<8x36xf32>
    %127 = vector.extract_strided_slice %123 {offsets = [0, 6], sizes = [8, 36], strides = [1, 1]} : vector<8x50xf32> to vector<8x36xf32>
    %128 = vector.extract_strided_slice %123 {offsets = [0, 7], sizes = [8, 36], strides = [1, 1]} : vector<8x50xf32> to vector<8x36xf32>
    %129 = vector.extract_strided_slice %123 {offsets = [0, 8], sizes = [8, 36], strides = [1, 1]} : vector<8x50xf32> to vector<8x36xf32>
    %130 = vector.extract_strided_slice %123 {offsets = [0, 12], sizes = [8, 36], strides = [1, 1]} : vector<8x50xf32> to vector<8x36xf32>
    %131 = vector.extract_strided_slice %123 {offsets = [0, 13], sizes = [8, 36], strides = [1, 1]} : vector<8x50xf32> to vector<8x36xf32>
    %132 = vector.extract_strided_slice %123 {offsets = [0, 14], sizes = [8, 36], strides = [1, 1]} : vector<8x50xf32> to vector<8x36xf32>
    %133 = tpu.concatenate %124, %125, %126, %127, %128, %129, %130, %131, %132 in 0 : vector<8x36xf32>, vector<8x36xf32>, vector<8x36xf32>, vector<8x36xf32>, vector<8x36xf32>, vector<8x36xf32>, vector<8x36xf32>, vector<8x36xf32>, vector<8x36xf32> -> vector<72x36xf32>
    %cst_50 = arith.constant dense<0.000000e+00> : vector<8x36xf32>
    %134 = tpu.matmul %121, %133, %cst_50 {dimension_numbers = #tpu.dot_dimension_numbers<[1], [0], [0], [1], [0, 0, 1, 1], [], []>, precision = #tpu.contract_precision<fp32>} : vector<8x72xf32>, vector<72x36xf32>, vector<8x36xf32> -> vector<8x36xf32>
    %c0_51 = arith.constant 0 : index
    %c0_52 = arith.constant 0 : index
    %135 = vector.load %arg18[%c0_51, %c0_52] : memref<8x1xf32, #tpu.memory_space<vmem>>, vector<8x1xf32>
    %136 = vector.broadcast %135 : vector<8x1xf32> to vector<8x36xf32>
    %137 = arith.addf %134, %136 : vector<8x36xf32>
    %cst_53 = arith.constant 0.000000e+00 : f32
    %138 = vector.broadcast %cst_53 : f32 to vector<8x36xf32>
    %139 = arith.maximumf %137, %138 : vector<8x36xf32>
    %140 = vector.broadcast %4 : vector<1x36xf32> to vector<8x36xf32>
    %141 = arith.mulf %139, %140 : vector<8x36xf32>
    %c0_54 = arith.constant 0 : index
    %c0_55 = arith.constant 0 : index
    %142 = vector.load %arg19[%c0_54, %c0_55] : memref<8x72xf32, #tpu.memory_space<vmem>>, vector<8x72xf32>
    %cst_56 = arith.constant 0.000000e+00 : f32
    %143 = vector.broadcast %cst_56 : f32 to vector<8x7xf32>
    %144 = tpu.concatenate %143, %141, %143 in 1 : vector<8x7xf32>, vector<8x36xf32>, vector<8x7xf32> -> vector<8x50xf32>
    %145 = vector.extract_strided_slice %144 {offsets = [0, 0], sizes = [8, 36], strides = [1, 1]} : vector<8x50xf32> to vector<8x36xf32>
    %146 = vector.extract_strided_slice %144 {offsets = [0, 1], sizes = [8, 36], strides = [1, 1]} : vector<8x50xf32> to vector<8x36xf32>
    %147 = vector.extract_strided_slice %144 {offsets = [0, 2], sizes = [8, 36], strides = [1, 1]} : vector<8x50xf32> to vector<8x36xf32>
    %148 = vector.extract_strided_slice %144 {offsets = [0, 6], sizes = [8, 36], strides = [1, 1]} : vector<8x50xf32> to vector<8x36xf32>
    %149 = vector.extract_strided_slice %144 {offsets = [0, 7], sizes = [8, 36], strides = [1, 1]} : vector<8x50xf32> to vector<8x36xf32>
    %150 = vector.extract_strided_slice %144 {offsets = [0, 8], sizes = [8, 36], strides = [1, 1]} : vector<8x50xf32> to vector<8x36xf32>
    %151 = vector.extract_strided_slice %144 {offsets = [0, 12], sizes = [8, 36], strides = [1, 1]} : vector<8x50xf32> to vector<8x36xf32>
    %152 = vector.extract_strided_slice %144 {offsets = [0, 13], sizes = [8, 36], strides = [1, 1]} : vector<8x50xf32> to vector<8x36xf32>
    %153 = vector.extract_strided_slice %144 {offsets = [0, 14], sizes = [8, 36], strides = [1, 1]} : vector<8x50xf32> to vector<8x36xf32>
    %154 = tpu.concatenate %145, %146, %147, %148, %149, %150, %151, %152, %153 in 0 : vector<8x36xf32>, vector<8x36xf32>, vector<8x36xf32>, vector<8x36xf32>, vector<8x36xf32>, vector<8x36xf32>, vector<8x36xf32>, vector<8x36xf32>, vector<8x36xf32> -> vector<72x36xf32>
    %cst_57 = arith.constant dense<0.000000e+00> : vector<8x36xf32>
    %155 = tpu.matmul %142, %154, %cst_57 {dimension_numbers = #tpu.dot_dimension_numbers<[1], [0], [0], [1], [0, 0, 1, 1], [], []>, precision = #tpu.contract_precision<fp32>} : vector<8x72xf32>, vector<72x36xf32>, vector<8x36xf32> -> vector<8x36xf32>
    %c0_58 = arith.constant 0 : index
    %c0_59 = arith.constant 0 : index
    %156 = vector.load %arg20[%c0_58, %c0_59] : memref<8x1xf32, #tpu.memory_space<vmem>>, vector<8x1xf32>
    %157 = vector.broadcast %156 : vector<8x1xf32> to vector<8x36xf32>
    %158 = arith.addf %155, %157 : vector<8x36xf32>
    %159 = arith.addf %158, %120 : vector<8x36xf32>
    %cst_60 = arith.constant 0.000000e+00 : f32
    %160 = vector.broadcast %cst_60 : f32 to vector<8x36xf32>
    %161 = arith.maximumf %159, %160 : vector<8x36xf32>
    %162 = vector.broadcast %4 : vector<1x36xf32> to vector<8x36xf32>
    %163 = arith.mulf %161, %162 : vector<8x36xf32>
    %c0_61 = arith.constant 0 : index
    %c0_62 = arith.constant 0 : index
    %164 = vector.load %arg21[%c0_61, %c0_62] : memref<36x4xf32, #tpu.memory_space<vmem>>, vector<36x4xf32>
    %cst_63 = arith.constant 0.000000e+00 : f32
    %165 = vector.broadcast %cst_63 : f32 to vector<8x7xf32>
    %166 = tpu.concatenate %163, %165 in 1 : vector<8x36xf32>, vector<8x7xf32> -> vector<8x43xf32>
    %167 = vector.extract_strided_slice %166 {offsets = [0, 1], sizes = [8, 36], strides = [1, 1]} : vector<8x43xf32> to vector<8x36xf32>
    %168 = arith.maximumf %163, %167 : vector<8x36xf32>
    %169 = vector.extract_strided_slice %166 {offsets = [0, 6], sizes = [8, 36], strides = [1, 1]} : vector<8x43xf32> to vector<8x36xf32>
    %170 = arith.maximumf %168, %169 : vector<8x36xf32>
    %171 = vector.extract_strided_slice %166 {offsets = [0, 7], sizes = [8, 36], strides = [1, 1]} : vector<8x43xf32> to vector<8x36xf32>
    %172 = arith.maximumf %170, %171 : vector<8x36xf32>
    %cst_64 = arith.constant dense<0.000000e+00> : vector<8x4xf32>
    %173 = tpu.matmul %172, %164, %cst_64 {dimension_numbers = #tpu.dot_dimension_numbers<[1], [0], [0], [1], [0, 0, 1, 1], [], []>, precision = #tpu.contract_precision<fp32>} : vector<8x36xf32>, vector<36x4xf32>, vector<8x4xf32> -> vector<8x4xf32>
    %c0_65 = arith.constant 0 : index
    %c0_66 = arith.constant 0 : index
    %c0_67 = arith.constant 0 : index
    %174 = vector.load %arg22[%c0_65, %c0_66, %c0_67] : memref<1x8x4xf32, #tpu.memory_space<vmem>>, vector<1x8x4xf32>
    %175 = vector.shape_cast %174 : vector<1x8x4xf32> to vector<8x4xf32>
    %176 = vector.shape_cast %173 : vector<8x4xf32> to vector<1x8x4xf32>
    tpu.vector_store %arg22[%c0_65, %c0_66, %c0_67], %176 {strides = array<i32>} : memref<1x8x4xf32, #tpu.memory_space<vmem>>, vector<1x8x4xf32>,
    return
  }
  func.func @transform_0(%arg0: i32) -> (i32, i32, i32) {
    %c0_i32 = arith.constant 0 : i32
    %c0_i32_0 = arith.constant 0 : i32
    %c0_i32_1 = arith.constant 0 : i32
    return %arg0, %c0_i32, %c0_i32_0 : i32, i32, i32
  }
  func.func @transform_1(%arg0: i32) -> (i32, i32) {
    %c0_i32 = arith.constant 0 : i32
    %c0_i32_0 = arith.constant 0 : i32
    %c0_i32_1 = arith.constant 0 : i32
    return %c0_i32, %c0_i32_0 : i32, i32
  }
  func.func @transform_2(%arg0: i32) -> (i32, i32) {
    %c0_i32 = arith.constant 0 : i32
    %c0_i32_0 = arith.constant 0 : i32
    %c0_i32_1 = arith.constant 0 : i32
    return %c0_i32, %c0_i32_0 : i32, i32
  }
  func.func @transform_3(%arg0: i32) -> (i32, i32) {
    %c0_i32 = arith.constant 0 : i32
    %c0_i32_0 = arith.constant 0 : i32
    %c0_i32_1 = arith.constant 0 : i32
    return %c0_i32, %c0_i32_0 : i32, i32
  }
  func.func @transform_4(%arg0: i32) -> (i32, i32) {
    %c0_i32 = arith.constant 0 : i32
    %c0_i32_0 = arith.constant 0 : i32
    %c0_i32_1 = arith.constant 0 : i32
    return %c0_i32, %c0_i32_0 : i32, i32
  }
  func.func @transform_5(%arg0: i32) -> (i32, i32) {
    %c0_i32 = arith.constant 0 : i32
    %c0_i32_0 = arith.constant 0 : i32
    %c0_i32_1 = arith.constant 0 : i32
    return %c0_i32, %c0_i32_0 : i32, i32
  }
  func.func @transform_6(%arg0: i32) -> (i32, i32) {
    %c0_i32 = arith.constant 0 : i32
    %c0_i32_0 = arith.constant 0 : i32
    %c0_i32_1 = arith.constant 0 : i32
    return %c0_i32, %c0_i32_0 : i32, i32
  }
  func.func @transform_7(%arg0: i32) -> (i32, i32) {
    %c0_i32 = arith.constant 0 : i32
    %c0_i32_0 = arith.constant 0 : i32
    %c0_i32_1 = arith.constant 0 : i32
    return %c0_i32, %c0_i32_0 : i32, i32
  }
  func.func @transform_8(%arg0: i32) -> (i32, i32) {
    %c0_i32 = arith.constant 0 : i32
    %c0_i32_0 = arith.constant 0 : i32
    %c0_i32_1 = arith.constant 0 : i32
    return %c0_i32, %c0_i32_0 : i32, i32
  }
  func.func @transform_9(%arg0: i32) -> (i32, i32) {
    %c0_i32 = arith.constant 0 : i32
    %c0_i32_0 = arith.constant 0 : i32
    %c0_i32_1 = arith.constant 0 : i32
    return %c0_i32, %c0_i32_0 : i32, i32
  }
  func.func @transform_10(%arg0: i32) -> (i32, i32) {
    %c0_i32 = arith.constant 0 : i32
    %c0_i32_0 = arith.constant 0 : i32
    %c0_i32_1 = arith.constant 0 : i32
    return %c0_i32, %c0_i32_0 : i32, i32
  }
  func.func @transform_11(%arg0: i32) -> (i32, i32) {
    %c0_i32 = arith.constant 0 : i32
    %c0_i32_0 = arith.constant 0 : i32
    %c0_i32_1 = arith.constant 0 : i32
    return %c0_i32, %c0_i32_0 : i32, i32
  }
  func.func @transform_12(%arg0: i32) -> (i32, i32) {
    %c0_i32 = arith.constant 0 : i32
    %c0_i32_0 = arith.constant 0 : i32
    %c0_i32_1 = arith.constant 0 : i32
    return %c0_i32, %c0_i32_0 : i32, i32
  }
  func.func @transform_13(%arg0: i32) -> (i32, i32) {
    %c0_i32 = arith.constant 0 : i32
    %c0_i32_0 = arith.constant 0 : i32
    %c0_i32_1 = arith.constant 0 : i32
    return %c0_i32, %c0_i32_0 : i32, i32
  }
  func.func @transform_14(%arg0: i32) -> (i32, i32) {
    %c0_i32 = arith.constant 0 : i32
    %c0_i32_0 = arith.constant 0 : i32
    %c0_i32_1 = arith.constant 0 : i32
    return %c0_i32, %c0_i32_0 : i32, i32
  }
  func.func @transform_15(%arg0: i32) -> (i32, i32) {
    %c0_i32 = arith.constant 0 : i32
    %c0_i32_0 = arith.constant 0 : i32
    %c0_i32_1 = arith.constant 0 : i32
    return %c0_i32, %c0_i32_0 : i32, i32
  }
  func.func @transform_16(%arg0: i32) -> (i32, i32) {
    %c0_i32 = arith.constant 0 : i32
    %c0_i32_0 = arith.constant 0 : i32
    %c0_i32_1 = arith.constant 0 : i32
    return %c0_i32, %c0_i32_0 : i32, i32
  }
  func.func @transform_17(%arg0: i32) -> (i32, i32) {
    %c0_i32 = arith.constant 0 : i32
    %c0_i32_0 = arith.constant 0 : i32
    %c0_i32_1 = arith.constant 0 : i32
    return %c0_i32, %c0_i32_0 : i32, i32
  }
  func.func @transform_18(%arg0: i32) -> (i32, i32) {
    %c0_i32 = arith.constant 0 : i32
    %c0_i32_0 = arith.constant 0 : i32
    %c0_i32_1 = arith.constant 0 : i32
    return %c0_i32, %c0_i32_0 : i32, i32
  }
  func.func @transform_19(%arg0: i32) -> (i32, i32) {
    %c0_i32 = arith.constant 0 : i32
    %c0_i32_0 = arith.constant 0 : i32
    %c0_i32_1 = arith.constant 0 : i32
    return %c0_i32, %c0_i32_0 : i32, i32
  }
  func.func @transform_20(%arg0: i32) -> (i32, i32) {
    %c0_i32 = arith.constant 0 : i32
    %c0_i32_0 = arith.constant 0 : i32
    %c0_i32_1 = arith.constant 0 : i32
    return %c0_i32, %c0_i32_0 : i32, i32
  }
  func.func @transform_21(%arg0: i32) -> (i32, i32, i32) {
    %c0_i32 = arith.constant 0 : i32
    %c0_i32_0 = arith.constant 0 : i32
    %c0_i32_1 = arith.constant 0 : i32
    return %arg0, %c0_i32, %c0_i32_0 : i32, i32, i32
  }
}

</mosaic_0001>

<bundles_post_ra>
// kernel: tpu_custom_call.1
= control target key start
LH: loop header
LB: loop body
LE: loop exit
PB: predicated region body
PF: predicated region fallthrough
CT: control target
= control target key end

     0   :  { %s15007_s0 = inlined_call_operand.vmem [shape: f32[2,8,324], index: 0, kind: input, shape index: {}]   ;;  %s15008_s1 = inlined_call_operand.vmem [shape: f32[8,1], index: 1, kind: input, shape index: {}]   ;;  %s15009_s2 = inlined_call_operand.vmem [shape: f32[8,1], index: 2, kind: input, shape index: {}]   ;;  %s15010_s3 = inlined_call_operand.vmem [shape: f32[1,324], index: 3, kind: input, shape index: {}]   ;;  %s15011_s4 = inlined_call_operand.vmem [shape: f32[1,100], index: 4, kind: input, shape index: {}]   ;;  %s15012_s5 = inlined_call_operand.vmem [shape: f32[1,36], index: 5, kind: input, shape index: {}]   ;;  %s15013_s6 = inlined_call_operand.vmem [shape: f32[16,72], index: 6, kind: input, shape index: {}]   ;;  %s15014_s7 = inlined_call_operand.vmem [shape: f32[16,1], index: 7, kind: input, shape index: {}]   ;;  %s15015_s8 = inlined_call_operand.vmem [shape: f32[8,72], index: 8, kind: input, shape index: {}]   ;;  %s15016_s9 = inlined_call_operand.vmem [shape: f32[8,1], index: 9, kind: input, shape index: {}]   ;;  %s15017_s10 = inlined_call_operand.vmem [shape: f32[324,100], index: 10, kind: input, shape index: {}]   ;;  %s15018_s11 = inlined_call_operand.vmem [shape: f32[8,72], index: 11, kind: input, shape index: {}]   ;;  %s15019_s12 = inlined_call_operand.vmem [shape: f32[8,1], index: 12, kind: input, shape index: {}]   ;;  %s15020_s13 = inlined_call_operand.vmem [shape: f32[8,72], index: 13, kind: input, shape index: {}]   ;;  %s15021_s14 = inlined_call_operand.vmem [shape: f32[8,1], index: 14, kind: input, shape index: {}]   ;;  %s15022_s15 = inlined_call_operand.vmem [shape: f32[100,36], index: 15, kind: input, shape index: {}]   ;;  %s15023_s16 = inlined_call_operand.vmem [shape: f32[8,72], index: 16, kind: input, shape index: {}]   ;;  %s15024_s17 = inlined_call_operand.vmem [shape: f32[8,1], index: 17, kind: input, shape index: {}]   ;;  %s15025_s18 = inlined_call_operand.vmem [shape: f32[8,72], index: 18, kind: input, shape index: {}]   ;;  %s15026_s19 = inlined_call_operand.vmem [shape: f32[8,1], index: 19, kind: input, shape index: {}]   ;;  %s15027_s20 = inlined_call_operand.vmem [shape: f32[36,4], index: 20, kind: input, shape index: {}]   ;;  %s15028_s21 = inlined_call_operand.vmem [shape: f32[2,8,4], index: 21, kind: output, shape index: {}]  }
   0x1   :  { %15169 = sst [smem:[#allocation17_spill]] %s15007_s0 }
   0x2   :  { %15170 = sst [smem:[#allocation18_spill]] %s15008_s1 }
   0x3   :  { %15171 = sst [smem:[#allocation19_spill]] %s15009_s2  ;;  %s11865_s2 = smov 0  }
   0x4   :  { %15172 = sst [smem:[#allocation20_spill]] %s15010_s3 }
   0x5   :  { %15173 = sst [smem:[#allocation21_spill]] %s15011_s4 }
   0x6   :  { %15174 = sst [smem:[#allocation22_spill]] %s15012_s5 }
   0x7 LB: > { %s8616_s25 = sadd.s32 4294967295, %s11728_s2   ;;  %p8620_p0 = scmp.ge.s32.totalorder %s11728_s2, 1  ;;  %s11728_s2 = sphi %s11865_s2, %s31_s2  }
   0x8   : > { %p587_p1 = scmp.lt.s32.totalorder %s11728_s2, 3 }
   0xa   : > { %p588_p2 = pnand %p8620_p0, %p587_p1 }
   0xc   : > { %591 = sbr.rel (%p588_p2) target bundleno = 4903 (0x1327), region = 104 }
  0x13   : > { %s15175_s3 = sld [smem:[#allocation18_spill]]  ;;  %v11730_v1 = vmov 0   ;;  %s15176_s0 = sld [smem:[#allocation19_spill]]  ;;  %v680_v3 = vlaneseq  ;;  %vm709_vm0 = vcmask 154624   ;;  %vm716_vm1 = vcmask 711680   ;;  %v698_v33 = vld [vmem:[%s15013_s6] sm:$0xff] }
  0x14   : > { %11720 = vset.pattern.permute.xlu0 %v11730_v1  ;;  %11721 = vset.pattern.permute.xlu1 %v11730_v1  ;;  %p646_p3 = scmp.lt.s32.totalorder %s8616_s25, 1  ;;  %s15177_s22 = sld [smem:[#allocation17_spill]]  ;;  %vm828_vm2 = vcmask 588800   ;;  %v15041_v36 = vmov 0.0   ;;  %v699_v39 = vld [vmem:[%s15013_s6 + $0x8] sm:$0xff]  ;;  %vm726_vm3 = vcmask 1039360  }
  0x15   : > { %v681_v4 = vshrl.u32 %v680_v3, 7  ;;  %s15178_s26 = sld [smem:[#allocation20_spill]]  ;;  %s11731_s27 = smov 19   ;;  %v830_v34 = vsel %vm828_vm2, %v698_v33, 0  ;;  %917 = vmatprep.mubr.f32.mxu0 %v15041_v36  ;;  %v833_v42 = vsel %vm828_vm2, %v699_v39, 0  ;;  %vm738_vm4 = vcmask 1031168  }
  0x16   : > { %s15394_s25 = smov (!%p646_p3, %s8616_s25), 1  ;;  %s11733_s28 = smov 127   ;;  %v11950_v35 = vand.u32 4294901760, %v830_v34  ;;  %v11977_v47 = vand.u32 4294901760, %v833_v42  ;;  %vm750_vm5 = vcmask 900096   ;;  %vm774_vm6 = vcmask 883712  }
  0x17   : > { %s11686_s4 = smul.u32 24, %s15394_s25  ;;  %v686_v5 = vsub.s32 1, %v681_v4  ;;  %v682_v6 = vsub.s32 0, %v681_v4  ;;  %v690_v12 = vsub.s32 2, %v681_v4  ;;  %s11734_s29 = smov 110   ;;  %vm762_vm7 = vcmask 891904  }
  0x18   : > { %s11737_s30 = smov 92   ;;  %9422 = vmatprep.mubr.f32.mxu1 %v11950_v35  ;;  %s11740_s1 = smov 90   ;;  %v11994_v55 = vsub.f32 %v830_v34, %v11950_v35  ;;  %v11997_v56 = vsub.f32 %v833_v42, %v11977_v47  ;;  %vm786_vm8 = vcmask 752640   ;;  %vm798_vm9 = vcmask 744448  }
  0x19   : > { %v655_v0 = vld [vmem:[%s15175_s3] sm:$0xff]  ;;  %s15120_s3 = smov 126   ;;  %vm810_vm10 = vcmask 736256   ;;  %vm11742_vm11 = vmmov 0   ;;  %vm3545_vm12 = vcmask 556032   ;;  %vm3595_vm13 = vcmask 1043456  }
  0x1a   : > { %665 = vperm.xlu0 %11720, %v655_v0   ;;  %v656_v2 = vld [vmem:[%s15176_s0] sm:$0xff]  ;;  %s650_s23 = scalar_lea.vmem %s15177_s22, %s11686_s4  ;;  %s11735_s0 = smov 109   ;;  %v12011_v3 = vand.u32 4294901760, %v11997_v56  ;;  %vm5016_vm14 = vcmask 89088   ;;  %vm5018_vm15 = vcmask 908288  }
  0x1b   : > { %v660_v8 = vld [vmem:[%s650_s23] sm:$0xff]  ;;  %v661_v10 = vld [vmem:[%s650_s23 + $0x8] sm:$0xff]  ;;  %v662_v11 = vld [vmem:[%s650_s23 + $0x10] sm:$0xff]  ;;  %s15118_s4 = smov 108   ;;  %s11738_s23 = smov 91  }
  0x1c   : > { %v657_v9 = vld [vmem:[%s15178_s26] sm:$0x7]  ;;  %15182 = vst [vmem:[#allocation5_spill] sm:$0xff] %v12011_v3  ;;  %s15168_s5 = smov 117   ;;  %s15388_s22 = smov 108  }
  0x1d   : > { %v11888_v15 = vrot.slane %v657_v9, %v686_v5  ;;  %v11890_v16 = vrot.slane %v657_v9, %v682_v6  ;;  %v11894_v24 = vrot.slane %v657_v9, %v690_v12  ;;  %s11751_s24 = smov 122   ;;  %s15391_s26 = smov 116  }
  0x1e   : > { %673 = vperm.xlu0 %11720, %v656_v2   ;;  %v12008_v2 = vand.u32 4294901760, %v11994_v55 }
  0x1f   : > { %15179 = vst [vmem:[#allocation2_spill] sm:$0xff] %v11888_v15  ;;  %15180 = vst [vmem:[#allocation3_spill] sm:$0xff] %v11890_v16 }
  0x20   : > { %15181 = vst [vmem:[#allocation4_spill] sm:$0xff] %v11894_v24 }
  0x99   : > { %v666_v7 = vpop.permute.xlu0 %665 }
  0x9a   : > { %v668_v13 = vmul.f32 %v666_v7, %v660_v8  ;;  %v669_v14 = vmul.f32 %v666_v7, %v661_v10  ;;  %v670_v18 = vmul.f32 %v666_v7, %v662_v11 }
  0x9d   : > { %v674_v17 = vpop.permute.xlu0 %673 }
  0x9e   : > { %v676_v19 = vadd.f32 %v674_v17, %v668_v13  ;;  %v677_v20 = vadd.f32 %v674_v17, %v669_v14  ;;  %v678_v21 = vadd.f32 %v674_v17, %v670_v18  ;;  %v921_v13 = vsub.f32 %v11994_v55, %v12008_v2 }
  0x9f   : > { %v932_v14 = vsub.f32 %v11997_v56, %v12011_v3 }
  0xa0   : > { %v696_v22 = vmul.f32 %v11888_v15, %v677_v20  ;;  %v695_v23 = vmul.f32 %v11890_v16, %v676_v19  ;;  %v697_v25 = vmul.f32 %v11894_v24, %v678_v21 }
  0xa1   : > { %v12064_v33 = vand.u32 4294901760, %v932_v14 }
  0xa2   : > { %705 = vrot.lane.b32.xlu1 %v696_v22, %s11731_s27  ;;  %703 = vrot.lane.b32.xlu0 %v695_v23, %s11731_s27 }
  0xa6   : > { %707 = vrot.lane.b32.xlu1 %v697_v25, %s11731_s27 }
 0x114   : > { %v706_v26 = vpop.permute.xlu1 %705  ;;  %v704_v27 = vpop.permute.xlu0 %703 }
 0x115   : > { %v11901_v28 = vsel %vm709_vm0, %v704_v27, %v706_v26  ;;  %v11908_v29 = vsel %vm709_vm0, 0.0, %v704_v27 }
 0x116   : > { %734 = vrot.lane.b32.xlu0 %v11901_v28, %s15120_s3  ;;  %722 = vrot.lane.b32.xlu1 %v11901_v28, %s11733_s28  ;;  %v835_v43 = vand.u32 4294901760, %v11901_v28  ;;  %v837_v46 = vand.u32 4294901760, %v11908_v29 }
 0x118   : > { %v708_v30 = vpop.permute.xlu1 %707  ;;  %v11982_v51 = vsub.f32 %v11901_v28, %v835_v43  ;;  %v11985_v52 = vsub.f32 %v11908_v29, %v837_v46 }
 0x119   : > { %v711_v31 = vsel %vm709_vm0, %v706_v26, %v708_v30 }
 0x11a   : > { %746 = vrot.lane.b32.xlu0 %v11901_v28, %s11734_s29  ;;  %720 = vrot.lane.b32.xlu1 %v11908_v29, %s11733_s28  ;;  %v11924_v32 = vsel %vm716_vm1, %v711_v31, 0.0  ;;  %v15033_v61 = vand.u32 4294901760, %v11982_v51  ;;  %v15032_v0 = vand.u32 4294901760, %v11985_v52  ;;  %v12062_v31 = vand.u32 4294901760, %v921_v13 }
 0x11b   : > { %v15040_v45 = vand.u32 4294901760, %v11924_v32 }
 0x11c   : > { %v12020_v8 = vsub.f32 %v11982_v51, %v15033_v61  ;;  %v12032_v11 = vsub.f32 %v11985_v52, %v15032_v0 }
 0x11d   : > { %v11990_v53 = vsub.f32 %v11924_v32, %v15040_v45 }
 0x11e   : > { %732 = vrot.lane.b32.xlu0 %v11908_v29, %s15120_s3  ;;  %744 = vrot.lane.b32.xlu1 %v11908_v29, %s11734_s29 }
 0x11f   : > { %v15034_v63 = vand.u32 4294901760, %v11990_v53 }
 0x121   : > { %v12027_v10 = vsub.f32 %v11990_v53, %v15034_v63 }
 0x122   : > { %758 = vrot.lane.b32.xlu0 %v11901_v28, %s11735_s0  ;;  %768 = vrot.lane.b32.xlu1 %v11908_v29, %s15118_s4 }
 0x126   : > { %770 = vrot.lane.b32.xlu0 %v11901_v28, %s15118_s4  ;;  %736 = vrot.lane.b32.xlu1 %v11924_v32, %s15120_s3 }
 0x12a   : > { %756 = vrot.lane.b32.xlu0 %v11908_v29, %s11735_s0  ;;  %748 = vrot.lane.b32.xlu1 %v11924_v32, %s11734_s29 }
 0x12e   : > { %724 = vrot.lane.b32.xlu0 %v11924_v32, %s11733_s28  ;;  %760 = vrot.lane.b32.xlu1 %v11924_v32, %s11735_s0 }
 0x132   : > { %782 = vrot.lane.b32.xlu0 %v11901_v28, %s11737_s30  ;;  %772 = vrot.lane.b32.xlu1 %v11924_v32, %s15118_s4 }
 0x136   : > { %794 = vrot.lane.b32.xlu0 %v11901_v28, %s11738_s23  ;;  %784 = vrot.lane.b32.xlu1 %v11924_v32, %s11737_s30 }
 0x13a   : > { %780 = vrot.lane.b32.xlu0 %v11908_v29, %s11737_s30  ;;  %796 = vrot.lane.b32.xlu1 %v11924_v32, %s11738_s23 }
 0x13e   : > { %806 = vrot.lane.b32.xlu0 %v11901_v28, %s11740_s1  ;;  %792 = vrot.lane.b32.xlu1 %v11908_v29, %s11738_s23 }
 0x142   : > { %804 = vrot.lane.b32.xlu0 %v11908_v29, %s11740_s1  ;;  %808 = vrot.lane.b32.xlu1 %v11924_v32, %s11740_s1 }
 0x188   : > { %v735_v37 = vpop.permute.xlu0 %734  ;;  %v11966_v38 = vpop.permute.xlu1 %722 }
 0x18c   : > { %v747_v40 = vpop.permute.xlu0 %746  ;;  %v721_v41 = vpop.permute.xlu1 %720 }
 0x18d   : > { %v727_v44 = vsel %vm726_vm3, %v721_v41, %v11966_v38 }
 0x18e   : > { %v841_v50 = vand.u32 4294901760, %v727_v44 }
 0x190   : > { %v733_v48 = vpop.permute.xlu0 %732  ;;  %v745_v49 = vpop.permute.xlu1 %744  ;;  %v12002_v60 = vsub.f32 %v727_v44, %v841_v50 }
 0x191   : > { %v739_v54 = vsel %vm738_vm4, %v733_v48, %v735_v37  ;;  %v751_v57 = vsel %vm750_vm5, %v745_v49, %v747_v40 }
 0x192   : > { %v845_v62 = vand.u32 4294901760, %v739_v54  ;;  %v849_v1 = vand.u32 4294901760, %v751_v57  ;;  %v15031_v6 = vand.u32 4294901760, %v12002_v60 }
 0x194   : > { %v12000_v58 = vpop.permute.xlu0 %758  ;;  %v769_v59 = vpop.permute.xlu1 %768  ;;  %v12022_v9 = vsub.f32 %v739_v54, %v845_v62  ;;  %v12034_v12 = vsub.f32 %v751_v57, %v849_v1  ;;  %v12050_v20 = vsub.f32 %v12002_v60, %v15031_v6  ;;  %v12072_v42 = vpack.c.bf16 %v849_v1, %v845_v62 }
 0x196   : > { %v15029_v23 = vand.u32 4294901760, %v12022_v9  ;;  %v15030_v29 = vand.u32 4294901760, %v12034_v12  ;;  %15184 = vst [vmem:[#allocation7_spill] sm:$0xff] %v12072_v42  ;;  %v962_v48 = vand.u32 4294901760, %v12050_v20 }
 0x198   : > { %v771_v4 = vpop.permute.xlu0 %770  ;;  %v12013_v5 = vpop.permute.xlu1 %736 }
 0x199   : > { %v15038_v7 = vand.u32 4294901760, %v12013_v5  ;;  %v740_v30 = vsel %vm738_vm4, %v735_v37, %v12013_v5  ;;  %v12097_v1 = vsel %vm774_vm6, %v769_v59, %v771_v4 }
 0x19a   : > { %v843_v62 = vand.u32 4294901760, %v740_v30 }
 0x19b   : > { %v12043_v17 = vsub.f32 %v12013_v5, %v15038_v7  ;;  %v857_v7 = vand.u32 4294901760, %v12097_v1 }
 0x19c   : > { %v757_v18 = vpop.permute.xlu0 %756  ;;  %v12045_v19 = vpop.permute.xlu1 %748 }
 0x19d   : > { %v752_v21 = vsel %vm750_vm5, %v747_v40, %v12045_v19  ;;  %v15036_v25 = vand.u32 4294901760, %v12045_v19  ;;  %v12070_v40 = vpack.c.bf16 %v841_v50, %v837_v46  ;;  %v15037_v44 = vand.u32 4294901760, %v12043_v17 }
 0x19e   : > { %v847_v41 = vand.u32 4294901760, %v752_v21  ;;  %v12084_v46 = vsub.f32 %v12022_v9, %v15029_v23  ;;  %v12111_v20 = vsel %vm762_vm7, %v757_v18, %v12000_v58 }
 0x19f   : > { %15183 = vst [vmem:[#allocation6_spill] sm:$0xff] %v12070_v40  ;;  %v12089_v50 = vsub.f32 %v12045_v19, %v15036_v25  ;;  %v1669_v0 = vsub.f32 %v12043_v17, %v15037_v44 }
 0x1a0   : > { %v12066_v34 = vpop.permute.xlu0 %724  ;;  %v12068_v39 = vpop.permute.xlu1 %760  ;;  %v12119_v6 = vpack.c.bf16 %v847_v41, %v843_v62 }
 0x1a1   : > { %v728_v37 = vsel %vm726_vm3, %v11966_v38, %v12066_v34  ;;  %v15039_v49 = vand.u32 4294901760, %v12066_v34  ;;  %v15035_v54 = vand.u32 4294901760, %v12068_v39  ;;  %v12094_v38 = vsub.f32 %v12034_v12, %v15030_v29 }
 0x1a2   : > { %v839_v57 = vand.u32 4294901760, %v728_v37  ;;  %15187 = vst [vmem:[#allocation10_spill] sm:$0xff] %v12119_v6  ;;  %v764_v61 = vsel %vm762_vm7, %v12000_v58, %v12068_v39  ;;  %v15051_v44 = vand.u32 4294901760, %v12089_v50  ;;  %v1670_v26 = vand.u32 4294901760, %v1669_v0 }
 0x1a3   : > { %v12102_v13 = vsub.f32 %v12066_v34, %v15039_v49  ;;  %v12107_v14 = vsub.f32 %v12068_v39, %v15035_v54  ;;  %v853_v49 = vand.u32 4294901760, %v12111_v20  ;;  %v851_v45 = vand.u32 4294901760, %v764_v61 }
 0x1a4   : > { %v783_v23 = vpop.permute.xlu0 %782  ;;  %v12113_v29 = vpop.permute.xlu1 %772  ;;  %v12117_v59 = vpack.c.bf16 %v839_v57, %v835_v43  ;;  %v12131_v28 = vsub.f32 %v728_v37, %v839_v57  ;;  %v816_v57 = vld [vmem:[%s15014_s7] sm:$0xff]  ;;  %v15191_v0 = vand.u32 4294901760, %v12027_v10 }
 0x1a5   : > { %15185 = vst [vmem:[#allocation8_spill] sm:$0xff] %v12113_v29  ;;  %v776_v18 = vsel %vm774_vm6, %v771_v4, %v12113_v29  ;;  %v15043_v63 = vand.u32 4294901760, %v12113_v29  ;;  %v15044_v54 = vand.u32 4294901760, %v12102_v13  ;;  %v12143_v4 = vsub.f32 %v740_v30, %v843_v62  ;;  %820 = vperm.xlu1 %11721, %v816_v57  }
 0x1a6   : > { %15186 = vst [vmem:[#allocation9_spill] sm:$0xff] %v12117_v59  ;;  %v855_v25 = vand.u32 4294901760, %v776_v18  ;;  %10518 = vmatprep.subr.bf16.mxu0 %v12117_v59  ;;  %v1676_v30 = vsub.f32 %v12089_v50, %v15051_v44  ;;  %v15190_v16 = vand.u32 4294901760, %v12107_v14  ;;  %v12185_v3 = vpack.c.bf16 %v857_v7, %v853_v49 }
 0x1a7   : > { %v12140_v58 = vsub.f32 %v12113_v29, %v15043_v63  ;;  %10520 = vmatpush1.bf16.msra.mxu0 %v12070_v40  ;;  %v1662_v37 = vsub.f32 %v12102_v13, %v15044_v54  ;;  %v12155_v63 = vsub.f32 %v752_v21, %v847_v41 }
 0x1a8   : > { %v795_v36 = vpop.permute.xlu0 %794  ;;  %v12152_v22 = vpop.permute.xlu1 %784  ;;  %10522 = vmatprep.subr.bf16.mxu0 %v12119_v6  ;;  %v12162_v43 = vpack.c.bf16 %v855_v25, %v851_v45  ;;  %v1677_v24 = vand.u32 4294901760, %v1676_v30  ;;  %v1683_v15 = vsub.f32 %v12107_v14, %v15190_v16  ;;  %15193 = vst [vmem:[#allocation14_spill] sm:$0xff] %v12185_v3 }
 0x1a9   : > { %15188 = vst [vmem:[#allocation11_spill] sm:$0xff] %v12152_v22  ;;  %v15057_v62 = vand.u32 4294901760, %v12140_v58  ;;  %v15054_v54 = vand.u32 4294901760, %v12152_v22  ;;  %v1663_v27 = vand.u32 4294901760, %v1662_v37  ;;  %v788_v41 = vsel %vm786_vm8, %v783_v23, %v12152_v22 }
 0x1aa   : > { %15189 = vst [vmem:[#allocation12_spill] sm:$0xff] %v12162_v43  ;;  %v10633_v30 = vpack.c.bf16 %v1677_v24, %v1670_v26  ;;  %v12207_v26 = vsub.f32 %v764_v61, %v851_v45  ;;  %v12222_v45 = vsub.f32 %v12111_v20, %v853_v49  ;;  %v15198_v49 = vand.u32 4294901760, %v12155_v63 }
 0x1ab   : > { %v12173_v57 = vsub.f32 %v12152_v22, %v15054_v54  ;;  %10524 = vmatpush1.bf16.msra.mxu0 %v12072_v42  ;;  %v10629_v37 = vpack.c.bf16 %v1663_v27, %v15191_v0  ;;  %v1690_v16 = vsub.f32 %v12140_v58, %v15057_v62  ;;  %v15194_v54 = vand.u32 4294901760, %v12032_v11 }
 0x1ac   : > { %v781_v44 = vpop.permute.xlu0 %780  ;;  %v12182_v21 = vpop.permute.xlu1 %796  ;;  %10526 = vmatprep.subr.bf16.mxu0 %v12162_v43  ;;  %v859_v42 = vand.u32 4294901760, %v788_v41  ;;  %v1684_v43 = vand.u32 4294901760, %v1683_v15  ;;  %v12209_v15 = vsub.f32 %v776_v18, %v855_v25  ;;  %v15197_v18 = vand.u32 4294901760, %v12143_v4 }
 0x1ad   : > { %15192 = vst [vmem:[#allocation13_spill] sm:$0xff] %v12182_v21  ;;  %v12189_v6 = vpack.c.bf16 %v962_v48, %v15194_v54  ;;  %v15069_v27 = vand.u32 4294901760, %v12173_v57  ;;  %v800_v0 = vsel %vm798_vm9, %v795_v36, %v12182_v21  ;;  %v15066_v62 = vand.u32 4294901760, %v12182_v21  ;;  %10630 = vmatprep.subr.bf16.mxu1 %v10629_v37 }
 0x1ae   : > { %v863_v40 = vand.u32 4294901760, %v800_v0  ;;  %10632 = vmatpush3.bf16.msra.mxu1 %v10629_v37  ;;  %v1691_v59 = vand.u32 4294901760, %v1690_v16  ;;  %v787_v11 = vsel %vm786_vm8, %v781_v44, %v783_v23  ;;  %v15195_v54 = vand.u32 4294901760, %v12131_v28 }
 0x1af   : > { %v12200_v48 = vsub.f32 %v12182_v21, %v15066_v62  ;;  %10528 = vmatpush1.bf16.msra.mxu0 %v12185_v3  ;;  %10634 = vmatprep.subr.bf16.mxu1 %v10633_v30  ;;  %v1697_v16 = vsub.f32 %v12173_v57, %v15069_v27  ;;  %v12217_v62 = vsub.f32 %v12097_v1, %v857_v7  ;;  %v861_v61 = vand.u32 4294901760, %v787_v11 }
 0x1b0   : > { %v955_v10 = vsub.f32 %v12131_v28, %v15195_v54  ;;  %v807_v37 = vpop.permute.xlu0 %806  ;;  %v793_v23 = vpop.permute.xlu1 %792  ;;  %v12211_v44 = vpack.c.bf16 %v863_v40, %v859_v42  ;;  %v10637_v24 = vpack.c.bf16 %v1691_v59, %v1684_v43  ;;  %v967_v27 = vsub.f32 %v12143_v4, %v15197_v18 }
 0x1b1   : > { %v15073_v3 = vand.u32 4294901760, %v12200_v48  ;;  %v799_v54 = vsel %vm798_vm9, %v793_v23, %v795_v36  ;;  %v12228_v21 = vsub.f32 %v788_v41, %v859_v42  ;;  %v979_v1 = vsub.f32 %v12155_v63, %v15198_v49 }
 0x1b2   : > { %15196 = vst [vmem:[#allocation15_spill] sm:$0xff] %v12211_v44  ;;  %v865_v25 = vand.u32 4294901760, %v799_v54  ;;  %10530 = vmatprep.subr.bf16.mxu0 %v12211_v44  ;;  %10636 = vmatpush3.bf16.msra.mxu1 %v10633_v30  ;;  %v956_v7 = vand.u32 4294901760, %v955_v10  ;;  %v1698_v30 = vand.u32 4294901760, %v1697_v16  ;;  %v15076_v49 = vand.u32 4294901760, %v12222_v45 }
 0x1b3   : > { %10638 = vmatprep.subr.bf16.mxu1 %v10637_v24  ;;  %v1704_v36 = vsub.f32 %v12200_v48, %v15073_v3  ;;  %v12246_v22 = vsub.f32 %v800_v0, %v863_v40  ;;  %v980_v23 = vand.u32 4294901760, %v979_v1  ;;  %v12256_v42 = vsub.f32 %v787_v11, %v861_v61 }
 0x1b4   : > { %v805_v20 = vpop.permute.xlu0 %804  ;;  %v809_v59 = vpop.permute.xlu1 %808  ;;  %v12236_v43 = vpack.c.bf16 %v865_v25, %v861_v61  ;;  %v12248_v29 = vsub.f32 %v799_v54, %v865_v25  ;;  %v15199_v3 = vand.u32 4294901760, %v12020_v8  ;;  %v15200_v0 = vand.u32 4294901760, %v12209_v15 }
 0x1b5   : > { %v811_v41 = vsel %vm810_vm10, %v805_v20, %v807_v37  ;;  %v812_v18 = vsel %vm810_vm10, %v807_v37, %v809_v59  ;;  %v12242_v44 = vand.u32 4294901760, %v809_v59  ;;  %v1705_v10 = vand.u32 4294901760, %v1704_v36 }
 0x1b6   : > { %10532 = vmatpush1.bf16.msra.mxu0 %v12236_v43  ;;  %10640 = vmatpush3.bf16.msra.mxu1 %v10637_v24  ;;  %v12251_v16 = vand.u32 4294901760, %v812_v18  ;;  %v12258_v36 = vand.u32 4294901760, %v811_v41  ;;  %v10533_v40 = vpack.c.bf16 %v956_v7, %v15199_v3  ;;  %v1003_v54 = vsub.f32 %v12209_v15, %v15200_v0 }
 0x1b7   : > { %v12254_v20 = vsub.f32 %v809_v59, %v12242_v44  ;;  %v10641_v37 = vpack.c.bf16 %v1705_v10, %v1698_v30  ;;  %v968_v24 = vand.u32 4294901760, %v967_v27  ;;  %v15201_v1 = vand.u32 4294901760, %v12207_v26 }
 0x1b8   : > { %868 = vmatprep.subr.mxu0 %v12251_v16  ;;  %v15078_v61 = vand.u32 4294901760, %v12228_v21  ;;  %v986_v8 = vand.u32 4294901760, %v12094_v38  ;;  %v997_v3 = vsub.f32 %v12222_v45, %v15076_v49  ;;  %v15079_v7 = vand.u32 4294901760, %v12248_v29 }
 0x1b9   : > { %10642 = vmatprep.subr.bf16.mxu1 %v10641_v37  ;;  %v12267_v25 = vand.u32 4294901760, %v12254_v20  ;;  %v991_v11 = vsub.f32 %v12207_v26, %v15201_v1  ;;  %v15077_v27 = vand.u32 4294901760, %v12246_v22  ;;  %v12281_v59 = vsub.f32 %v812_v18, %v12251_v16 }
 0x1ba   : > { %870 = vmatpush1.msra.mxu0 %v12258_v36  ;;  %10644 = vmatpush3.bf16.msra.mxu1 %v10641_v37  ;;  %v10537_v30 = vpack.c.bf16 %v980_v23, %v968_v24  ;;  %v1004_v10 = vand.u32 4294901760, %v1003_v54  ;;  %v15202_v0 = vand.u32 4294901760, %v12217_v62  ;;  %v1015_v23 = vsub.f32 %v12228_v21, %v15078_v61 }
 0x1bb   : > { %10534 = vmatprep.subr.bf16.mxu0 %v10533_v40  ;;  %923 = vmatmul.mubr.f32.vlgmr.msra.gmra.mrb[0].mxu0 %v12062_v31  ;;  %v1711_v38 = vsub.f32 %v12254_v20, %v12267_v25  ;;  %v1027_v18 = vsub.f32 %v12246_v22, %v15077_v27  ;;  %v992_v40 = vand.u32 4294901760, %v991_v11  ;;  %v15203_v54 = vmov 0.0  }
 0x1bc   : > { %v1009_v1 = vsub.f32 %v12217_v62, %v15202_v0  ;;  %10536 = vmatpush1.bf16.msra.mxu0 %v12189_v6  ;;  %928 = vmatprep.mubr.f32.mxu0 %v15203_v54  ;;  %v998_v24 = vand.u32 4294901760, %v997_v3  ;;  %v1033_v0 = vsub.f32 %v12248_v29, %v15079_v7  ;;  %v12302_v6 = vsub.f32 %v811_v41, %v12258_v36 }
 0x1bd   : > { %10538 = vmatprep.subr.bf16.mxu0 %v10537_v30  ;;  %v1712_v37 = vand.u32 4294901760, %v1711_v38  ;;  %v15204_v49 = vand.u32 4294901760, %v12084_v46  ;;  %v10541_v30 = vpack.c.bf16 %v1004_v10, %v992_v40  ;;  %v10645_v11 = vpack.c.bf16 %v12102_v13, %v11990_v53 }
 0x1be   : > { %v1028_v38 = vand.u32 4294901760, %v1027_v18  ;;  %v1038_v61 = vand.u32 4294901760, %v12281_v59  ;;  %v15205_v3 = vand.u32 4294901760, %v12256_v42  ;;  %v1010_v41 = vand.u32 4294901760, %v1009_v1 }
 0x1bf   : > { %v10539_v27 = vpack.c.bf16 %v986_v8, %v15204_v49  ;;  %9420 = vmatprep.subr.mxu1 %v1712_v37  ;;  %934 = vmatmul.mubr.f32.gmra.mrb[2].mxu0 %v12064_v33  ;;  %v1016_v46 = vand.u32 4294901760, %v1015_v23  ;;  %v1034_v49 = vand.u32 4294901760, %v1033_v0  ;;  %v1044_v8 = vand.u32 4294901760, %v12302_v6 }
 0x1c0   : > { %v1021_v7 = vsub.f32 %v12256_v42, %v15205_v3  ;;  %9421 = vmatpush3.msra.mxu1 %v1712_v37  ;;  %v10649_v10 = vpack.c.bf16 %v12089_v50, %v12043_v17  ;;  %v10543_v18 = vpack.c.bf16 %v1010_v41, %v998_v24  ;;  %1094 = vmatprep.mubr.f32.mxu0 %v15203_v54 }
 0x1c1   : > { %10540 = vmatpush1.bf16.msra.mxu0 %v10539_v27  ;;  %10646 = vmatprep.subr.bf16.mxu1 %v10645_v11  ;;  %v10545_v40 = vpack.c.bf16 %v1028_v38, %v1016_v46  ;;  %v1039_v27 = vsub.f32 %v12281_v59, %v1038_v61  ;;  %v1045_v37 = vsub.f32 %v12302_v6, %v1044_v8 }
 0x1c2   : > { %10542 = vmatprep.subr.bf16.mxu0 %v10541_v30  ;;  %9423 = vmatmul.mubr.f32.vlgmr.msra.gmra.mrb[0].mxu1 %v11977_v47  ;;  %v1022_v1 = vand.u32 4294901760, %v1021_v7  ;;  %v10653_v23 = vpack.c.bf16 %v12140_v58, %v12107_v14  ;;  %v10657_v30 = vpack.c.bf16 %v12200_v48, %v12173_v57  ;;  %v10551_v38 = vpack.c.bf16 %v12002_v60, %v11985_v52 }
 0x1c3   : > { %10648 = vmatpush3.bf16.msra.mxu1 %v10645_v11  ;;  %9443 = vmatprep.mubr.f32.mxu1 %v11994_v55  ;;  %v1040_v0 = vand.u32 4294901760, %v1039_v27  ;;  %v1046_v7 = vand.u32 4294901760, %v1045_v37  ;;  %v10549_v11 = vpack.c.bf16 %v12131_v28, %v11982_v51  ;;  %v10553_v3 = vpack.c.bf16 %v12155_v63, %v12143_v4 }
 0x1c4   : > { %10650 = vmatprep.subr.bf16.mxu1 %v10649_v10  ;;  %v10547_v24 = vpack.c.bf16 %v1034_v49, %v1022_v1  ;;  %v10555_v41 = vpack.c.bf16 %v12034_v12, %v12022_v9  ;;  %v10557_v46 = vpack.c.bf16 %v12209_v15, %v12207_v26  ;;  %v15206_v49 = vand.u32 4294901760, %v11924_v32 }
 0x1c5   : > { %10544 = vmatpush1.bf16.msra.mxu0 %v10543_v18  ;;  %v15208_v27 = vand.u32 4294901760, %v12013_v5  ;;  %v15209_v1 = vand.u32 4294901760, %v12045_v19  ;;  %v10561_v32 = vpack.c.bf16 %v12246_v22, %v12228_v21  ;;  %v15210_v5 = vand.u32 4294901760, %v12068_v39  ;;  %v15211_v19 = vld [vmem:[#allocation8_spill] sm:$0xff]  ;;  %v15217_v39 = vld [vmem:[#allocation9_spill] sm:$0xff] }
 0x1c6   : > { %10546 = vmatprep.subr.bf16.mxu0 %v10545_v40  ;;  %v10559_v40 = vpack.c.bf16 %v12217_v62, %v12222_v45 }
 0x1c7   : > { %10652 = vmatpush3.bf16.msra.mxu1 %v10649_v10  ;;  %v15207_v10 = vand.u32 4294901760, %v12066_v34  ;;  %v12357_v37 = vpack.c.bf16 %v15209_v1, %v15208_v27  ;;  %v15212_v34 = vand.u32 4294901760, %v15211_v19  ;;  %v15225_v27 = vand.u32 4294901760, %v12043_v17 }
 0x1c8   : > { %10654 = vmatprep.subr.bf16.mxu1 %v10653_v23  ;;  %v15231_v17 = vand.u32 4294901760, %v12173_v57  ;;  %v15237_v57 = vand.u32 4294901760, %v12143_v4 }
 0x1c9   : > { %10548 = vmatpush1.bf16.msra.mxu0 %v10547_v24  ;;  %v12347_v18 = vpack.c.bf16 %v15207_v10, %v15206_v49  ;;  %v15213_v24 = vld [vmem:[#allocation11_spill] sm:$0xff]  ;;  %v15222_v49 = vand.u32 4294901760, %v12102_v13 }
 0x1ca   : > { %1041 = vmatprep.subr.mxu0 %v1040_v0  ;;  %v15214_v0 = vand.u32 4294901760, %v15213_v24  ;;  %v15228_v13 = vld [vmem:[#allocation15_spill] sm:$0xff]  ;;  %v15234_v24 = vand.u32 4294901760, %v12131_v28  ;;  %v15241_v28 = vand.u32 4294901760, %v12207_v26  ;;  %v15245_v26 = vand.u32 4294901760, %v12228_v21 }
 0x1cb   : > { %10656 = vmatpush3.bf16.msra.mxu1 %v10653_v23  ;;  %v10563_v23 = vpack.c.bf16 %v12248_v29, %v12256_v42 }
 0x1cc   : > { %10658 = vmatprep.subr.bf16.mxu1 %v10657_v30 }
 0x1cd   : > { %1047 = vmatpush1.msra.mxu0 %v1046_v7 }
 0x1ce   : > { %10550 = vmatprep.subr.bf16.mxu0 %v10549_v11  ;;  %1096 = vmatmul.mubr.f32.vlgmr.msra.gmra.mrb[0].mxu0 %v11950_v35 }
 0x1cf   : > { %10552 = vmatpush1.bf16.msra.mxu0 %v10551_v38  ;;  %1101 = vmatprep.mubr.f32.mxu0 %v15203_v54  ;;  %v15218_v38 = vld [vmem:[#allocation6_spill] sm:$0xff] }
 0x1d0   : > { %10660 = vmatpush3.bf16.msra.mxu1 %v10657_v30  ;;  %10554 = vmatprep.subr.bf16.mxu0 %v10553_v3  ;;  %v15215_v30 = vld [vmem:[#allocation13_spill] sm:$0xff]  ;;  %v15219_v3 = vld [vmem:[#allocation10_spill] sm:$0xff] }
 0x1d1   : > { %9441 = vmatprep.subr.mxu1 %v12254_v20  ;;  %v15216_v7 = vand.u32 4294901760, %v15215_v30 }
 0x1d2   : > { %1103 = vmatmul.mubr.f32.gmra.mrb[2].mxu0 %v11977_v47 }
 0x1d3   : > { %10556 = vmatpush1.bf16.msra.mxu0 %v10555_v41  ;;  %1209 = vmatprep.mubr.f32.mxu0 %v15203_v54  ;;  %v12381_v11 = vpack.c.bf16 %v15216_v7, %v15214_v0  ;;  %v15220_v41 = vld [vmem:[#allocation7_spill] sm:$0xff]  ;;  %v15236_v0 = vand.u32 4294901760, %v12002_v60 }
 0x1d4   : > { %9442 = vmatpush3.msra.mxu1 %v12254_v20  ;;  %10558 = vmatprep.subr.bf16.mxu0 %v10557_v46  ;;  %v12370_v20 = vpack.c.bf16 %v15212_v34, %v15210_v5  ;;  %v15221_v46 = vand.u32 4294901760, %v11990_v53  ;;  %v15227_v53 = vld [vmem:[#allocation14_spill] sm:$0xff]  ;;  %v15230_v5 = vand.u32 4294901760, %v12140_v58  ;;  %v15235_v58 = vand.u32 4294901760, %v11985_v52 }
 0x1d5   : > { %10662 = vmatprep.subr.bf16.mxu1 %v12347_v18  ;;  %9444 = vmatmul.mubr.f32.vlgmr.msra.gmra.mrb[0].mxu1 %v11997_v56  ;;  %v15240_v52 = vand.u32 4294901760, %v12034_v12 }
 0x1d6   : > { %10664 = vmatpush3.bf16.msra.mxu1 %v12347_v18  ;;  %9464 = vmatprep.mubr.f32.mxu1 %v12008_v2  ;;  %v10677_v10 = vpack.c.bf16 %v15222_v49, %v15221_v46  ;;  %v10583_v30 = vpack.c.bf16 %v15236_v0, %v15235_v58 }
 0x1d7   : > { %10666 = vmatprep.subr.bf16.mxu1 %v12357_v37  ;;  %10560 = vmatpush1.bf16.msra.mxu0 %v10559_v40  ;;  %v15224_v40 = vld [vmem:[#allocation5_spill] sm:$0xff] }
 0x1d8   : > { %10562 = vmatprep.subr.bf16.mxu0 %v10561_v32  ;;  %v15229_v32 = vand.u32 4294901760, %v12107_v14 }
 0x1da   : > { %10668 = vmatpush3.bf16.msra.mxu1 %v12357_v37  ;;  %v10685_v19 = vpack.c.bf16 %v15230_v5, %v15229_v32  ;;  %v2156_v5 = vld [vmem:[%s15015_s8] sm:$0xff] }
 0x1db   : > { %10670 = vmatprep.subr.bf16.mxu1 %v12370_v20  ;;  %10564 = vmatpush1.bf16.msra.mxu0 %v10563_v23  ;;  %v15233_v23 = vand.u32 4294901760, %v11982_v51  ;;  %v15239_v51 = vand.u32 4294901760, %v12022_v9  ;;  %v15244_v9 = vand.u32 4294901760, %v12217_v62 }
 0x1dc   : > { %1159 = vmatprep.subr.mxu0 %v12281_v59 }
 0x1dd   : > { %v10581_v14 = vpack.c.bf16 %v15234_v24, %v15233_v23  ;;  %v10587_v60 = vpack.c.bf16 %v15240_v52, %v15239_v51  ;;  %v2270_v23 = vsel %vm828_vm2, %v2156_v5, 0 }
 0x1de   : > { %10672 = vmatpush3.bf16.msra.mxu1 %v12370_v20 }
 0x1df   : > { %10674 = vmatprep.subr.bf16.mxu1 %v12381_v11  ;;  %1162 = vmatpush1.msra.mxu0 %v12302_v6 }
 0x1e0   : > { %10566 = vmatprep.subr.bf16.mxu0 %v15217_v39  ;;  %1212 = vmatmul.mubr.f32.vlgmr.msra.gmra.mrb[0].mxu0 %v11994_v55  ;;  %v15223_v55 = vld [vmem:[#allocation12_spill] sm:$0xff] }
 0x1e1   : > { %10568 = vmatpush1.bf16.msra.mxu0 %v15218_v38  ;;  %1217 = vmatprep.mubr.f32.mxu0 %v15203_v54 }
 0x1e2   : > { %10676 = vmatpush3.bf16.msra.mxu1 %v12381_v11  ;;  %10570 = vmatprep.subr.bf16.mxu0 %v15219_v3 }
 0x1e3   : > { %9462 = vmatprep.subr.mxu1 %v12242_v44 }
 0x1e4   : > { %1220 = vmatmul.mubr.f32.gmra.mrb[2].mxu0 %v11997_v56  ;;  %v15226_v56 = vand.u32 4294901760, %v12089_v50  ;;  %v15232_v50 = vand.u32 4294901760, %v12200_v48  ;;  %v15238_v48 = vand.u32 4294901760, %v12155_v63  ;;  %v15243_v63 = vand.u32 4294901760, %v12222_v45 }
 0x1e5   : > { %10572 = vmatpush1.bf16.msra.mxu0 %v15220_v41  ;;  %1308 = vmatprep.mubr.f32.mxu0 %v15203_v54  ;;  %v15248_v45 = vand.u32 4294901760, %v12248_v29 }
 0x1e6   : > { %9463 = vmatpush3.msra.mxu1 %v12242_v44  ;;  %10574 = vmatprep.subr.bf16.mxu0 %v15223_v55  ;;  %v10681_v1 = vpack.c.bf16 %v15226_v56, %v15225_v27  ;;  %v10689_v34 = vpack.c.bf16 %v15232_v50, %v15231_v17  ;;  %v10585_v7 = vpack.c.bf16 %v15238_v48, %v15237_v57  ;;  %v2263_v27 = vld [vmem:[%s15016_s9] sm:$0xff]  ;;  %v817_v56 = vld [vmem:[%s15014_s7 + $0x8] sm:$0xff]  ;;  %v12599_v48 = vand.u32 4294901760, %v2270_v23 }
 0x1e7   : > { %10678 = vmatprep.subr.bf16.mxu1 %v10677_v10  ;;  %9465 = vmatmul.mubr.f32.vlgmr.msra.gmra.mrb[0].mxu1 %v15224_v40  ;;  %v10591_v12 = vpack.c.bf16 %v15244_v9, %v15243_v63 }
 0x1e8   : > { %10680 = vmatpush3.bf16.msra.mxu1 %v10677_v10  ;;  %9485 = vmatprep.mubr.f32.mxu1 %v11950_v35 }
 0x1e9   : > { %10682 = vmatprep.subr.bf16.mxu1 %v10681_v1  ;;  %10576 = vmatpush1.bf16.msra.mxu0 %v15227_v53 }
 0x1ea   : > { %10578 = vmatprep.subr.bf16.mxu0 %v15228_v13 }
 0x1ec   : > { %10684 = vmatpush3.bf16.msra.mxu1 %v10681_v1 }
 0x1ed   : > { %10686 = vmatprep.subr.bf16.mxu1 %v10685_v19  ;;  %10580 = vmatpush1.bf16.msra.mxu0 %v12236_v43 }
 0x1ee   : > { %1259 = vmatprep.subr.mxu0 %v12251_v16 }
 0x1f0   : > { %10688 = vmatpush3.bf16.msra.mxu1 %v10685_v19 }
 0x1f1   : > { %10690 = vmatprep.subr.bf16.mxu1 %v10689_v34  ;;  %1261 = vmatpush1.msra.mxu0 %v12258_v36 }
 0x1f2   : > { %10582 = vmatprep.subr.bf16.mxu0 %v10581_v14  ;;  %1312 = vmatmul.mubr.f32.vlgmr.msra.gmra.mrb[0].mxu0 %v12008_v2  ;;  %v15242_v2 = vand.u32 4294901760, %v12209_v15  ;;  %v15246_v15 = vand.u32 4294901760, %v12246_v22 }
 0x1f3   : > { %10584 = vmatpush1.bf16.msra.mxu0 %v10583_v30  ;;  %1317 = vmatprep.mubr.f32.mxu0 %v15203_v54 }
 0x1f4   : > { %10692 = vmatpush3.bf16.msra.mxu1 %v10689_v34  ;;  %10586 = vmatprep.subr.bf16.mxu0 %v10585_v7  ;;  %v10589_v4 = vpack.c.bf16 %v15242_v2, %v15241_v28  ;;  %v10593_v46 = vpack.c.bf16 %v15246_v15, %v15245_v26 }
 0x1f5   : > { %9483 = vmatprep.subr.mxu1 %v12267_v25 }
 0x1f6   : > { %1321 = vmatmul.mubr.f32.gmra.mrb[2].mxu0 %v15224_v40  ;;  %v15088_v40 = vmov 0.0|0.0  }
 0x1f7   : > { %10588 = vmatpush1.bf16.msra.mxu0 %v10587_v60  ;;  %1445 = vmatprep.mubr.f32.mxu0 %v15203_v54 }
 0x1f8   : > { %9484 = vmatpush3.msra.mxu1 %v12267_v25  ;;  %10590 = vmatprep.subr.bf16.mxu0 %v10589_v4  ;;  %v15247_v25 = vand.u32 4294901760, %v12256_v42  ;;  %v12607_v4 = vsub.f32 %v2270_v23, %v12599_v48 }
 0x1f9   : > { %10694 = vmatprep.subr.bf16.mxu1 %v12347_v18  ;;  %9486 = vmatmul.mubr.f32.vlgmr.msra.gmra.mrb[0].mxu1 %v11977_v47 }
 0x1fa   : > { %10696 = vmatpush3.bf16.msra.mxu1 %v12347_v18  ;;  %9506 = vmatprep.mubr.f32.mxu1 %v11950_v35  ;;  %v10595_v49 = vpack.c.bf16 %v15248_v45, %v15247_v25 }
 0x1fb   : > { %10698 = vmatprep.subr.bf16.mxu1 %v12357_v37  ;;  %10592 = vmatpush1.bf16.msra.mxu0 %v10591_v12 }
 0x1fc   : > { %10594 = vmatprep.subr.bf16.mxu0 %v10593_v46 }
 0x1fe   : > { %10700 = vmatpush3.bf16.msra.mxu1 %v12357_v37 }
 0x1ff   : > { %10702 = vmatprep.subr.bf16.mxu1 %v12370_v20  ;;  %10596 = vmatpush1.bf16.msra.mxu0 %v10595_v49 }
 0x200   : > { %1394 = vmatprep.subr.mxu0 %v1038_v61  ;;  %v15250_v61 = vld [vmem:[#allocation3_spill] sm:$0xff] }
 0x202   : > { %10704 = vmatpush3.bf16.msra.mxu1 %v12370_v20 }
 0x203   : > { %10706 = vmatprep.subr.bf16.mxu1 %v12381_v11  ;;  %1398 = vmatpush1.msra.mxu0 %v1044_v8 }
 0x204   : > { %10598 = vmatprep.subr.bf16.mxu0 %v15217_v39  ;;  %1447 = vmatmul.mubr.f32.vlgmr.msra.gmra.mrb[0].mxu0 %v11950_v35 }
 0x205   : > { %10600 = vmatpush1.bf16.msra.mxu0 %v15218_v38  ;;  %1452 = vmatprep.mubr.f32.mxu0 %v15203_v54 }
 0x206   : > { %10708 = vmatpush3.bf16.msra.mxu1 %v12381_v11  ;;  %10602 = vmatprep.subr.bf16.mxu0 %v15219_v3 }
 0x207   : > { %9504 = vmatprep.subr.mxu1 %v12242_v44 }
 0x208   : > { %1454 = vmatmul.mubr.f32.gmra.mrb[2].mxu0 %v11977_v47 }
 0x209   : > { %10604 = vmatpush1.bf16.msra.mxu0 %v15220_v41  ;;  %1542 = vmatprep.mubr.f32.mxu0 %v15203_v54 }
 0x20a   : > { %9505 = vmatpush3.msra.mxu1 %v12242_v44  ;;  %10606 = vmatprep.subr.bf16.mxu0 %v15223_v55 }
 0x20b   : > { %9507 = vmatmul.mubr.f32.vlgmr.msra.gmra.mrb[0].mxu1 %v11977_v47  ;;  %10805 = vmatprep.subr.bf16.mxu1 %v15088_v40 }
 0x20c   : > { %9527 = vmatprep.mubr.msk.f32.mxu1 %vm11742_vm11, %v15203_v54 }
 0x20d   : > { %10608 = vmatpush1.bf16.msra.mxu0 %v15227_v53 }
 0x20e   : > { %10610 = vmatprep.subr.bf16.mxu0 %v15228_v13 }
 0x211   : > { %10612 = vmatpush1.bf16.msra.mxu0 %v12236_v43 }
 0x212   : > { %1493 = vmatprep.subr.mxu0 %v12251_v16  ;;  %v15249_v16 = vld [vmem:[#allocation2_spill] sm:$0xff] }
 0x215   : > { %1495 = vmatpush1.msra.mxu0 %v12258_v36 }
 0x216   : > { %1544 = vmatmul.mubr.f32.vlgmr.msra.gmra.mrb[0].mxu0 %v11950_v35  ;;  %10614 = vmatprep.subr.bf16.mxu0 %v12347_v18 }
 0x217   : > { %10616 = vmatpush3.bf16.msra.mxu0 %v12347_v18  ;;  %1549 = vmatprep.mubr.f32.mxu0 %v15203_v54 }
 0x218   : > { %10618 = vmatprep.subr.bf16.mxu0 %v12357_v37 }
 0x21a   : > { %1551 = vmatmul.mubr.f32.gmra.mrb[2].mxu0 %v11977_v47 }
 0x21b   : > { %10620 = vmatpush3.bf16.msra.mxu0 %v12357_v37  ;;  %9401 = vmatprep.mubr.f32.mxu0 %v12062_v31  ;;  %v15251_v37 = vld [vmem:[#allocation4_spill] sm:$0xff] }
 0x21c   : > { %10622 = vmatprep.subr.bf16.mxu0 %v12370_v20 }
 0x21f   : > { %10624 = vmatpush3.bf16.msra.mxu0 %v12370_v20 }
 0x220   : > { %10626 = vmatprep.subr.bf16.mxu0 %v12381_v11 }
 0x223   : > { %10628 = vmatpush3.bf16.msra.mxu0 %v12381_v11 }
 0x224   : > { %9399 = vmatprep.subr.mxu0 %v12242_v44  ;;  %v821_v22 = vpop.permute.xlu1 %820 }
 0x227   : > { %9400 = vmatpush3.msra.mxu0 %v12242_v44 }
 0x228   : > { %9402 = vmatmul.mubr.f32.vlgmr.msra.gmra.mrb[4].mxu0 %v12064_v33 }
 0x229   : > { %2354 = vmatprep.mubr.f32.mxu0 %v15203_v54 }
 0x2de   : > { %v12506_v35 = vpop.f32.mrb[0].mxu1 }
 0x2df   : > { %v2140_v47 = vpop.f32.mrb[1].mxu1 }
 0x2e9   : > { %v1545_v29 = vpop.f32.mrb[0].mxu0 }
 0x2ea   : > { %v1547_v31 = vpop.f32.mrb[1].mxu0  ;;  %v11573_v62 = vadd.f32 %v1545_v29, %v821_v22 }
 0x2eb   : > { %v11574_v21 = vadd.f32 %v1547_v31, %v821_v22 }
 0x2ec   : > { %v2150_v42 = vmax.f32 %v11573_v62, 0.0 }
 0x2ed   : > { %v2151_v43 = vmax.f32 %v11574_v21, 0.0 }
 0x2ee   : > { %v2153_v44 = vmul.f32 %v2150_v42, %v15250_v61 }
 0x2ef   : > { %v2154_v36 = vmul.f32 %v2151_v43, %v15249_v16 }
 0x2f1   : > { %2162 = vrot.lane.b32.xlu0 %v2154_v36, %s11731_s27 }
 0x2f5   : > { %2160 = vrot.lane.b32.xlu0 %v2153_v44, %s11731_s27 }
 0x2fb   : > { %v12512_v33 = vpop.f32.mrb[4].mxu0 }
 0x2fc   : > { %v1637_v59 = vpop.f32.mrb[5].mxu0 }
 0x2fd   : > { %v1638_v6 = vadd.f32 %v1637_v59, %v821_v22 }
 0x2ff   : > { %v11582_v8 = vadd.f32 %v2140_v47, %v1638_v6  ;;  %v12620_v47 = vand.u32 4294901760, %v12607_v4 }
 0x301   : > { %v2152_v18 = vmax.f32 %v11582_v8, 0.0  ;;  %15252 = vst [vmem:[#allocation8_spill] sm:$0xff] %v12620_v47  ;;  %v2358_v8 = vsub.f32 %v12607_v4, %v12620_v47 }
 0x303   : > { %v2155_v20 = vmul.f32 %v2152_v18, %v15251_v37 }
 0x305   : > { %2164 = vrot.lane.b32.xlu1 %v2155_v20, %s11731_s27  ;;  %s15166_s27 = smov 116  }
 0x363   : > { %v2163_v11 = vpop.permute.xlu0 %2162 }
 0x367   : > { %v2161_v39 = vpop.permute.xlu0 %2160 }
 0x368   : > { %v12517_v38 = vsel %vm709_vm0, 0.0, %v2161_v39  ;;  %v12528_v3 = vsel %vm709_vm0, %v2161_v39, %v2163_v11 }
 0x369   : > { %2186 = vrot.lane.b32.xlu0 %v12517_v38, %s15120_s3  ;;  %2175 = vrot.lane.b32.xlu1 %v12517_v38, %s11733_s28  ;;  %v2274_v50 = vand.u32 4294901760, %v12517_v38  ;;  %v2272_v34 = vand.u32 4294901760, %v12528_v3 }
 0x36b   : > { %v12592_v0 = vsub.f32 %v12517_v38, %v2274_v50  ;;  %v12597_v57 = vsub.f32 %v12528_v3, %v2272_v34 }
 0x36d   : > { %2208 = vrot.lane.b32.xlu0 %v12517_v38, %s11735_s0  ;;  %2197 = vrot.lane.b32.xlu1 %v12517_v38, %s11734_s29  ;;  %v15084_v63 = vand.u32 4294901760, %v12597_v57  ;;  %v15083_v9 = vand.u32 4294901760, %v12592_v0 }
 0x36f   : > { %v12625_v22 = vsub.f32 %v12597_v57, %v15084_v63  ;;  %v12630_v29 = vsub.f32 %v12592_v0, %v15083_v9 }
 0x371   : > { %2219 = vrot.lane.b32.xlu1 %v12517_v38, %s15118_s4  ;;  %2188 = vrot.lane.b32.xlu0 %v12528_v3, %s15120_s3 }
 0x375   : > { %2199 = vrot.lane.b32.xlu0 %v12528_v3, %s11734_s29  ;;  %2177 = vrot.lane.b32.xlu1 %v12528_v3, %s11733_s28 }
 0x377   : > { %v2165_v41 = vpop.permute.xlu1 %2164 }
 0x378   : > { %v2167_v10 = vsel %vm709_vm0, %v2163_v11, %v2165_v41  ;;  %vm6219_vm0 = vcmask 818176  }
 0x379   : > { %v12540_v55 = vsel %vm716_vm1, %v2167_v10, 0.0  ;;  %2210 = vrot.lane.b32.xlu0 %v12528_v3, %s11735_s0  ;;  %vm6847_vm1 = vcmask 56320  }
 0x37a   : > { %2190 = vrot.lane.b32.xlu1 %v12540_v55, %s15120_s3  ;;  %v2946_v14 = vand.u32 4294901760, %v12540_v55  ;;  %s11750_s3 = smov 121  }
 0x37c   : > { %v12603_v60 = vsub.f32 %v12540_v55, %v2946_v14 }
 0x37d   : > { %2221 = vrot.lane.b32.xlu0 %v12528_v3, %s15118_s4 }
 0x37e   : > { %2201 = vrot.lane.b32.xlu1 %v12540_v55, %s11734_s29  ;;  %v15085_v25 = vand.u32 4294901760, %v12603_v60 }
 0x380   : > { %v12640_v36 = vsub.f32 %v12603_v60, %v15085_v25 }
 0x381   : > { %2179 = vrot.lane.b32.xlu0 %v12540_v55, %s11733_s28 }
 0x382   : > { %2212 = vrot.lane.b32.xlu1 %v12540_v55, %s11735_s0 }
 0x385   : > { %2232 = vrot.lane.b32.xlu0 %v12528_v3, %s11737_s30 }
 0x386   : > { %2223 = vrot.lane.b32.xlu1 %v12540_v55, %s15118_s4  ;;  %s11743_s4 = smov 11  }
 0x389   : > { %2243 = vrot.lane.b32.xlu0 %v12528_v3, %s11738_s23 }
 0x38a   : > { %2234 = vrot.lane.b32.xlu1 %v12540_v55, %s11737_s30 }
 0x38d   : > { %2230 = vrot.lane.b32.xlu0 %v12517_v38, %s11737_s30  ;;  %s11748_s30 = smov 107  }
 0x38e   : > { %2245 = vrot.lane.b32.xlu1 %v12540_v55, %s11738_s23 }
 0x391   : > { %2254 = vrot.lane.b32.xlu0 %v12528_v3, %s11740_s1 }
 0x392   : > { %2241 = vrot.lane.b32.xlu1 %v12517_v38, %s11738_s23  ;;  %s15387_s23 = smov 126  }
 0x395   : > { %2252 = vrot.lane.b32.xlu0 %v12517_v38, %s11740_s1 }
 0x396   : > { %2256 = vrot.lane.b32.xlu1 %v12540_v55, %s11740_s1  ;;  %s11745_s1 = smov 118  }
 0x399   : > { %2266 = vperm.xlu0 %11720, %v2263_v27  }
 0x39a   : > { %825 = vperm.xlu1 %11721, %v817_v56  }
 0x3db   : > { %v2187_v1 = vpop.permute.xlu0 %2186  ;;  %v2176_v53 = vpop.permute.xlu1 %2175 }
 0x3df   : > { %v2209_v13 = vpop.permute.xlu0 %2208  ;;  %v2198_v32 = vpop.permute.xlu1 %2197 }
 0x3e3   : > { %v2220_v19 = vpop.permute.xlu1 %2219  ;;  %v2189_v17 = vpop.permute.xlu0 %2188 }
 0x3e4   : > { %v2192_v24 = vsel %vm738_vm4, %v2187_v1, %v2189_v17 }
 0x3e5   : > { %v2282_v7 = vand.u32 4294901760, %v2192_v24 }
 0x3e7   : > { %v2200_v58 = vpop.permute.xlu0 %2199  ;;  %v2178_v30 = vpop.permute.xlu1 %2177  ;;  %v12611_v12 = vsub.f32 %v2192_v24, %v2282_v7 }
 0x3e8   : > { %v2203_v51 = vsel %vm750_vm5, %v2198_v32, %v2200_v58  ;;  %v2181_v28 = vsel %vm726_vm3, %v2176_v53, %v2178_v30 }
 0x3e9   : > { %v2286_v52 = vand.u32 4294901760, %v2203_v51  ;;  %v2278_v46 = vand.u32 4294901760, %v2181_v28  ;;  %v15081_v31 = vand.u32 4294901760, %v12611_v12 }
 0x3eb   : > { %v2211_v2 = vpop.permute.xlu0 %2210  ;;  %v12613_v15 = vsub.f32 %v2203_v51, %v2286_v52  ;;  %v12634_v43 = vsub.f32 %v2181_v28, %v2278_v46  ;;  %v12650_v11 = vsub.f32 %v12611_v12, %v15081_v31  ;;  %v12669_v23 = vpack.c.bf16 %v2278_v46, %v2274_v50 }
 0x3ec   : > { %v2191_v26 = vpop.permute.xlu1 %2190  ;;  %v12617_v45 = vsel %vm762_vm7, %v2209_v13, %v2211_v2  ;;  %v12673_v51 = vand.u32 4294901760, %v2358_v8 }
 0x3ed   : > { %v15080_v21 = vand.u32 4294901760, %v12613_v15  ;;  %v2290_v44 = vand.u32 4294901760, %v12617_v45  ;;  %v2952_v59 = vand.u32 4294901760, %v2191_v26  ;;  %v15082_v27 = vand.u32 4294901760, %v12634_v43  ;;  %15254 = vst [vmem:[#allocation13_spill] sm:$0xff] %v12669_v23 }
 0x3ee   : > { %v2193_v56 = vsel %vm738_vm4, %v2189_v17, %v2191_v26  ;;  %vm8561_vm4 = vcmask 31744  }
 0x3ef   : > { %v2222_v49 = vpop.permute.xlu0 %2221  ;;  %v12656_v55 = vsub.f32 %v12613_v15, %v15080_v21  ;;  %v12662_v53 = vsub.f32 %v12617_v45, %v2290_v44  ;;  %v12664_v13 = vsub.f32 %v2191_v26, %v2952_v59  ;;  %v2280_v50 = vand.u32 4294901760, %v2193_v56 }
 0x3f0   : > { %v2202_v62 = vpop.permute.xlu1 %2201  ;;  %v2225_v42 = vsel %vm774_vm6, %v2220_v19, %v2222_v49  ;;  %v12667_v19 = vpack.c.bf16 %v2286_v52, %v2282_v7 }
 0x3f1   : > { %v2294_v39 = vand.u32 4294901760, %v2225_v42  ;;  %v2955_v38 = vand.u32 4294901760, %v2202_v62  ;;  %v2204_v32 = vsel %vm750_vm5, %v2200_v58, %v2202_v62  ;;  %v12685_v58 = vsub.f32 %v12634_v43, %v15082_v27 }
 0x3f2   : > { %15253 = vst [vmem:[#allocation11_spill] sm:$0xff] %v12667_v19  ;;  %v2284_v7 = vand.u32 4294901760, %v2204_v32  ;;  %v15086_v8 = vand.u32 4294901760, %v12662_v53 }
 0x3f3   : > { %v2180_v6 = vpop.permute.xlu0 %2179  ;;  %v12676_v28 = vsub.f32 %v2225_v42, %v2294_v39  ;;  %v12678_v45 = vsub.f32 %v2202_v62, %v2955_v38  ;;  %v15087_v42 = vand.u32 4294901760, %v12664_v13 }
 0x3f4   : > { %v2182_v41 = vsel %vm726_vm3, %v2178_v30, %v2180_v6  ;;  %v2213_v10 = vpop.permute.xlu1 %2212  ;;  %v2949_v5 = vand.u32 4294901760, %v2180_v6  ;;  %v12709_v3 = vpack.c.bf16 %v2284_v7, %v2280_v50 }
 0x3f5   : > { %v2276_v24 = vand.u32 4294901760, %v2182_v41  ;;  %v2215_v62 = vsel %vm762_vm7, %v2211_v2, %v2213_v10  ;;  %v15090_v63 = vand.u32 4294901760, %v12676_v28  ;;  %v15091_v25 = vand.u32 4294901760, %v12678_v45 }
 0x3f6   : > { %v12680_v26 = vpack.c.bf16 %v2949_v5, %v2946_v14  ;;  %v12693_v14 = vpack.c.bf16 %v2955_v38, %v2952_v59  ;;  %v12695_v31 = vsub.f32 %v2180_v6, %v2949_v5  ;;  %v12706_v59 = vsub.f32 %v2193_v56, %v2280_v50  ;;  %15258 = vst [vmem:[#allocation7_spill] sm:$0xff] %v12709_v3 }
 0x3f7   : > { %v12671_v30 = vpop.permute.xlu0 %2232  ;;  %v12699_v9 = vpack.c.bf16 %v2276_v24, %v2272_v34  ;;  %v12704_v46 = vsub.f32 %v2182_v41, %v2276_v24  ;;  %v2288_v6 = vand.u32 4294901760, %v2215_v62  ;;  %v2958_v38 = vand.u32 4294901760, %v2213_v10 }
 0x3f8   : > { %15255 = vst [vmem:[#allocation9_spill] sm:$0xff] %v12680_v26  ;;  %v2224_v21 = vpop.permute.xlu1 %2223  ;;  %10807 = vmatpush3.bf16.msra.mxu1 %v12680_v26  ;;  %15256 = vst [vmem:[#allocation6_spill] sm:$0xff] %v12693_v14  ;;  %v12715_v5 = vsub.f32 %v12662_v53, %v15086_v8  ;;  %v12720_v41 = vsub.f32 %v12664_v13, %v15087_v42  ;;  %v12722_v56 = vpack.c.bf16 %v2294_v39, %v2290_v44 }
 0x3f9   : > { %v2226_v52 = vsel %vm774_vm6, %v2222_v49, %v2224_v21  ;;  %15257 = vst [vmem:[#allocation10_spill] sm:$0xff] %v12699_v9  ;;  %10808 = vmatprep.subr.bf16.mxu1 %v15088_v40  ;;  %v2961_v2 = vand.u32 4294901760, %v2224_v21  ;;  %10710 = vmatprep.subr.bf16.mxu0 %v12699_v9  ;;  %v12726_v24 = vsub.f32 %v2204_v32, %v2284_v7  ;;  %v15262_v61 = vand.u32 4294901760, %v12695_v31 }
 0x3fa   : > { %v2292_v27 = vand.u32 4294901760, %v2226_v52  ;;  %15259 = vst [vmem:[#allocation12_spill] sm:$0xff] %v12722_v56  ;;  %10712 = vmatpush1.bf16.msra.mxu0 %v12669_v23  ;;  %v12738_v44 = vsub.f32 %v12676_v28, %v15090_v63  ;;  %v12743_v39 = vsub.f32 %v12678_v45, %v15091_v25  ;;  %v12748_v18 = vsub.f32 %v2213_v10, %v2958_v38 }
 0x3fb   : > { %v2244_v49 = vpop.permute.xlu0 %2243  ;;  %10714 = vmatprep.subr.bf16.mxu0 %v12709_v3  ;;  %v12745_v32 = vpack.c.bf16 %v2961_v2, %v2958_v38  ;;  %v12752_v63 = vsub.f32 %v2224_v21, %v2961_v2  ;;  %v3040_v42 = vsub.f32 %v12695_v31, %v15262_v61  ;;  %v15266_v61 = vand.u32 4294901760, %v12704_v46 }
 0x3fc   : > { %v2235_v17 = vpop.permute.xlu1 %2234  ;;  %10810 = vmatpush3.bf16.msra.mxu1 %v12693_v14  ;;  %v12732_v20 = vpack.c.bf16 %v2292_v27, %v2288_v6  ;;  %v12759_v10 = vsub.f32 %v2226_v52, %v2292_v27  ;;  %v12774_v52 = vsub.f32 %v2215_v62, %v2288_v6  ;;  %v15112_v23 = vand.u32 4294901760, %v12726_v24 }
 0x3fd   : > { %v2237_v8 = vsel %vm786_vm8, %v12671_v30, %v2235_v17  ;;  %10811 = vmatprep.subr.bf16.mxu1 %v15088_v40  ;;  %15261 = vst [vmem:[#allocation14_spill] sm:$0xff] %v12745_v32  ;;  %v2964_v1 = vand.u32 4294901760, %v2235_v17  ;;  %v2381_v27 = vsub.f32 %v12704_v46, %v15266_v61  ;;  %v3041_v9 = vand.u32 4294901760, %v3040_v42 }
 0x3fe   : > { %15260 = vst [vmem:[#allocation5_spill] sm:$0xff] %v12732_v20  ;;  %v2296_v37 = vand.u32 4294901760, %v2237_v8  ;;  %10716 = vmatpush1.bf16.msra.mxu0 %v12667_v19 }
 0x3ff   : > { %v2231_v34 = vpop.permute.xlu0 %2230  ;;  %10718 = vmatprep.subr.bf16.mxu0 %v12732_v20  ;;  %v12785_v62 = vsub.f32 %v2235_v17, %v2964_v1  ;;  %v2382_v20 = vand.u32 4294901760, %v2381_v27 }
 0x400   : > { %v2246_v7 = vpop.permute.xlu1 %2245  ;;  %10813 = vmatpush3.bf16.msra.mxu1 %v12745_v32  ;;  %v2236_v38 = vsel %vm786_vm8, %v2231_v34, %v12671_v30  ;;  %v15264_v32 = vmov 0.0|0.0   ;;  %v12783_v61 = vsub.f32 %v2237_v8, %v2296_v37  ;;  %v15267_v8 = vand.u32 4294901760, %v12706_v59 }
 0x401   : > { %v2248_v40 = vsel %vm798_vm9, %v2244_v49, %v2246_v7  ;;  %v2967_v50 = vand.u32 4294901760, %v2246_v7  ;;  %10814 = vmatprep.subr.bf16.mxu1 %v15264_v32  ;;  %v2298_v47 = vand.u32 4294901760, %v2236_v38 }
 0x402   : > { %v2300_v25 = vand.u32 4294901760, %v2248_v40  ;;  %10720 = vmatpush1.bf16.msra.mxu0 %v12722_v56  ;;  %v2393_v42 = vsub.f32 %v12706_v59, %v15267_v8 }
 0x403   : > { %v12764_v16 = vpack.c.bf16 %v2967_v50, %v2964_v1  ;;  %v2255_v21 = vpop.permute.xlu0 %2254  ;;  %v12790_v6 = vsub.f32 %v2246_v7, %v2967_v50  ;;  %v15268_v50 = vand.u32 4294901760, %v12752_v63 }
 0x404   : > { %v2242_v19 = vpop.permute.xlu1 %2241  ;;  %v12769_v14 = vpack.c.bf16 %v2300_v25, %v2296_v37  ;;  %v2405_v37 = vsub.f32 %v12726_v24, %v15112_v23 }
 0x405   : > { %15263 = vst [vmem:[#allocation15_spill] sm:$0xff] %v12764_v16  ;;  %v2247_v34 = vsel %vm798_vm9, %v2242_v19, %v2244_v49  ;;  %10816 = vmatpush3.bf16.msra.mxu1 %v12764_v16  ;;  %v3068_v7 = vsub.f32 %v12752_v63, %v15268_v50  ;;  %v15270_v49 = vand.u32 4294901760, %v12759_v10 }
 0x406   : > { %15265 = vst [vmem:[#allocation16_spill] sm:$0xff] %v12769_v14  ;;  %v2302_v3 = vand.u32 4294901760, %v2247_v34  ;;  %10722 = vmatprep.subr.bf16.mxu0 %v12769_v14  ;;  %9525 = vmatprep.subr.mxu1 %v15203_v54  ;;  %v2406_v8 = vand.u32 4294901760, %v2405_v37 }
 0x407   : > { %v2253_v19 = vpop.permute.xlu0 %2252  ;;  %v2429_v56 = vsub.f32 %v12759_v10, %v15270_v49  ;;  %v15273_v49 = vand.u32 4294901760, %v12748_v18 }
 0x408   : > { %v12792_v30 = vpack.c.bf16 %v2302_v3, %v2298_v47  ;;  %v2257_v2 = vpop.permute.xlu1 %2256  ;;  %v2258_v1 = vsel %vm810_vm10, %v2253_v19, %v2255_v21  ;;  %v12806_v16 = vsub.f32 %v2247_v34, %v2302_v3  ;;  %v12813_v19 = vsub.f32 %v2248_v40, %v2300_v25 }
 0x409   : > { %v2259_v17 = vsel %vm810_vm10, %v2255_v21, %v2257_v2  ;;  %v12810_v14 = vand.u32 4294901760, %v2257_v2  ;;  %v15269_v21 = vand.u32 4294901760, %v12640_v36  ;;  %v12821_v3 = vsub.f32 %v2236_v38, %v2298_v47 }
 0x40a   : > { %v12808_v27 = vand.u32 4294901760, %v2259_v17  ;;  %10724 = vmatpush1.bf16.msra.mxu0 %v12792_v30  ;;  %v3081_v34 = vand.u32 4294901760, %v12790_v6  ;;  %v12824_v26 = vand.u32 4294901760, %v2258_v1  ;;  %v15271_v40 = vand.u32 4294901760, %v12625_v22 }
 0x40b   : > { %v10818_v23 = vpack.c.bf16 %v3041_v9, %v15269_v21  ;;  %9526 = vmatpush3.msra.mxu1 %v12810_v14  ;;  %v2394_v25 = vand.u32 4294901760, %v2393_v42  ;;  %v15272_v36 = vand.u32 4294901760, %v12774_v52  ;;  %v3061_v37 = vsub.f32 %v12748_v18, %v15273_v49 }
 0x40c   : > { %2305 = vmatprep.subr.mxu0 %v12808_v27  ;;  %10817 = vmatprep.subr.bf16.mxu1 %v15264_v32  ;;  %v10725_v9 = vpack.c.bf16 %v2382_v20, %v15271_v40  ;;  %v3069_v21 = vand.u32 4294901760, %v3068_v7  ;;  %v15117_v50 = vand.u32 4294901760, %v12806_v16  ;;  %v15274_v22 = vand.u32 4294901760, %v12630_v29 }
 0x40d   : > { %9528 = vmatmul.mubr.f32.vlgmr.msra.gmra.mrb[2].mxu1 %v12673_v51  ;;  %v2417_v47 = vsub.f32 %v12774_v52, %v15272_v36  ;;  %v15275_v20 = vand.u32 4294901760, %v12685_v58  ;;  %v12846_v40 = vsub.f32 %v2259_v17, %v12808_v27  ;;  %v10729_v36 = vpack.c.bf16 %v2406_v8, %v2394_v25 }
 0x40e   : > { %10819 = vmatpush3.bf16.msra.mxu1 %v10818_v23  ;;  %2307 = vmatpush1.msra.mxu0 %v12824_v26  ;;  %v2430_v38 = vand.u32 4294901760, %v2429_v56  ;;  %v2452_v7 = vand.u32 4294901760, %v12813_v19  ;;  %v2446_v49 = vand.u32 4294901760, %v12821_v3  ;;  %v3082_v23 = vsub.f32 %v12790_v6, %v3081_v34 }
 0x40f   : > { %v10727_v42 = vpack.c.bf16 %v15275_v20, %v15274_v22  ;;  %10726 = vmatprep.subr.bf16.mxu0 %v10725_v9  ;;  %2360 = vmatmul.mubr.f32.vlgmr.msra.gmra.mrb[2].mxu0 %v12673_v51  ;;  %v12855_v29 = vsub.f32 %v2257_v2, %v12810_v14  ;;  %v15276_v58 = vand.u32 4294901760, %v12720_v41  ;;  %v15277_v51 = vand.u32 4294901760, %v12743_v39 }
 0x410   : > { %10820 = vmatprep.subr.bf16.mxu1 %v15264_v32  ;;  %v15278_v56 = vand.u32 4294901760, %v12785_v62  ;;  %v2418_v9 = vand.u32 4294901760, %v2417_v47  ;;  %v15279_v25 = vand.u32 4294901760, %v12783_v61  ;;  %v2453_v2 = vsub.f32 %v12813_v19, %v2452_v7  ;;  %9548 = vmatprep.mubr.msk.f32.mxu1 %vm11742_vm11, %v15203_v54 }
 0x411   : > { %10728 = vmatpush1.bf16.msra.mxu0 %v10727_v42  ;;  %v10821_v17 = vpack.c.bf16 %v15277_v51, %v15276_v58  ;;  %v3062_v41 = vand.u32 4294901760, %v3061_v37  ;;  %v2459_v39 = vsub.f32 %v12806_v16, %v15117_v50  ;;  %v12877_v20 = vsub.f32 %v2258_v1, %v12824_v26  ;;  %2520 = vmatprep.mubr.f32.mxu0 %v15203_v54 }
 0x412   : > { %v3075_v8 = vsub.f32 %v12785_v62, %v15278_v56  ;;  %10730 = vmatprep.subr.bf16.mxu0 %v10729_v36  ;;  %v2441_v22 = vsub.f32 %v12783_v61, %v15279_v25  ;;  %v15280_v47 = vand.u32 4294901760, %v12650_v11  ;;  %v15281_v42 = vand.u32 4294901760, %v12656_v55 }
 0x413   : > { %10822 = vmatpush3.bf16.msra.mxu1 %v10821_v17  ;;  %v2424_v58 = vand.u32 4294901760, %v12715_v5  ;;  %v10733_v37 = vpack.c.bf16 %v2430_v38, %v2418_v9  ;;  %v2454_v51 = vand.u32 4294901760, %v2453_v2  ;;  %v2464_v56 = vand.u32 4294901760, %v12846_v40 }
 0x414   : > { %v10731_v36 = vpack.c.bf16 %v15281_v42, %v15280_v47  ;;  %10823 = vmatprep.subr.bf16.mxu1 %v15264_v32  ;;  %v2447_v1 = vsub.f32 %v12821_v3, %v2446_v49  ;;  %v3083_v17 = vand.u32 4294901760, %v3082_v23  ;;  %v3088_v11 = vand.u32 4294901760, %v12855_v29 }
 0x415   : > { %v10824_v55 = vpack.c.bf16 %v3069_v21, %v3062_v41  ;;  %v2442_v25 = vand.u32 4294901760, %v2441_v22  ;;  %v3076_v47 = vand.u32 4294901760, %v3075_v8  ;;  %v2460_v42 = vand.u32 4294901760, %v2459_v39 }
 0x416   : > { %10732 = vmatpush1.bf16.msra.mxu0 %v10731_v36  ;;  %v2470_v5 = vand.u32 4294901760, %v12877_v20  ;;  %v15282_v38 = vand.u32 4294901760, %v12738_v44  ;;  %v2465_v23 = vsub.f32 %v12846_v40, %v2464_v56  ;;  %v2448_v50 = vand.u32 4294901760, %v2447_v1 }
 0x417   : > { %10734 = vmatprep.subr.bf16.mxu0 %v10733_v37  ;;  %10825 = vmatpush3.bf16.msra.mxu1 %v10824_v55  ;;  %v10737_v2 = vpack.c.bf16 %v2454_v51, %v2442_v25  ;;  %v10827_v21 = vpack.c.bf16 %v3083_v17, %v3076_v47  ;;  %v3089_v8 = vsub.f32 %v12855_v29, %v3088_v11 }
 0x418   : > { %v10735_v9 = vpack.c.bf16 %v15282_v38, %v2424_v58  ;;  %10826 = vmatprep.subr.bf16.mxu1 %v15264_v32  ;;  %v2471_v44 = vsub.f32 %v12877_v20, %v2470_v5  ;;  %v10739_v39 = vpack.c.bf16 %v2460_v42, %v2448_v50  ;;  %v2466_v36 = vand.u32 4294901760, %v2465_v23  ;;  %v15283_v23 = vld [vmem:[#allocation9_spill] sm:$0xff] }
 0x419   : > { %v12901_v22 = vpop.permute.xlu1 %825  ;;  %v3090_v37 = vand.u32 4294901760, %v3089_v8  ;;  %v10830_v51 = vpack.c.bf16 %v12695_v31, %v12603_v60  ;;  %v10743_v50 = vpack.c.bf16 %v12634_v43, %v12592_v0  ;;  %v10833_v17 = vpack.c.bf16 %v12678_v45, %v12664_v13  ;;  %v15285_v8 = vld [vmem:[#allocation13_spill] sm:$0xff] }
 0x41a   : > { %10736 = vmatpush1.bf16.msra.mxu0 %v10735_v9  ;;  %v1648_v41 = vadd.f32 %v12512_v33, %v12901_v22  ;;  %v2472_v1 = vand.u32 4294901760, %v2471_v44  ;;  %v10741_v33 = vpack.c.bf16 %v12704_v46, %v12597_v57  ;;  %v10747_v55 = vpack.c.bf16 %v12613_v15, %v12611_v12  ;;  %v15286_v44 = vld [vmem:[#allocation7_spill] sm:$0xff] }
 0x41b   : > { %10738 = vmatprep.subr.bf16.mxu0 %v10737_v2  ;;  %10828 = vmatpush3.bf16.msra.mxu1 %v10827_v21  ;;  %v10749_v25 = vpack.c.bf16 %v12759_v10, %v12774_v52  ;;  %v10836_v47 = vpack.c.bf16 %v12752_v63, %v12748_v18  ;;  %v10751_v42 = vpack.c.bf16 %v12676_v28, %v12662_v53  ;;  %v15284_v21 = vld [vmem:[#allocation10_spill] sm:$0xff] }
 0x41c   : > { %9546 = vmatprep.subr.mxu1 %v15203_v54  ;;  %v12910_v58 = vadd.f32 %v12506_v35, %v1648_v41  ;;  %v10745_v35 = vpack.c.bf16 %v12726_v24, %v12706_v59  ;;  %v10753_v38 = vpack.c.bf16 %v12813_v19, %v12783_v61  ;;  %v10839_v9 = vpack.c.bf16 %v12790_v6, %v12785_v62  ;;  %v15287_v41 = vld [vmem:[#allocation6_spill] sm:$0xff] }
 0x41d   : > { %v10755_v2 = vpack.c.bf16 %v12806_v16, %v12821_v3 }
 0x41e   : > { %10740 = vmatpush1.bf16.msra.mxu0 %v10739_v39  ;;  %v15288_v39 = vld [vmem:[#allocation11_spill] sm:$0xff] }
 0x41f   : > { %2467 = vmatprep.subr.mxu0 %v2466_v36  ;;  %9547 = vmatpush3.msra.mxu1 %v3090_v37  ;;  %v15289_v36 = vld [vmem:[#allocation5_spill] sm:$0xff]  ;;  %v15291_v37 = vld [vmem:[#allocation12_spill] sm:$0xff] }
 0x420   : > { %10829 = vmatprep.subr.bf16.mxu1 %v15264_v32  ;;  %9549 = vmatmul.mubr.f32.vlgmr.msra.gmra.mrb[2].mxu1 %v12599_v48 }
 0x421   : > { %10831 = vmatpush3.bf16.msra.mxu1 %v10830_v51  ;;  %9569 = vmatprep.mubr.msk.f32.mxu1 %vm11742_vm11, %v15203_v54  ;;  %v15292_v51 = vld [vmem:[#allocation16_spill] sm:$0xff] }
 0x422   : > { %2473 = vmatpush1.msra.mxu0 %v2472_v1  ;;  %10832 = vmatprep.subr.bf16.mxu1 %v15264_v32  ;;  %v15293_v1 = vld [vmem:[#allocation15_spill] sm:$0xff] }
 0x423   : > { %10742 = vmatprep.subr.bf16.mxu0 %v10741_v33  ;;  %2522 = vmatmul.mubr.f32.vlgmr.msra.gmra.mrb[2].mxu0 %v12599_v48  ;;  %v15294_v33 = vand.u32 4294901760, %v12603_v60 }
 0x424   : > { %10744 = vmatpush1.bf16.msra.mxu0 %v10743_v50  ;;  %2628 = vmatprep.mubr.f32.mxu0 %v15203_v54  ;;  %v15295_v50 = vand.u32 4294901760, %v12695_v31  ;;  %v15301_v31 = vand.u32 4294901760, %v12706_v59 }
 0x425   : > { %10746 = vmatprep.subr.bf16.mxu0 %v10745_v35  ;;  %10834 = vmatpush3.bf16.msra.mxu1 %v10833_v17  ;;  %v15296_v17 = vld [vmem:[#allocation8_spill] sm:$0xff] }
 0x426   : > { %10835 = vmatprep.subr.bf16.mxu1 %v15264_v32  ;;  %v10854_v35 = vpack.c.bf16 %v15295_v50, %v15294_v33  ;;  %v15309_v50 = vand.u32 4294901760, %v12748_v18  ;;  %v15314_v18 = vand.u32 4294901760, %v12785_v62 }
 0x428   : > { %10748 = vmatpush1.bf16.msra.mxu0 %v10747_v55  ;;  %v15297_v55 = vand.u32 4294901760, %v12597_v57  ;;  %v15303_v57 = vand.u32 4294901760, %v12664_v13  ;;  %v15308_v13 = vand.u32 4294901760, %v12759_v10 }
 0x429   : > { %10750 = vmatprep.subr.bf16.mxu0 %v10749_v25  ;;  %10837 = vmatpush3.bf16.msra.mxu1 %v10836_v47  ;;  %v15298_v25 = vand.u32 4294901760, %v12704_v46  ;;  %v15304_v46 = vand.u32 4294901760, %v12678_v45 }
 0x42a   : > { %10838 = vmatprep.subr.bf16.mxu1 %v15264_v32 }
 0x42b   : > { %v10773_v47 = vpack.c.bf16 %v15298_v25, %v15297_v55  ;;  %v10857_v33 = vpack.c.bf16 %v15304_v46, %v15303_v57 }
 0x42c   : > { %10752 = vmatpush1.bf16.msra.mxu0 %v10751_v42  ;;  %v15299_v42 = vand.u32 4294901760, %v12592_v0  ;;  %v15305_v0 = vand.u32 4294901760, %v12611_v12  ;;  %v15311_v12 = vand.u32 4294901760, %v12662_v53  ;;  %v15315_v53 = vand.u32 4294901760, %v12806_v16  ;;  %v3520_v16 = vld [vmem:[%s15017_s10 + $0x80] sm:$0xff] }
 0x42d   : > { %10754 = vmatprep.subr.bf16.mxu0 %v10753_v38  ;;  %10840 = vmatpush3.bf16.msra.mxu1 %v10839_v9  ;;  %v15300_v38 = vand.u32 4294901760, %v12634_v43  ;;  %v15302_v9 = vand.u32 4294901760, %v12726_v24  ;;  %v15306_v43 = vand.u32 4294901760, %v12613_v15  ;;  %v15307_v24 = vand.u32 4294901760, %v12774_v52 }
 0x42e   : > { %9567 = vmatprep.subr.mxu1 %v15203_v54  ;;  %v15312_v15 = vand.u32 4294901760, %v12676_v28  ;;  %v15313_v52 = vand.u32 4294901760, %v12783_v61  ;;  %v10787_v28 = vpack.c.bf16 %v15315_v53, %v2446_v49  ;;  %v3521_v61 = vld [vmem:[%s15017_s10 + $0x88] sm:$0xff]  ;;  %v3648_v62 = vand.u32 4294901760, %v3520_v16 }
 0x42f   : > { %v10775_v60 = vpack.c.bf16 %v15300_v38, %v15299_v42  ;;  %v10779_v59 = vpack.c.bf16 %v15306_v43, %v15305_v0  ;;  %v10781_v45 = vpack.c.bf16 %v15308_v13, %v15307_v24  ;;  %v13166_v43 = vld [vmem:[%s15017_s10 + $0xa8] sm:$0xff] }
 0x430   : > { %10756 = vmatpush1.bf16.msra.mxu0 %v10755_v2  ;;  %v10777_v2 = vpack.c.bf16 %v15302_v9, %v15301_v31  ;;  %v10783_v55 = vpack.c.bf16 %v15312_v15, %v15311_v12  ;;  %v10785_v10 = vpack.c.bf16 %v2452_v7, %v15313_v52  ;;  %v13097_v7 = vld [vmem:[%s15017_s10 + $0x18] sm:$0xff]  ;;  %v13099_v49 = vsub.f32 %v3520_v16, %v3648_v62 }
 0x431   : > { %2578 = vmatprep.subr.mxu0 %v12846_v40  ;;  %9568 = vmatpush3.msra.mxu1 %v12855_v29  ;;  %v13092_v40 = vld [vmem:[%s15017_s10 + $0x10] sm:$0xff] }
 0x432   : > { %10841 = vmatprep.subr.bf16.mxu1 %v15264_v32  ;;  %9570 = vmatmul.mubr.f32.vlgmr.msra.gmra.mrb[2].mxu1 %v12607_v4 }
 0x433   : > { %10843 = vmatpush3.bf16.msra.mxu1 %v15283_v23  ;;  %9590 = vmatprep.mubr.msk.f32.mxu1 %vm11742_vm11, %v15203_v54 }
 0x434   : > { %2581 = vmatpush1.msra.mxu0 %v12877_v20  ;;  %10844 = vmatprep.subr.bf16.mxu1 %v15264_v32 }
 0x435   : > { %10758 = vmatprep.subr.bf16.mxu0 %v15284_v21  ;;  %2631 = vmatmul.mubr.f32.vlgmr.msra.gmra.mrb[2].mxu0 %v12607_v4  ;;  %v15290_v4 = vld [vmem:[#allocation14_spill] sm:$0xff] }
 0x436   : > { %10760 = vmatpush1.bf16.msra.mxu0 %v15285_v8  ;;  %2719 = vmatprep.mubr.f32.mxu0 %v15203_v54 }
 0x437   : > { %10762 = vmatprep.subr.bf16.mxu0 %v15286_v44  ;;  %10846 = vmatpush3.bf16.msra.mxu1 %v15287_v41 }
 0x438   : > { %10847 = vmatprep.subr.bf16.mxu1 %v15264_v32 }
 0x43a   : > { %10764 = vmatpush1.bf16.msra.mxu0 %v15288_v39 }
 0x43b   : > { %10766 = vmatprep.subr.bf16.mxu0 %v15289_v36  ;;  %10849 = vmatpush3.bf16.msra.mxu1 %v15290_v4 }
 0x43c   : > { %10850 = vmatprep.subr.bf16.mxu1 %v15264_v32 }
 0x43e   : > { %10768 = vmatpush1.bf16.msra.mxu0 %v15291_v37 }
 0x43f   : > { %10770 = vmatprep.subr.bf16.mxu0 %v15292_v51  ;;  %10852 = vmatpush3.bf16.msra.mxu1 %v15293_v1 }
 0x440   : > { %9588 = vmatprep.subr.mxu1 %v15203_v54 }
 0x442   : > { %10772 = vmatpush1.bf16.msra.mxu0 %v12792_v30 }
 0x443   : > { %2670 = vmatprep.subr.mxu0 %v12808_v27  ;;  %9589 = vmatpush3.msra.mxu1 %v12810_v14 }
 0x444   : > { %10853 = vmatprep.subr.bf16.mxu1 %v15264_v32  ;;  %9591 = vmatmul.mubr.f32.vlgmr.msra.gmra.mrb[2].mxu1 %v15296_v17 }
 0x445   : > { %10855 = vmatpush3.bf16.msra.mxu1 %v10854_v35  ;;  %9611 = vmatprep.mubr.msk.f32.mxu1 %vm11742_vm11, %v15203_v54  ;;  %v15310_v35 = vand.u32 4294901760, %v12752_v63  ;;  %v10863_v63 = vpack.c.bf16 %v3081_v34, %v15314_v18 }
 0x446   : > { %2672 = vmatpush1.msra.mxu0 %v12824_v26  ;;  %10856 = vmatprep.subr.bf16.mxu1 %v15264_v32 }
 0x447   : > { %10774 = vmatprep.subr.bf16.mxu0 %v10773_v47  ;;  %2723 = vmatmul.mubr.f32.vlgmr.msra.gmra.mrb[2].mxu0 %v15296_v17  ;;  %v10860_v17 = vpack.c.bf16 %v15310_v35, %v15309_v50  ;;  %v13174_v50 = vld [vmem:[%s15017_s10 + $0x20] sm:$0xff]  ;;  %v13179_v35 = vld [vmem:[%s15017_s10 + $0x28] sm:$0xff] }
 0x448   : > { %10776 = vmatpush1.bf16.msra.mxu0 %v10775_v60  ;;  %2847 = vmatprep.mubr.f32.mxu0 %v15203_v54  ;;  %v3612_v16 = vand.u32 4294901760, %v13174_v50 }
 0x449   : > { %10778 = vmatprep.subr.bf16.mxu0 %v10777_v2  ;;  %10858 = vmatpush3.bf16.msra.mxu1 %v10857_v33  ;;  %v13158_v2 = vld [vmem:[%s15017_s10 + $0xa0] sm:$0xff] }
 0x44a   : > { %10859 = vmatprep.subr.bf16.mxu1 %v15264_v32 }
 0x44c   : > { %10780 = vmatpush1.bf16.msra.mxu0 %v10779_v59 }
 0x44d   : > { %10782 = vmatprep.subr.bf16.mxu0 %v10781_v45  ;;  %10861 = vmatpush3.bf16.msra.mxu1 %v10860_v17 }
 0x44e   : > { %10862 = vmatprep.subr.bf16.mxu1 %v15264_v32 }
 0x450   : > { %10784 = vmatpush1.bf16.msra.mxu0 %v10783_v55  ;;  %v3660_v55 = vand.u32 4294901760, %v13158_v2 }
 0x451   : > { %10786 = vmatprep.subr.bf16.mxu0 %v10785_v10  ;;  %10864 = vmatpush3.bf16.msra.mxu1 %v10863_v63  ;;  %v3663_v63 = vand.u32 4294901760, %v13166_v43 }
 0x452   : > { %9609 = vmatprep.subr.mxu1 %v15203_v54  ;;  %v13187_v53 = vsub.f32 %v13158_v2, %v3660_v55 }
 0x454   : > { %10788 = vmatpush1.bf16.msra.mxu0 %v10787_v28 }
 0x455   : > { %2796 = vmatprep.subr.mxu0 %v2464_v56  ;;  %9610 = vmatpush3.msra.mxu1 %v3088_v11  ;;  %v3606_v56 = vand.u32 4294901760, %v13092_v40 }
 0x456   : > { %10865 = vmatprep.subr.bf16.mxu1 %v15264_v32  ;;  %9612 = vmatmul.mubr.f32.vlgmr.msra.gmra.mrb[2].mxu1 %v12599_v48 }
 0x457   : > { %10867 = vmatpush3.bf16.msra.mxu1 %v15283_v23  ;;  %9632 = vmatprep.mubr.msk.f32.mxu1 %vm11742_vm11, %v15203_v54 }
 0x458   : > { %2800 = vmatpush1.msra.mxu0 %v2470_v5  ;;  %10868 = vmatprep.subr.bf16.mxu1 %v15264_v32 }
 0x459   : > { %10790 = vmatprep.subr.bf16.mxu0 %v15284_v21  ;;  %2849 = vmatmul.mubr.f32.vlgmr.msra.gmra.mrb[2].mxu0 %v12599_v48  ;;  %v3609_v21 = vand.u32 4294901760, %v13097_v7 }
 0x45a   : > { %10792 = vmatpush1.bf16.msra.mxu0 %v15285_v8  ;;  %2937 = vmatprep.mubr.f32.mxu0 %v15203_v54  ;;  %v15137_v8 = vand.u32 4294901760, %v13099_v49 }
 0x45b   : > { %10794 = vmatprep.subr.bf16.mxu0 %v15286_v44  ;;  %10870 = vmatpush3.bf16.msra.mxu1 %v15287_v41 }
 0x45c   : > { %10871 = vmatprep.subr.bf16.mxu1 %v15264_v32 }
 0x45e   : > { %10796 = vmatpush1.bf16.msra.mxu0 %v15288_v39  ;;  %v13125_v39 = vsub.f32 %v13092_v40, %v3606_v56 }
 0x45f   : > { %10798 = vmatprep.subr.bf16.mxu0 %v15289_v36  ;;  %10873 = vmatpush3.bf16.msra.mxu1 %v15290_v4 }
 0x460   : > { %10874 = vmatprep.subr.bf16.mxu1 %v15264_v32  ;;  %v15131_v42 = vand.u32 4294901760, %v13125_v39 }
 0x462   : > { %10800 = vmatpush1.bf16.msra.mxu0 %v15291_v37  ;;  %v3729_v0 = vsub.f32 %v13125_v39, %v15131_v42 }
 0x463   : > { %10802 = vmatprep.subr.bf16.mxu0 %v15292_v51  ;;  %10876 = vmatpush3.bf16.msra.mxu1 %v15293_v1  ;;  %v13133_v51 = vsub.f32 %v13097_v7, %v3609_v21  ;;  %v3827_v1 = vsub.f32 %v13099_v49, %v15137_v8 }
 0x464   : > { %9630 = vmatprep.subr.mxu1 %v15203_v54  ;;  %v3730_v12 = vand.u32 4294901760, %v3729_v0 }
 0x465   : > { %v15130_v9 = vand.u32 4294901760, %v13133_v51  ;;  %v3828_v57 = vand.u32 4294901760, %v3827_v1 }
 0x466   : > { %10804 = vmatpush1.bf16.msra.mxu0 %v12792_v30  ;;  %v3504_v30 = vld [vmem:[%s15017_s10] sm:$0xff] }
 0x467   : > { %2888 = vmatprep.subr.mxu0 %v12808_v27  ;;  %9631 = vmatpush3.msra.mxu1 %v12810_v14  ;;  %v3651_v14 = vand.u32 4294901760, %v3521_v61  ;;  %v3600_v6 = vand.u32 4294901760, %v3504_v30  ;;  %v13085_v27 = vld [vmem:[%s15017_s10 + $0x98] sm:$0xff]  ;;  %v3736_v45 = vsub.f32 %v13133_v51, %v15130_v9 }
 0x468   : > { %9633 = vmatmul.mubr.f32.vlgmr.msra.gmra.mrb[2].mxu1 %v12599_v48  ;;  %v3657_v34 = vand.u32 4294901760, %v13085_v27 }
 0x469   : > { %v13101_v29 = vsub.f32 %v3521_v61, %v3651_v14  ;;  %v13103_v20 = vsub.f32 %v3504_v30, %v3600_v6  ;;  %v13181_v15 = vpack.c.bf16 %v3651_v14, %v3648_v62  ;;  %v3737_v18 = vand.u32 4294901760, %v3736_v45 }
 0x46a   : > { %2890 = vmatpush1.msra.mxu0 %v12824_v26  ;;  %v3505_v26 = vld [vmem:[%s15017_s10 + $0x8] sm:$0xff]  ;;  %v13116_v23 = vsub.f32 %v13085_v27, %v3657_v34  ;;  %v3615_v61 = vand.u32 4294901760, %v13179_v35  ;;  %v13194_v62 = vsub.f32 %v13166_v43, %v3663_v63  ;;  %v15129_v14 = vand.u32 4294901760, %v13187_v53  ;;  %v2267_v27 = vpop.permute.xlu0 %2266 }
 0x46b   : > { %2939 = vmatmul.mubr.f32.vlgmr.msra.gmra.mrb[2].mxu0 %v12599_v48  ;;  %v13080_v48 = vld [vmem:[%s15017_s10 + $0x90] sm:$0xff]  ;;  %v3603_v19 = vand.u32 4294901760, %v3505_v26  ;;  %v15136_v44 = vand.u32 4294901760, %v13101_v29  ;;  %v15135_v41 = vand.u32 4294901760, %v13103_v20  ;;  %10878 = vmatprep.subr.bf16.mxu0 %v13181_v15  ;;  %v10915_v30 = vpack.c.bf16 %v3737_v18, %v3730_v12 }
 0x46c   : > { %v3654_v3 = vand.u32 4294901760, %v13080_v48  ;;  %v15132_v37 = vand.u32 4294901760, %v13116_v23  ;;  %v3855_v1 = vsub.f32 %v13187_v53, %v15129_v14  ;;  %v13239_v45 = vpack.c.bf16 %v3609_v21, %v3606_v56 }
 0x46d   : > { %v13106_v11 = vsub.f32 %v3505_v26, %v3603_v19  ;;  %v3834_v25 = vsub.f32 %v13101_v29, %v15136_v44  ;;  %v3715_v47 = vsub.f32 %v13103_v20, %v15135_v41  ;;  %v13189_v28 = vpack.c.bf16 %v3603_v19, %v3600_v6 }
 0x46e   : > { %v13111_v5 = vsub.f32 %v13080_v48, %v3654_v3  ;;  %v3848_v31 = vsub.f32 %v13116_v23, %v15132_v37  ;;  %v13199_v26 = vsub.f32 %v13174_v50, %v3612_v16  ;;  %v13202_v6 = vsub.f32 %v13179_v35, %v3615_v61  ;;  %v13244_v48 = vld [vmem:[%s15017_s10 + $0x30] sm:$0xff]  ;;  %v13251_v50 = vld [vmem:[%s15017_s10 + $0x38] sm:$0xff] }
 0x46f   : > { %v15134_v36 = vand.u32 4294901760, %v13106_v11  ;;  %v3835_v46 = vand.u32 4294901760, %v3834_v25  ;;  %v3716_v33 = vand.u32 4294901760, %v3715_v47  ;;  %10880 = vmatpush3.bf16.msra.mxu0 %v13189_v28  ;;  %v15128_v19 = vand.u32 4294901760, %v13194_v62 }
 0x470   : > { %v15133_v4 = vand.u32 4294901760, %v13111_v5  ;;  %v3849_v13 = vand.u32 4294901760, %v3848_v31  ;;  %15316 = vst [vmem:[#allocation9_spill] sm:$0xff] %v13199_v26  ;;  %15317 = vst [vmem:[#allocation10_spill] sm:$0xff] %v13202_v6  ;;  %v15127_v25 = vand.u32 4294901760, %v13199_v26  ;;  %v15125_v47 = vand.u32 4294901760, %v13202_v6 }
 0x471   : > { %v3722_v38 = vsub.f32 %v13106_v11, %v15134_v36  ;;  %v10909_v17 = vpack.c.bf16 %v3835_v46, %v3828_v57  ;;  %v3618_v40 = vand.u32 4294901760, %v13244_v48  ;;  %v3621_v7 = vand.u32 4294901760, %v13251_v50 }
 0x472   : > { %v3841_v60 = vsub.f32 %v13111_v5, %v15133_v4  ;;  %v3743_v31 = vsub.f32 %v13199_v26, %v15127_v25  ;;  %v3750_v2 = vsub.f32 %v13202_v6, %v15125_v47  ;;  %v13326_v25 = vld [vmem:[%s15017_s10 + $0x48] sm:$0xff] }
 0x473   : > { %v3723_v59 = vand.u32 4294901760, %v3722_v38  ;;  %10910 = vmatprep.subr.bf16.mxu1 %v10909_v17  ;;  %v3862_v38 = vsub.f32 %v13194_v62, %v15128_v19  ;;  %v13270_v35 = vsub.f32 %v13244_v48, %v3618_v40  ;;  %v11575_v17 = vadd.f32 %v2267_v27, %v12901_v22  ;;  %v13287_v22 = vld [vmem:[%s15017_s10 + $0xc0] sm:$0xff] }
 0x474   : > { %v3842_v24 = vand.u32 4294901760, %v3841_v60  ;;  %v3856_v60 = vand.u32 4294901760, %v3855_v1  ;;  %v3744_v46 = vand.u32 4294901760, %v3743_v31  ;;  %v13276_v12 = vsub.f32 %v13251_v50, %v3621_v7 }
 0x475   : > { %v10911_v52 = vpack.c.bf16 %v3723_v59, %v3716_v33  ;;  %v3863_v57 = vand.u32 4294901760, %v3862_v38  ;;  %v3751_v33 = vand.u32 4294901760, %v3750_v2  ;;  %v13223_v59 = vpack.c.bf16 %v3657_v34, %v3654_v3  ;;  %v13292_v2 = vld [vmem:[%s15017_s10 + $0xc8] sm:$0xff] }
 0x476   : > { %v10913_v10 = vpack.c.bf16 %v3849_v13, %v3842_v24  ;;  %v13228_v24 = vld [vmem:[%s15017_s10 + $0xb0] sm:$0xff]  ;;  %v13233_v13 = vld [vmem:[%s15017_s10 + $0xb8] sm:$0xff]  ;;  %v13282_v31 = vpack.c.bf16 %v3663_v63, %v3660_v55 }
 0x477   : > { %10912 = vmatpush3.bf16.msra.mxu1 %v10911_v52  ;;  %v10917_v0 = vpack.c.bf16 %v3863_v57, %v3856_v60  ;;  %v10919_v43 = vpack.c.bf16 %v3751_v33, %v3744_v46  ;;  %v3666_v3 = vand.u32 4294901760, %v13228_v24  ;;  %v3669_v34 = vand.u32 4294901760, %v13233_v13  ;;  %10882 = vmatprep.subr.bf16.mxu0 %v13223_v59 }
 0x478   : > { %10914 = vmatprep.subr.bf16.mxu1 %v10913_v10  ;;  %10884 = vmatpush3.bf16.msra.mxu0 %v13239_v45  ;;  %v15126_v60 = vand.u32 4294901760, %v13276_v12  ;;  %v13294_v57 = vpack.c.bf16 %v3615_v61, %v3612_v16 }
 0x479   : > { %v13259_v56 = vsub.f32 %v13228_v24, %v3666_v3  ;;  %v13264_v21 = vsub.f32 %v13233_v13, %v3669_v34  ;;  %10886 = vmatprep.subr.bf16.mxu0 %v13282_v31  ;;  %v13391_v24 = vld [vmem:[%s15017_s10 + $0x58] sm:$0xff] }
 0x47a   : > { %v3764_v61 = vsub.f32 %v13276_v12, %v15126_v60  ;;  %v3633_v50 = vand.u32 4294901760, %v13391_v24 }
 0x47b   : > { %10916 = vmatpush3.bf16.msra.mxu1 %v10915_v30  ;;  %v15124_v10 = vand.u32 4294901760, %v13259_v56  ;;  %v15123_v18 = vand.u32 4294901760, %v13264_v21  ;;  %v15122_v30 = vand.u32 4294901760, %v13270_v35 }
 0x47c   : > { %10918 = vmatprep.subr.bf16.mxu1 %v10917_v0  ;;  %v3672_v0 = vand.u32 4294901760, %v13287_v22  ;;  %10888 = vmatpush3.bf16.msra.mxu0 %v13294_v57  ;;  %v13432_v44 = vsub.f32 %v13391_v24, %v3633_v50 }
 0x47d   : > { %v3869_v33 = vsub.f32 %v13259_v56, %v15124_v10  ;;  %v3876_v55 = vsub.f32 %v13264_v21, %v15123_v18  ;;  %v3757_v63 = vsub.f32 %v13270_v35, %v15122_v30 }
 0x47e   : > { %v13321_v60 = vsub.f32 %v13287_v22, %v3672_v0 }
 0x47f   : > { %10920 = vmatpush3.bf16.msra.mxu1 %v10919_v43  ;;  %v3870_v18 = vand.u32 4294901760, %v3869_v33  ;;  %v3877_v10 = vand.u32 4294901760, %v3876_v55  ;;  %v3758_v47 = vand.u32 4294901760, %v3757_v63  ;;  %v13335_v63 = vld [vmem:[%s15017_s10 + $0xd0] sm:$0xff] }
 0x53b   : > { %v3491_v52 = vpop.f32.mrb[2].mxu1 }
 0x53c   : > { %v11583_v1 = vadd.f32 %v3491_v52, %v2267_v27  ;;  %v9634_v38 = vpop.f32.mrb[3].mxu1  ;;  %v3675_v52 = vand.u32 4294901760, %v13292_v2 }
 0x53d   : > { %v13315_v38 = vld [vmem:[%s15017_s10 + $0x40] sm:$0xff] }
 0x53e   : > { %v2940_v46 = vpop.f32.mrb[2].mxu0  ;;  %v3497_v43 = vadd.f32 %v11583_v1, %v12910_v58  ;;  %v13329_v33 = vsub.f32 %v13292_v2, %v3675_v52  ;;  %v3624_v55 = vand.u32 4294901760, %v13315_v38 }
 0x53f   : > { %v11576_v27 = vadd.f32 %v11575_v17, %v2940_v46  ;;  %v2942_v16 = vpop.f32.mrb[3].mxu0  ;;  %v3765_v46 = vand.u32 4294901760, %v3764_v61 }
 0x540   : > { %v11578_v30 = vadd.f32 %v11575_v17, %v2942_v16  ;;  %v3500_v58 = vmax.f32 %v3497_v43, 0.0  ;;  %v10921_v17 = vpack.c.bf16 %v3877_v10, %v3870_v18  ;;  %v15318_v43 = vld [vmem:[#allocation3_spill] sm:$0xff]  ;;  %v15319_v16 = vld [vmem:[#allocation4_spill] sm:$0xff]  ;;  %v13347_v10 = vld [vmem:[%s15017_s10 + $0xd8] sm:$0xff]  ;;  %v15142_v9 = vand.u32 4294901760, %v13329_v33 }
 0x541   : > { %v3498_v1 = vmax.f32 %v11576_v27, 0.0  ;;  %v10923_v14 = vpack.c.bf16 %v3765_v46, %v3758_v47  ;;  %v15320_v18 = vld [vmem:[#allocation2_spill] sm:$0xff]  ;;  %v13360_v47 = vld [vmem:[%s15017_s10 + $0x50] sm:$0xff]  ;;  %v3678_v46 = vand.u32 4294901760, %v13335_v63  ;;  %v3681_v42 = vand.u32 4294901760, %v13347_v10 }
 0x542   : > { %v3499_v19 = vmax.f32 %v11578_v30, 0.0  ;;  %v13341_v61 = vmul.f32 %v3500_v58, %v15319_v16  ;;  %v15143_v30 = vand.u32 4294901760, %v13321_v60  ;;  %10922 = vmatprep.subr.bf16.mxu1 %v10921_v17  ;;  %v13377_v58 = vpack.c.bf16 %v3669_v34, %v3666_v3 }
 0x543   : > { %v13338_v27 = vmul.f32 %v3498_v1, %v15318_v43  ;;  %v3627_v1 = vand.u32 4294901760, %v13326_v25  ;;  %v13355_v43 = vsub.f32 %v13315_v38, %v3624_v55  ;;  %10924 = vmatpush3.bf16.msra.mxu1 %v10923_v14  ;;  %v3890_v17 = vsub.f32 %v13329_v33, %v15142_v9 }
 0x544   : > { %v13350_v2 = vmul.f32 %v3499_v19, %v15320_v18  ;;  %v13368_v19 = vsel %vm3545_vm12, %v13341_v61, 0.0  ;;  %v3883_v38 = vsub.f32 %v13321_v60, %v15143_v30  ;;  %10890 = vmatprep.subr.bf16.mxu0 %v13377_v58  ;;  %v13395_v14 = vsub.f32 %v13335_v63, %v3678_v46 }
 0x545   : > { %3564 = vrot.lane.b32.xlu0 %v13338_v27, %s11734_s29  ;;  %3550 = vrot.lane.b32.xlu1 %v13338_v27, %s11733_s28  ;;  %v15141_v16 = vand.u32 4294901760, %v13355_v43  ;;  %v13385_v18 = vsub.f32 %v13326_v25, %v3627_v1  ;;  %v13401_v3 = vpack.c.bf16 %v3621_v7, %v3618_v40  ;;  %v15144_v25 = vand.u32 4294901760, %v13360_v47 }
 0x546   : > { %v3884_v13 = vand.u32 4294901760, %v3883_v38  ;;  %v3891_v34 = vand.u32 4294901760, %v3890_v17  ;;  %v13409_v4 = vsub.f32 %v13347_v10, %v3681_v42  ;;  %v15138_v48 = vand.u32 4294901760, %v13395_v14 }
 0x547   : > { %15321 = vst [vmem:[#allocation13_spill] sm:$0xff] %v13401_v3  ;;  %v3771_v37 = vsub.f32 %v13355_v43, %v15141_v16  ;;  %v15140_v38 = vand.u32 4294901760, %v13385_v18  ;;  %v13420_v40 = vsub.f32 %v13360_v47, %v15144_v25  ;;  %10892 = vmatpush3.bf16.msra.mxu0 %v13401_v3 }
 0x548   : > { %v10925_v7 = vpack.c.bf16 %v3891_v34, %v3884_v13  ;;  %v15139_v17 = vand.u32 4294901760, %v13409_v4  ;;  %v3897_v36 = vsub.f32 %v13395_v14, %v15138_v48  ;;  %v13441_v13 = vld [vmem:[%s15017_s10 + $0xe0] sm:$0xff]  ;;  %v13446_v34 = vld [vmem:[%s15017_s10 + $0xe8] sm:$0xff] }
 0x549   : > { %3554 = vrot.lane.b32.xlu0 %v13368_v19, %s11733_s28  ;;  %3552 = vrot.lane.b32.xlu1 %v13350_v2, %s11733_s28  ;;  %v3772_v63 = vand.u32 4294901760, %v3771_v37  ;;  %v3778_v10 = vsub.f32 %v13385_v18, %v15140_v38  ;;  %v15147_v41 = vand.u32 4294901760, %v13420_v40  ;;  %v13436_v37 = vpack.c.bf16 %v3675_v52, %v3672_v0  ;;  %v13456_v52 = vld [vmem:[%s15017_s10 + $0x60] sm:$0xff]  ;;  %v13461_v48 = vld [vmem:[%s15017_s10 + $0x68] sm:$0xff] }
 0x54a   : > { %10926 = vmatprep.subr.bf16.mxu1 %v10925_v7  ;;  %v3904_v24 = vsub.f32 %v13409_v4, %v15139_v17  ;;  %v3684_v22 = vand.u32 4294901760, %v13441_v13  ;;  %v3687_v0 = vand.u32 4294901760, %v13446_v34  ;;  %v3898_v7 = vand.u32 4294901760, %v3897_v36 }
 0x54b   : > { %15322 = vst [vmem:[#allocation7_spill] sm:$0xff] %v13436_v37  ;;  %v3779_v8 = vand.u32 4294901760, %v3778_v10  ;;  %v3785_v10 = vsub.f32 %v13420_v40, %v15147_v41  ;;  %v15146_v17 = vand.u32 4294901760, %v13432_v44  ;;  %v13471_v38 = vpack.c.bf16 %v3627_v1, %v3624_v55  ;;  %10894 = vmatprep.subr.bf16.mxu0 %v13436_v37  ;;  %v3534_v1 = vld [vmem:[%s15017_s10 + $0xf0] sm:$0xff] }
 0x54c   : > { %v3905_v9 = vand.u32 4294901760, %v3904_v24  ;;  %v13475_v30 = vsub.f32 %v13441_v13, %v3684_v22  ;;  %v13478_v25 = vsub.f32 %v13446_v34, %v3687_v0  ;;  %v3636_v55 = vand.u32 4294901760, %v13456_v52 }
 0x54d   : > { %3566 = vrot.lane.b32.xlu0 %v13350_v2, %s11734_s29  ;;  %3568 = vrot.lane.b32.xlu1 %v13368_v19, %s11734_s29  ;;  %15323 = vst [vmem:[#allocation6_spill] sm:$0xff] %v13471_v38  ;;  %v10927_v16 = vpack.c.bf16 %v3779_v8, %v3772_v63  ;;  %v3786_v54 = vand.u32 4294901760, %v3785_v10  ;;  %v3792_v36 = vsub.f32 %v13432_v44, %v15146_v17  ;;  %v3639_v8 = vand.u32 4294901760, %v13461_v48  ;;  %v3535_v63 = vld [vmem:[%s15017_s10 + $0xf8] sm:$0xff]  ;;  %s15389_s29 = sld [smem:[#allocation21_spill]] }
 0x54e   : > { %10896 = vmatpush3.bf16.msra.mxu0 %v13471_v38  ;;  %v10929_v13 = vpack.c.bf16 %v3905_v9, %v3898_v7  ;;  %v15149_v34 = vand.u32 4294901760, %v13475_v30  ;;  %v15154_v24 = vand.u32 4294901760, %v13478_v25  ;;  %v13494_v10 = vpack.c.bf16 %v3681_v42, %v3678_v46  ;;  %v3519_v7 = vld [vmem:[%s15017_s10 + $0x78] sm:$0xff] }
 0x54f   : > { %10928 = vmatpush3.bf16.msra.mxu1 %v10927_v16  ;;  %v3793_v17 = vand.u32 4294901760, %v3792_v36  ;;  %v13501_v41 = vsub.f32 %v13456_v52, %v3636_v55  ;;  %v13504_v32 = vsub.f32 %v13461_v48, %v3639_v8  ;;  %v3690_v9 = vand.u32 4294901760, %v3534_v1  ;;  %v3518_v16 = vld [vmem:[%s15017_s10 + $0x70] sm:$0xff] }
 0x550   : > { %15324 = vst [vmem:[#allocation11_spill] sm:$0xff] %v13494_v10  ;;  %10930 = vmatprep.subr.bf16.mxu1 %v10929_v13  ;;  %v3911_v42 = vsub.f32 %v13475_v30, %v15149_v34  ;;  %10898 = vmatprep.subr.bf16.mxu0 %v13494_v10  ;;  %v3693_v46 = vand.u32 4294901760, %v3535_v63  ;;  %v15325_v48 = vand.u32 4294901760, %v13360_v47  ;;  %v3642_v47 = vand.u32 4294901760, %v3518_v16 }
 0x551   : > { %3582 = vrot.lane.b32.xlu0 %v13368_v19, %s11735_s0  ;;  %3580 = vrot.lane.b32.xlu1 %v13350_v2, %s11735_s0  ;;  %v3918_v19 = vsub.f32 %v13478_v25, %v15154_v24  ;;  %v10931_v36 = vpack.c.bf16 %v3793_v17, %v3786_v54  ;;  %v15163_v13 = vand.u32 4294901760, %v13501_v41  ;;  %v3805_v34 = vand.u32 4294901760, %v13504_v32 }
 0x552   : > { %v13518_v52 = vpack.c.bf16 %v3633_v50, %v15325_v48  ;;  %v13525_v38 = vsub.f32 %v3534_v1, %v3690_v9  ;;  %v3912_v37 = vand.u32 4294901760, %v3911_v42  ;;  %v13527_v6 = vsub.f32 %v3535_v63, %v3693_v46 }
 0x553   : > { %v3919_v24 = vand.u32 4294901760, %v3918_v19  ;;  %10932 = vmatpush3.bf16.msra.mxu1 %v10931_v36  ;;  %v3799_v54 = vsub.f32 %v13501_v41, %v15163_v13  ;;  %v3806_v50 = vsub.f32 %v13504_v32, %v3805_v34  ;;  %v3645_v1 = vand.u32 4294901760, %v3519_v7 }
 0x554   : > { %15326 = vst [vmem:[#allocation5_spill] sm:$0xff] %v13518_v52  ;;  %10900 = vmatpush3.bf16.msra.mxu0 %v13518_v52  ;;  %v3924_v17 = vand.u32 4294901760, %v13525_v38  ;;  %v3931_v63 = vand.u32 4294901760, %v13527_v6  ;;  %v13538_v19 = vsub.f32 %v3518_v16, %v3642_v47  ;;  %v13540_v48 = vpack.c.bf16 %v3687_v0, %v3684_v22 }
 0x555   : > { %3578 = vrot.lane.b32.xlu1 %v13338_v27, %s11735_s0  ;;  %v10933_v42 = vpack.c.bf16 %v3919_v24, %v3912_v37  ;;  %v3800_v52 = vand.u32 4294901760, %v3799_v54  ;;  %v3807_v10 = vand.u32 4294901760, %v3806_v50  ;;  %v13543_v26 = vsub.f32 %v3519_v7, %v3645_v1  ;;  %s11747_s0 = smov 106  }
 0x556   : > { %v3925_v36 = vsub.f32 %v13525_v38, %v3924_v17  ;;  %v3932_v13 = vsub.f32 %v13527_v6, %v3931_v63  ;;  %v3812_v3 = vand.u32 4294901760, %v13538_v19  ;;  %10902 = vmatprep.subr.bf16.mxu0 %v13540_v48  ;;  %v13548_v37 = vpack.c.bf16 %v3639_v8, %v3636_v55 }
 0x557   : > { %10934 = vmatprep.subr.bf16.mxu1 %v10933_v42  ;;  %v13550_v24 = vpack.c.bf16 %v3693_v46, %v3690_v9  ;;  %v10935_v16 = vpack.c.bf16 %v3807_v10, %v3800_v52  ;;  %v3819_v0 = vand.u32 4294901760, %v13543_v26  ;;  %v13555_v7 = vpack.c.bf16 %v3645_v1, %v3642_v47 }
 0x558   : > { %v3926_v22 = vand.u32 4294901760, %v3925_v36  ;;  %v3933_v54 = vand.u32 4294901760, %v3932_v13  ;;  %v3813_v50 = vsub.f32 %v13538_v19, %v3812_v3  ;;  %10904 = vmatpush3.bf16.msra.mxu0 %v13548_v37  ;;  %v10941_v55 = vpack.c.bf16 %v13101_v29, %v13099_v49 }
 0x559   : > { %10936 = vmatpush3.bf16.msra.mxu1 %v10935_v16  ;;  %v3820_v42 = vsub.f32 %v13543_v26, %v3819_v0  ;;  %10906 = vmatprep.subr.bf16.mxu0 %v13550_v24  ;;  %v15334_v16 = vand.u32 4294901760, %v13409_v4  ;;  %v15337_v36 = vand.u32 4294901760, %v13432_v44  ;;  %v13617_v13 = vpack.c.bf16 %v3931_v63, %v3924_v17 }
 0x55a   : > { %v10937_v8 = vpack.c.bf16 %v3933_v54, %v3926_v22  ;;  %v3814_v10 = vand.u32 4294901760, %v3813_v50  ;;  %v15333_v54 = vand.u32 4294901760, %v13395_v14 }
 0x55b   : > { %v3821_v9 = vand.u32 4294901760, %v3820_v42  ;;  %v15336_v42 = vand.u32 4294901760, %v13420_v40  ;;  %15343 = vst [vmem:[#allocation3_spill] sm:$0xff] %v13617_v13 }
 0x55c   : > { %10938 = vmatprep.subr.bf16.mxu1 %v10937_v8  ;;  %10908 = vmatpush3.bf16.msra.mxu0 %v13555_v7  ;;  %v15328_v8 = vand.u32 4294901760, %v13329_v33  ;;  %v13599_v50 = vpack.c.bf16 %v15334_v16, %v15333_v54  ;;  %v13619_v16 = vpack.c.bf16 %v3819_v0, %v3812_v3 }
 0x55d   : > { %v10939_v52 = vpack.c.bf16 %v3821_v9, %v3814_v10  ;;  %10942 = vmatprep.subr.bf16.mxu0 %v10941_v55  ;;  %v15327_v55 = vand.u32 4294901760, %v13321_v60  ;;  %v15330_v9 = vand.u32 4294901760, %v13355_v43  ;;  %v13605_v1 = vpack.c.bf16 %v15337_v36, %v15336_v42 }
 0x55e   : > { %15335 = vst [vmem:[#allocation16_spill] sm:$0xff] %v13599_v50  ;;  %15344 = vst [vmem:[#allocation4_spill] sm:$0xff] %v13619_v16 }
 0x55f   : > { %10940 = vmatpush3.bf16.msra.mxu1 %v10939_v52  ;;  %v13587_v10 = vpack.c.bf16 %v15328_v8, %v15327_v55  ;;  %v15331_v52 = vand.u32 4294901760, %v13385_v18  ;;  %15338 = vst [vmem:[#allocation15_spill] sm:$0xff] %v13605_v1  ;;  %v15339_v55 = vand.u32 4294901760, %v13475_v30  ;;  %v15340_v8 = vand.u32 4294901760, %v13478_v25 }
 0x560   : > { %10974 = vmatprep.subr.bf16.mxu1 %v13181_v15 }
 0x561   : > { %15329 = vst [vmem:[#allocation14_spill] sm:$0xff] %v13587_v10  ;;  %v13593_v22 = vpack.c.bf16 %v15331_v52, %v15330_v9  ;;  %v13611_v47 = vpack.c.bf16 %v15340_v8, %v15339_v55  ;;  %v15341_v9 = vand.u32 4294901760, %v13501_v41 }
 0x563   : > { %15332 = vst [vmem:[#allocation12_spill] sm:$0xff] %v13593_v22  ;;  %v13615_v52 = vpack.c.bf16 %v3805_v34, %v15341_v9 }
 0x565   : > { %15342 = vst [vmem:[#allocation8_spill] sm:$0xff] %v13615_v52 }
 0x5b7   : > { %v3565_v54 = vpop.permute.xlu0 %3564  ;;  %v3551_v46 = vpop.permute.xlu1 %3550 }
 0x5bb   : > { %v3555_v50 = vpop.permute.xlu0 %3554  ;;  %v3553_v22 = vpop.permute.xlu1 %3552 }
 0x5bc   : > { %v3563_v36 = vmax.f32 %v13341_v61, %v3555_v50  ;;  %v3557_v42 = vsel %vm726_vm3, %v3553_v22, %v3555_v50  ;;  %v3556_v17 = vsel %vm726_vm3, %v3551_v46, %v3553_v22  ;;  %vm6849_vm3 = vcmask 351232  }
 0x5bd   : > { %v3562_v34 = vmax.f32 %v13350_v2, %v3557_v42  ;;  %v3561_v50 = vmax.f32 %v13338_v27, %v3556_v17  ;;  %v10945_v17 = vpack.c.bf16 %v13116_v23, %v13111_v5 }
 0x5bf   : > { %v3567_v1 = vpop.permute.xlu0 %3566  ;;  %v3569_v10 = vpop.permute.xlu1 %3568 }
 0x5c0   : > { %v3571_v55 = vsel %vm750_vm5, %v3567_v1, %v3569_v10  ;;  %v13624_v8 = vmax.f32 %v3563_v36, %v3569_v10  ;;  %v3570_v9 = vsel %vm750_vm5, %v3565_v54, %v3567_v1 }
 0x5c1   : > { %v3576_v3 = vmax.f32 %v3562_v34, %v3571_v55  ;;  %v3575_v13 = vmax.f32 %v3561_v50, %v3570_v9  ;;  %v15345_v9 = vld [vmem:[#allocation13_spill] sm:$0xff]  ;;  %v15347_v50 = vld [vmem:[#allocation10_spill] sm:$0xff] }
 0x5c3   : > { %v13628_v63 = vpop.permute.xlu0 %3582  ;;  %v3581_v0 = vpop.permute.xlu1 %3580 }
 0x5c4   : > { %v3585_v61 = vsel %vm762_vm7, %v3581_v0, %v13628_v63 }
 0x5c5   : > { %v3590_v16 = vmax.f32 %v3576_v3, %v3585_v61  ;;  %v10947_v3 = vpack.c.bf16 %v13133_v51, %v13125_v39  ;;  %v15346_v61 = vld [vmem:[#allocation9_spill] sm:$0xff] }
 0x5c7   : > { %v13634_v52 = vand.u32 4294901760, %v3590_v16  ;;  %v3579_v10 = vpop.permute.xlu1 %3578 }
 0x5c8   : > { %v3584_v2 = vsel %vm762_vm7, %v3579_v10, %v3581_v0  ;;  %v10949_v0 = vpack.c.bf16 %v13194_v62, %v13187_v53  ;;  %v10951_v10 = vpack.c.bf16 %v15347_v50, %v15346_v61 }
 0x5c9   : > { %v3696_v46 = vsub.f32 %v3590_v16, %v13634_v52  ;;  %v3589_v22 = vmax.f32 %v3575_v13, %v3584_v2  ;;  %3936 = vmatprep.mubr.f32.mxu1 %v13634_v52  ;;  %v10943_v13 = vpack.c.bf16 %v13106_v11, %v13103_v20  ;;  %v15348_v2 = vld [vmem:[#allocation7_spill] sm:$0xff] }
 0x5cb   : > { %v13639_v36 = vand.u32 4294901760, %v3589_v22  ;;  %v3697_v1 = vand.u32 4294901760, %v3696_v46 }
 0x5cd   : > { %v3702_v54 = vsub.f32 %v3589_v22, %v13639_v36  ;;  %3938 = vmatmul.mubr.f32.vlgmr.msra.gmra.mrb[4].mxu1 %v13639_v36  ;;  %v3698_v27 = vsub.f32 %v3696_v46, %v3697_v1  ;;  %v15349_v22 = vld [vmem:[#allocation6_spill] sm:$0xff] }
 0x5ce   : > { %10976 = vmatpush3.bf16.msra.mxu1 %v13189_v28  ;;  %4180 = vmatprep.mubr.f32.mxu1 %v3697_v1  ;;  %v15351_v1 = vld [vmem:[#allocation11_spill] sm:$0xff] }
 0x5cf   : > { %v3703_v42 = vand.u32 4294901760, %v3702_v54  ;;  %10978 = vmatprep.subr.bf16.mxu1 %v13223_v59  ;;  %v3699_v55 = vand.u32 4294901760, %v3698_v27  ;;  %v15352_v27 = vpack.c.bf16 %v13276_v12, %v13270_v35 }
 0x5d1   : > { %3700 = vmatprep.mubr.f32.mxu0 %v3699_v55  ;;  %v3704_v16 = vsub.f32 %v3702_v54, %v3703_v42  ;;  %v15353_v55 = vld [vmem:[#allocation5_spill] sm:$0xff] }
 0x5d2   : > { %10980 = vmatpush3.bf16.msra.mxu1 %v13239_v45 }
 0x5d3   : > { %10982 = vmatprep.subr.bf16.mxu1 %v13282_v31  ;;  %v3705_v34 = vand.u32 4294901760, %v3704_v16  ;;  %v15354_v16 = vpack.c.bf16 %v13329_v33, %v13321_v60  ;;  %v15358_v60 = vpack.c.bf16 %v13478_v25, %v13475_v30  ;;  %v15359_v33 = vpack.c.bf16 %v13504_v32, %v13501_v41  ;;  %v3537_v25 = vld [vmem:[%s15017_s10 + $0x108] sm:$0xff] }
 0x5d4   : > { %v15362_v30 = vand.u32 4294901760, %v13101_v29  ;;  %v15364_v32 = vand.u32 4294901760, %v13103_v20  ;;  %v15365_v41 = vand.u32 4294901760, %v13106_v11  ;;  %v15367_v29 = vand.u32 4294901760, %v13116_v23 }
 0x5d5   : > { %3706 = vmatmul.mubr.f32.vlgmr.msra.gmra.mrb[6].mxu0 %v3705_v34  ;;  %v15356_v34 = vpack.c.bf16 %v13409_v4, %v13395_v14  ;;  %v15361_v4 = vand.u32 4294901760, %v13099_v49  ;;  %v15366_v49 = vand.u32 4294901760, %v13111_v5  ;;  %v15370_v11 = vand.u32 4294901760, %v13187_v53  ;;  %v3536_v14 = vld [vmem:[%s15017_s10 + $0x100] sm:$0xff] }
 0x5d6   : > { %10944 = vmatpush3.bf16.msra.mxu0 %v10943_v13  ;;  %10984 = vmatpush3.bf16.msra.mxu1 %v13294_v57  ;;  %v15355_v13 = vpack.c.bf16 %v13385_v18, %v13355_v43  ;;  %v15372_v23 = vand.u32 4294901760, %v15346_v61  ;;  %v15376_v53 = vand.u32 4294901760, %v13270_v35  ;;  %v15380_v35 = vld [vmem:[#allocation16_spill] sm:$0xff]  ;;  %v3540_v61 = vld [vmem:[%s15017_s10 + $0x120] sm:$0xff] }
 0x5d7   : > { %4073 = vmatprep.mubr.f32.mxu0 %v3696_v46  ;;  %10946 = vmatprep.subr.bf16.mxu0 %v10945_v17  ;;  %v15350_v46 = vpack.c.bf16 %v13264_v21, %v13259_v56  ;;  %v15357_v17 = vpack.c.bf16 %v13432_v44, %v13420_v40  ;;  %v15360_v44 = vpack.c.bf16 %v13527_v6, %v13525_v38  ;;  %v15382_v38 = vmov 0.0|0.0  }
 0x5d8   : > { %10986 = vmatprep.subr.bf16.mxu1 %v13377_v58  ;;  %v11005_v43 = vpack.c.bf16 %v15362_v30, %v15361_v4  ;;  %v11009_v6 = vpack.c.bf16 %v15367_v29, %v15366_v49  ;;  %v3591_v40 = vmax.f32 %v13624_v8, %v13628_v63  ;;  %v15386_v63 = vld [vmem:[#allocation4_spill] sm:$0xff] }
 0x5da   : > { %10948 = vmatpush3.bf16.msra.mxu0 %v10947_v3  ;;  %10988 = vmatpush3.bf16.msra.mxu1 %v15345_v9  ;;  %v3593_v8 = vsel %vm3545_vm12, %v3591_v40, 0 }
 0x5db   : > { %10950 = vmatprep.subr.bf16.mxu0 %v10949_v0  ;;  %10990 = vmatprep.subr.bf16.mxu1 %v15348_v2 }
 0x5de   : > { %10952 = vmatpush3.bf16.msra.mxu0 %v10951_v10  ;;  %10992 = vmatpush3.bf16.msra.mxu1 %v15349_v22  ;;  %v13788_v10 = vand.u32 4294901760, %v3593_v8 }
 0x5df   : > { %10954 = vmatprep.subr.bf16.mxu0 %v15350_v46  ;;  %10994 = vmatprep.subr.bf16.mxu1 %v15351_v1 }
 0x5e2   : > { %10956 = vmatpush3.bf16.msra.mxu0 %v15352_v27  ;;  %10996 = vmatpush3.bf16.msra.mxu1 %v15353_v55 }
 0x5e3   : > { %10958 = vmatprep.subr.bf16.mxu0 %v15354_v16  ;;  %10998 = vmatprep.subr.bf16.mxu1 %v13540_v48 }
 0x5e6   : > { %10960 = vmatpush3.bf16.msra.mxu0 %v15355_v13  ;;  %11000 = vmatpush3.bf16.msra.mxu1 %v13548_v37 }
 0x5e7   : > { %10962 = vmatprep.subr.bf16.mxu0 %v15356_v34  ;;  %11002 = vmatprep.subr.bf16.mxu1 %v13550_v24  ;;  %v13810_v34 = vsub.f32 %v3593_v8, %v13788_v10 }
 0x5ea   : > { %10964 = vmatpush3.bf16.msra.mxu0 %v15357_v17  ;;  %11004 = vmatpush3.bf16.msra.mxu1 %v13555_v7 }
 0x5eb   : > { %10966 = vmatprep.subr.bf16.mxu0 %v15358_v60  ;;  %11038 = vmatprep.subr.bf16.mxu1 %v13181_v15  ;;  %v15363_v15 = vpack.c.bf16 %v13543_v26, %v13538_v19  ;;  %v15368_v26 = vand.u32 4294901760, %v13125_v39  ;;  %v15374_v39 = vand.u32 4294901760, %v13259_v56  ;;  %v15378_v56 = vld [vmem:[#allocation14_spill] sm:$0xff]  ;;  %v15383_v19 = vld [vmem:[#allocation8_spill] sm:$0xff] }
 0x5ed   : > { %4184 = vmatmul.mubr.f32.vlgmr.msra.gmra.mrb[6].mxu1 %v3703_v42 }
 0x5ee   : > { %10968 = vmatpush3.bf16.msra.mxu0 %v15359_v33  ;;  %11040 = vmatpush3.bf16.msra.mxu1 %v13189_v28  ;;  %v11007_v28 = vpack.c.bf16 %v15365_v41, %v15364_v32 }
 0x5ef   : > { %4454 = vmatprep.mubr.f32.mxu1 %v13634_v52  ;;  %10970 = vmatprep.subr.bf16.mxu0 %v15360_v44  ;;  %v3544_v44 = vld [vmem:[%s15017_s10 + $0x140] sm:$0xf] }
 0x5f0   : > { %11042 = vmatprep.subr.bf16.mxu1 %v13223_v59  ;;  %v15369_v59 = vand.u32 4294901760, %v13133_v51  ;;  %v15375_v51 = vand.u32 4294901760, %v13264_v21  ;;  %v15379_v21 = vld [vmem:[#allocation12_spill] sm:$0xff]  ;;  %v3597_v29 = vsel %vm3595_vm13, %v3544_v44, 0 }
 0x5f2   : > { %10972 = vmatpush3.bf16.msra.mxu0 %v15363_v15  ;;  %11044 = vmatpush3.bf16.msra.mxu1 %v13239_v45  ;;  %v11011_v20 = vpack.c.bf16 %v15369_v59, %v15368_v26  ;;  %v15371_v45 = vand.u32 4294901760, %v13194_v62  ;;  %v15377_v62 = vand.u32 4294901760, %v13276_v12  ;;  %v15381_v12 = vld [vmem:[#allocation15_spill] sm:$0xff] }
 0x5f3   : > { %11006 = vmatprep.subr.bf16.mxu0 %v11005_v43  ;;  %11046 = vmatprep.subr.bf16.mxu1 %v13282_v31  ;;  %v15373_v31 = vand.u32 4294901760, %v15347_v50  ;;  %v3541_v50 = vld [vmem:[%s15017_s10 + $0x128] sm:$0xff] }
 0x5f4   : > { %v11013_v5 = vpack.c.bf16 %v15371_v45, %v15370_v11  ;;  %v4477_v46 = vand.u32 4294901760, %v3541_v50 }
 0x5f5   : > { %4076 = vmatmul.mubr.f32.vlgmr.msra.gmra.mrb[8].mxu0 %v3702_v54  ;;  %v11015_v18 = vpack.c.bf16 %v15373_v31, %v15372_v23 }
 0x5f6   : > { %11008 = vmatpush3.bf16.msra.mxu0 %v11007_v28  ;;  %4350 = vmatprep.mubr.f32.mxu0 %v13634_v52  ;;  %v15385_v52 = vmov 0.0   ;;  %v13829_v41 = vsub.f32 %v3541_v50, %v4477_v46  ;;  %v4537_v28 = vand.u32 4294901760, %v13810_v34 }
 0x5f7   : > { %11048 = vmatpush3.bf16.msra.mxu1 %v13294_v57  ;;  %11010 = vmatprep.subr.bf16.mxu0 %v11009_v6  ;;  %v11017_v57 = vpack.c.bf16 %v15375_v51, %v15374_v39 }
 0x5f8   : > { %11050 = vmatprep.subr.bf16.mxu1 %v13377_v58  ;;  %v11019_v58 = vpack.c.bf16 %v15377_v62, %v15376_v53  ;;  %v4583_v23 = vand.u32 4294901760, %v13829_v41  ;;  %v4538_v31 = vsub.f32 %v13810_v34, %v4537_v28 }
 0x5fa   : > { %11012 = vmatpush3.bf16.msra.mxu0 %v11011_v20  ;;  %v4584_v62 = vsub.f32 %v13829_v41, %v4583_v23 }
 0x5fb   : > { %11052 = vmatpush3.bf16.msra.mxu1 %v15345_v9  ;;  %11014 = vmatprep.subr.bf16.mxu0 %v11013_v5 }
 0x5fc   : > { %11054 = vmatprep.subr.bf16.mxu1 %v15348_v2 }
 0x5fe   : > { %11016 = vmatpush3.bf16.msra.mxu0 %v11015_v18  ;;  %v13853_v18 = vand.u32 4294901760, %v3597_v29 }
 0x5ff   : > { %11056 = vmatpush3.bf16.msra.mxu1 %v15349_v22  ;;  %11018 = vmatprep.subr.bf16.mxu0 %v11017_v57  ;;  %v4474_v22 = vand.u32 4294901760, %v3540_v61 }
 0x600   : > { %11058 = vmatprep.subr.bf16.mxu1 %v15351_v1 }
 0x601   : > { %v13813_v17 = vpack.c.bf16 %v4477_v46, %v4474_v22  ;;  %v13827_v32 = vsub.f32 %v3540_v61, %v4474_v22 }
 0x602   : > { %11020 = vmatpush3.bf16.msra.mxu0 %v11019_v58 }
 0x603   : > { %11060 = vmatpush3.bf16.msra.mxu1 %v15353_v55  ;;  %11022 = vmatprep.subr.bf16.mxu0 %v15378_v56  ;;  %v3542_v55 = vld [vmem:[%s15017_s10 + $0x130] sm:$0xff]  ;;  %v4576_v5 = vand.u32 4294901760, %v13827_v32  ;;  %v11100_v61 = vpack.c.bf16 %v13829_v41, %v13827_v32 }
 0x604   : > { %11062 = vmatprep.subr.bf16.mxu1 %v13540_v48  ;;  %v4462_v48 = vand.u32 4294901760, %v3536_v14  ;;  %v4480_v60 = vand.u32 4294901760, %v3542_v55 }
 0x605   : > { %v4577_v53 = vsub.f32 %v13827_v32, %v4576_v5 }
 0x606   : > { %11024 = vmatpush3.bf16.msra.mxu0 %v15379_v21  ;;  %v13778_v0 = vsub.f32 %v3536_v14, %v4462_v48  ;;  %v13843_v11 = vsub.f32 %v3542_v55, %v4480_v60  ;;  %v4539_v21 = vand.u32 4294901760, %v4538_v31 }
 0x607   : > { %11064 = vmatpush3.bf16.msra.mxu1 %v13548_v37  ;;  %11026 = vmatprep.subr.bf16.mxu0 %v15380_v35  ;;  %v4465_v37 = vand.u32 4294901760, %v3537_v25  ;;  %v13866_v35 = vsub.f32 %v3597_v29, %v13853_v18  ;;  %v4578_v14 = vand.u32 4294901760, %v4577_v53 }
 0x608   : > { %11066 = vmatprep.subr.bf16.mxu1 %v13550_v24  ;;  %v15384_v24 = vld [vmem:[#allocation3_spill] sm:$0xff]  ;;  %v4548_v16 = vand.u32 4294901760, %v13778_v0  ;;  %v4590_v58 = vand.u32 4294901760, %v13843_v11 }
 0x609   : > { %v13775_v54 = vpack.c.bf16 %v4465_v37, %v4462_v48  ;;  %v13780_v9 = vsub.f32 %v3537_v25, %v4465_v37  ;;  %v4585_v25 = vand.u32 4294901760, %v4584_v62 }
 0x60a   : > { %11028 = vmatpush3.bf16.msra.mxu0 %v15381_v12  ;;  %v4549_v4 = vsub.f32 %v13778_v0, %v4548_v16  ;;  %v4591_v40 = vsub.f32 %v13843_v11, %v4590_v58 }
 0x60b   : > { %11068 = vmatpush3.bf16.msra.mxu1 %v13555_v7  ;;  %11030 = vmatprep.subr.bf16.mxu0 %v13611_v47  ;;  %v3538_v7 = vld [vmem:[%s15017_s10 + $0x110] sm:$0xff]  ;;  %v3539_v47 = vld [vmem:[%s15017_s10 + $0x118] sm:$0xff]  ;;  %v4555_v13 = vand.u32 4294901760, %v13780_v9  ;;  %v11088_v48 = vpack.c.bf16 %v4585_v25, %v4578_v14 }
 0x60c   : > { %11141 = vmatprep.subr.bf16.mxu1 %v15382_v38  ;;  %v4468_v42 = vand.u32 4294901760, %v3538_v7  ;;  %v4471_v3 = vand.u32 4294901760, %v3539_v47  ;;  %v4550_v6 = vand.u32 4294901760, %v4549_v4  ;;  %v4592_v37 = vand.u32 4294901760, %v4591_v40 }
 0x60d   : > { %v4556_v30 = vsub.f32 %v13780_v9, %v4555_v13  ;;  %v11118_v22 = vpack.c.bf16 %v4555_v13, %v4548_v16 }
 0x60e   : > { %4456 = vmatmul.mubr.f32.vlgmr.msra.gmra.mrb[8].mxu1 %v13639_v36  ;;  %11032 = vmatpush3.bf16.msra.mxu0 %v15383_v19  ;;  %v13792_v2 = vpack.c.bf16 %v4471_v3, %v4468_v42  ;;  %v13797_v1 = vsub.f32 %v3538_v7, %v4468_v42  ;;  %v13799_v27 = vsub.f32 %v3539_v47, %v4471_v3  ;;  %v4604_v7 = vand.u32 4294901760, %v13866_v35 }
 0x60f   : > { %11034 = vmatprep.subr.bf16.mxu0 %v15384_v24  ;;  %9779 = vmatprep.mubr.msk.f32.mxu1 %vm11742_vm11, %v15385_v52  ;;  %v4557_v26 = vand.u32 4294901760, %v4556_v30  ;;  %v11094_v42 = vpack.c.bf16 %v13780_v9, %v13778_v0  ;;  %v11124_v0 = vpack.c.bf16 %v4583_v23, %v4576_v5  ;;  %v5045_v5 = vld [vmem:[%s15019_s12] sm:$0xff] }
 0x610   : > { %v4562_v43 = vand.u32 4294901760, %v13797_v1  ;;  %v4569_v15 = vand.u32 4294901760, %v13799_v27  ;;  %v4605_v8 = vsub.f32 %v13866_v35, %v4604_v7  ;;  %v11097_v3 = vpack.c.bf16 %v13799_v27, %v13797_v1  ;;  %v5011_v23 = vld [vmem:[%s15018_s11] sm:$0xff] }
 0x611   : > { %v11082_v39 = vpack.c.bf16 %v4557_v26, %v4550_v6 }
 0x612   : > { %11036 = vmatpush3.bf16.msra.mxu0 %v15386_v63  ;;  %v4563_v59 = vsub.f32 %v13797_v1, %v4562_v43  ;;  %v4570_v20 = vsub.f32 %v13799_v27, %v4569_v15  ;;  %v4606_v63 = vand.u32 4294901760, %v4605_v8  ;;  %v11121_v46 = vpack.c.bf16 %v4569_v15, %v4562_v43 }
 0x613   : > { %11069 = vmatprep.subr.bf16.mxu0 %v15382_v38 }
 0x614   : > { %v4564_v51 = vand.u32 4294901760, %v4563_v59  ;;  %v4571_v57 = vand.u32 4294901760, %v4570_v20 }
 0x615   : > { %4352 = vmatmul.mubr.f32.vlgmr.msra.gmra.mrb[10].mxu0 %v13639_v36  ;;  %v3543_v36 = vld [vmem:[%s15017_s10 + $0x138] sm:$0xff] }
 0x616   : > { %11071 = vmatpush3.bf16.msra.mxu0 %v13775_v54  ;;  %9653 = vmatprep.mubr.msk.f32.mxu0 %vm11742_vm11, %v15385_v52  ;;  %v4483_v33 = vand.u32 4294901760, %v3543_v36  ;;  %v11085_v12 = vpack.c.bf16 %v4571_v57, %v4564_v51 }
 0x617   : > { %11072 = vmatprep.subr.bf16.mxu0 %v15382_v38 }
 0x618   : > { %v13833_v49 = vpack.c.bf16 %v4483_v33, %v4480_v60  ;;  %v13845_v45 = vsub.f32 %v3543_v36, %v4483_v33 }
 0x61a   : > { %11074 = vmatpush3.bf16.msra.mxu0 %v13792_v2  ;;  %v4597_v56 = vand.u32 4294901760, %v13845_v45  ;;  %v11103_v50 = vpack.c.bf16 %v13845_v45, %v13843_v11 }
 0x61b   : > { %11075 = vmatprep.subr.bf16.mxu0 %v15382_v38 }
 0x61c   : > { %v4598_v19 = vsub.f32 %v13845_v45, %v4597_v56  ;;  %v11127_v9 = vpack.c.bf16 %v4597_v56, %v4590_v58 }
 0x61e   : > { %11077 = vmatpush3.bf16.msra.mxu0 %v13813_v17  ;;  %v4599_v24 = vand.u32 4294901760, %v4598_v19 }
 0x61f   : > { %11078 = vmatprep.subr.bf16.mxu0 %v15382_v38 }
 0x620   : > { %v11091_v47 = vpack.c.bf16 %v4599_v24, %v4592_v37 }
 0x622   : > { %11080 = vmatpush3.bf16.msra.mxu0 %v13833_v49 }
 0x623   : > { %9651 = vmatprep.subr.mxu0 %v15385_v52 }
 0x626   : > { %9652 = vmatpush3.msra.mxu0 %v13853_v18 }
 0x627   : > { %9654 = vmatmul.mubr.f32.vlgmr.msra.gmra.mrb[12].mxu0 %v4539_v21  ;;  %11081 = vmatprep.subr.bf16.mxu0 %v15382_v38 }
 0x628   : > { %11083 = vmatpush3.bf16.msra.mxu0 %v11082_v39  ;;  %9674 = vmatprep.mubr.msk.f32.mxu0 %vm11742_vm11, %v15385_v52  ;;  %v5052_v39 = vsel %vm828_vm2, %v5011_v23, 0 }
 0x629   : > { %11084 = vmatprep.subr.bf16.mxu0 %v15382_v38  ;;  %v13978_v62 = vand.u32 4294901760, %v5052_v39 }
 0x62b   : > { %v13987_v25 = vsub.f32 %v5052_v39, %v13978_v62 }
 0x62c   : > { %11086 = vmatpush3.bf16.msra.mxu0 %v11085_v12 }
 0x62d   : > { %11087 = vmatprep.subr.bf16.mxu0 %v15382_v38  ;;  %v5130_v8 = vand.u32 4294901760, %v13987_v25 }
 0x630   : > { %11089 = vmatpush3.bf16.msra.mxu0 %v11088_v48 }
 0x631   : > { %11090 = vmatprep.subr.bf16.mxu0 %v15382_v38 }
 0x634   : > { %11092 = vmatpush3.bf16.msra.mxu0 %v11091_v47 }
 0x635   : > { %9672 = vmatprep.subr.mxu0 %v15385_v52 }
 0x638   : > { %9673 = vmatpush3.msra.mxu0 %v4606_v63 }
 0x639   : > { %9675 = vmatmul.mubr.f32.vlgmr.msra.gmra.mrb[12].mxu0 %v13788_v10  ;;  %11093 = vmatprep.subr.bf16.mxu0 %v15382_v38 }
 0x63a   : > { %11095 = vmatpush3.bf16.msra.mxu0 %v11094_v42  ;;  %9695 = vmatprep.mubr.msk.f32.mxu0 %vm11742_vm11, %v15385_v52 }
 0x63b   : > { %11096 = vmatprep.subr.bf16.mxu0 %v15382_v38 }
 0x63e   : > { %11098 = vmatpush3.bf16.msra.mxu0 %v11097_v3 }
 0x63f   : > { %11099 = vmatprep.subr.bf16.mxu0 %v15382_v38 }
 0x642   : > { %11101 = vmatpush3.bf16.msra.mxu0 %v11100_v61 }
 0x643   : > { %11102 = vmatprep.subr.bf16.mxu0 %v15382_v38 }
 0x646   : > { %11104 = vmatpush3.bf16.msra.mxu0 %v11103_v50 }
 0x647   : > { %9693 = vmatprep.subr.mxu0 %v15385_v52 }
 0x64a   : > { %9694 = vmatpush3.msra.mxu0 %v13866_v35 }
 0x64b   : > { %9696 = vmatmul.mubr.f32.vlgmr.msra.gmra.mrb[12].mxu0 %v13810_v34  ;;  %11105 = vmatprep.subr.bf16.mxu0 %v15382_v38 }
 0x64c   : > { %11107 = vmatpush3.bf16.msra.mxu0 %v13775_v54  ;;  %9716 = vmatprep.mubr.msk.f32.mxu0 %vm11742_vm11, %v15385_v52 }
 0x64d   : > { %11108 = vmatprep.subr.bf16.mxu0 %v15382_v38 }
 0x650   : > { %11110 = vmatpush3.bf16.msra.mxu0 %v13792_v2 }
 0x651   : > { %11111 = vmatprep.subr.bf16.mxu0 %v15382_v38 }
 0x654   : > { %11113 = vmatpush3.bf16.msra.mxu0 %v13813_v17 }
 0x655   : > { %11114 = vmatprep.subr.bf16.mxu0 %v15382_v38 }
 0x658   : > { %11116 = vmatpush3.bf16.msra.mxu0 %v13833_v49 }
 0x659   : > { %9714 = vmatprep.subr.mxu0 %v15385_v52 }
 0x65c   : > { %9715 = vmatpush3.msra.mxu0 %v13853_v18 }
 0x65d   : > { %9717 = vmatmul.mubr.f32.vlgmr.msra.gmra.mrb[12].mxu0 %v4537_v28  ;;  %11117 = vmatprep.subr.bf16.mxu0 %v15382_v38 }
 0x65e   : > { %11119 = vmatpush3.bf16.msra.mxu0 %v11118_v22  ;;  %9737 = vmatprep.mubr.msk.f32.mxu0 %vm11742_vm11, %v15385_v52 }
 0x65f   : > { %11120 = vmatprep.subr.bf16.mxu0 %v15382_v38 }
 0x662   : > { %11122 = vmatpush3.bf16.msra.mxu0 %v11121_v46 }
 0x663   : > { %11123 = vmatprep.subr.bf16.mxu0 %v15382_v38 }
 0x666   : > { %11125 = vmatpush3.bf16.msra.mxu0 %v11124_v0 }
 0x667   : > { %11126 = vmatprep.subr.bf16.mxu0 %v15382_v38 }
 0x66a   : > { %11128 = vmatpush3.bf16.msra.mxu0 %v11127_v9 }
 0x66b   : > { %9735 = vmatprep.subr.mxu0 %v15385_v52 }
 0x66e   : > { %9736 = vmatpush3.msra.mxu0 %v4604_v7 }
 0x66f   : > { %9738 = vmatmul.mubr.f32.vlgmr.msra.gmra.mrb[12].mxu0 %v13788_v10  ;;  %11129 = vmatprep.subr.bf16.mxu0 %v15382_v38 }
 0x670   : > { %11131 = vmatpush3.bf16.msra.mxu0 %v13775_v54  ;;  %9758 = vmatprep.mubr.msk.f32.mxu0 %vm11742_vm11, %v15385_v52 }
 0x671   : > { %11132 = vmatprep.subr.bf16.mxu0 %v15382_v38 }
 0x674   : > { %11134 = vmatpush3.bf16.msra.mxu0 %v13792_v2 }
 0x675   : > { %11135 = vmatprep.subr.bf16.mxu0 %v15382_v38 }
 0x678   : > { %11137 = vmatpush3.bf16.msra.mxu0 %v13813_v17 }
 0x679   : > { %11138 = vmatprep.subr.bf16.mxu0 %v15382_v38 }
 0x67c   : > { %11140 = vmatpush3.bf16.msra.mxu0 %v13833_v49 }
 0x67d   : > { %9756 = vmatprep.subr.mxu0 %v15385_v52 }
 0x680   : > { %9757 = vmatpush3.msra.mxu0 %v13853_v18 }
 0x681   : > { %9759 = vmatmul.mubr.f32.vlgmr.msra.gmra.mrb[12].mxu0 %v13788_v10  ;;  %11213 = vmatprep.subr.bf16.mxu0 %v15382_v38 }
 0x682   : > { %9905 = vmatprep.mubr.msk.f32.mxu0 %vm11742_vm11, %v15385_v52 }
 0x6a0   : > { %v8820_v54 = vpop.f32.mrb[4].mxu1 }
 0x6a1   : > { %v8821_v2 = vpop.f32.mrb[5].mxu1 }
 0x6a2   : > { %v8822_v1 = vadd.f32 %v8821_v2, %v8820_v54  ;;  %v5131_v2 = vsub.f32 %v13987_v25, %v5130_v8 }
 0x6a8   : > { %v8785_v27 = vpop.f32.mrb[6].mxu0 }
 0x6a9   : > { %v8786_v55 = vpop.f32.mrb[7].mxu0 }
 0x6aa   : > { %v8787_v36 = vadd.f32 %v8786_v55, %v8785_v27 }
 0x6ac   : > { %v3940_v16 = vadd.f32 %v8822_v1, %v8787_v36 }
 0x6c0   : > { %v8890_v13 = vpop.f32.mrb[6].mxu1 }
 0x6c1   : > { %v8891_v34 = vpop.f32.mrb[7].mxu1 }
 0x6c2   : > { %v8892_v17 = vadd.f32 %v8891_v34, %v8890_v13 }
 0x6c8   : > { %v8855_v60 = vpop.f32.mrb[8].mxu0 }
 0x6c9   : > { %v8856_v33 = vpop.f32.mrb[9].mxu0 }
 0x6ca   : > { %v8857_v44 = vadd.f32 %v8856_v33, %v8855_v60  ;;  %v5132_v60 = vand.u32 4294901760, %v5131_v2 }
 0x6cc   : > { %v4078_v4 = vadd.f32 %v8857_v44, %v3940_v16 }
 0x6ce   : > { %v4186_v10 = vadd.f32 %v8892_v17, %v4078_v4 }
 0x6e1   : > { %v8960_v30 = vpop.f32.mrb[8].mxu1 }
 0x6e2   : > { %v8961_v43 = vpop.f32.mrb[9].mxu1 }
 0x6e3   : > { %v8962_v15 = vadd.f32 %v8961_v43, %v8960_v30 }
 0x6e8   : > { %v8925_v32 = vpop.f32.mrb[10].mxu0 }
 0x6e9   : > { %v8926_v41 = vpop.f32.mrb[11].mxu0 }
 0x6ea   : > { %v8927_v28 = vadd.f32 %v8926_v41, %v8925_v32 }
 0x6ec   : > { %v4354_v49 = vadd.f32 %v8927_v28, %v4186_v10 }
 0x6ee   : > { %v4458_v29 = vadd.f32 %v8962_v15, %v4354_v49 }
 0x754   : > { %v5007_v6 = vpop.f32.mrb[12].mxu0 }
 0x755   : > { %v13955_v26 = vadd.f32 %v5007_v6, %v4458_v29  ;;  %v9760_v59 = vpop.f32.mrb[13].mxu0 }
 0x757   : > { %5013 = vrot.lane.b32.xlu0 %v13955_v26, %s11743_s4 }
 0x7c9   : > { %v5014_v20 = vpop.permute.xlu0 %5013 }
 0x7ca   : > { %v5017_v11 = vsel %vm5016_vm14, 0.0, %v5014_v20 }
 0x7cb   : > { %v5019_v45 = vsel %vm5018_vm15, %v5017_v11, 0.0 }
 0x7cc   : > { %5024 = vrot.lane.b32.xlu0 %v5019_v45, %s15387_s23  ;;  %5021 = vrot.lane.b32.xlu1 %v5019_v45, %s11733_s28  ;;  %v5055_v51 = vand.u32 4294901760, %v5019_v45 }
 0x7ce   : > { %v13984_v14 = vsub.f32 %v5019_v45, %v5055_v51 }
 0x7d0   : > { %5030 = vrot.lane.b32.xlu0 %v5019_v45, %s15168_s5  ;;  %5027 = vrot.lane.b32.xlu1 %v5019_v45, %s11745_s1  ;;  %v5141_v63 = vand.u32 4294901760, %v13984_v14 }
 0x7d2   : > { %v5142_v1 = vsub.f32 %v13984_v14, %v5141_v63 }
 0x7d4   : > { %5036 = vrot.lane.b32.xlu0 %v5019_v45, %s15388_s22  ;;  %5033 = vrot.lane.b32.xlu1 %v5019_v45, %s15166_s27  ;;  %v5143_v33 = vand.u32 4294901760, %v5142_v1 }
 0x7d8   : > { %5042 = vrot.lane.b32.xlu0 %v5019_v45, %s11747_s0  ;;  %5039 = vrot.lane.b32.xlu1 %v5019_v45, %s11748_s30 }
 0x7dc   : > { %5048 = vperm.xlu1 %11721, %v5045_v5  }
 0x83e   : > { %v5025_v31 = vpop.permute.xlu0 %5024  ;;  %v5022_v18 = vpop.permute.xlu1 %5021 }
 0x83f   : > { %v5058_v57 = vand.u32 4294901760, %v5022_v18  ;;  %v5061_v21 = vand.u32 4294901760, %v5025_v31 }
 0x841   : > { %v13976_v53 = vpack.c.bf16 %v5058_v57, %v5055_v51  ;;  %v13981_v35 = vsub.f32 %v5022_v18, %v5058_v57  ;;  %v13998_v42 = vsub.f32 %v5025_v31, %v5061_v21 }
 0x842   : > { %v5031_v58 = vpop.permute.xlu0 %5030  ;;  %v5028_v56 = vpop.permute.xlu1 %5027 }
 0x843   : > { %11143 = vmatpush3.bf16.msra.mxu1 %v13976_v53  ;;  %v5064_v12 = vand.u32 4294901760, %v5028_v56  ;;  %v5148_v48 = vand.u32 4294901760, %v13981_v35  ;;  %v5067_v37 = vand.u32 4294901760, %v5031_v58  ;;  %v5155_v27 = vand.u32 4294901760, %v13998_v42 }
 0x844   : > { %11144 = vmatprep.subr.bf16.mxu1 %v15382_v38 }
 0x845   : > { %v13989_v40 = vpack.c.bf16 %v5064_v12, %v5061_v21  ;;  %v13992_v24 = vsub.f32 %v5028_v56, %v5064_v12  ;;  %v5149_v46 = vsub.f32 %v13981_v35, %v5148_v48  ;;  %v14019_v55 = vsub.f32 %v5031_v58, %v5067_v37 }
 0x846   : > { %v5034_v19 = vpop.permute.xlu1 %5033  ;;  %v5037_v7 = vpop.permute.xlu0 %5036  ;;  %v5156_v44 = vsub.f32 %v13998_v42, %v5155_v27  ;;  %v11166_v56 = vpack.c.bf16 %v13981_v35, %v13984_v14 }
 0x847   : > { %v5070_v47 = vand.u32 4294901760, %v5034_v19  ;;  %11146 = vmatpush3.bf16.msra.mxu1 %v13989_v40  ;;  %v5073_v50 = vand.u32 4294901760, %v5037_v7  ;;  %v5162_v0 = vand.u32 4294901760, %v13992_v24  ;;  %v5150_v16 = vand.u32 4294901760, %v5149_v46 }
 0x848   : > { %11147 = vmatprep.subr.bf16.mxu1 %v15382_v38  ;;  %v5169_v4 = vand.u32 4294901760, %v14019_v55  ;;  %v5157_v28 = vand.u32 4294901760, %v5156_v44  ;;  %v11169_v21 = vpack.c.bf16 %v13992_v24, %v13998_v42 }
 0x849   : > { %v14000_v3 = vpack.c.bf16 %v5070_v47, %v5067_v37  ;;  %v14006_v9 = vsub.f32 %v5034_v19, %v5070_v47  ;;  %v5163_v13 = vsub.f32 %v13992_v24, %v5162_v0  ;;  %v14033_v10 = vsub.f32 %v5037_v7, %v5073_v50  ;;  %v14134_v24 = vld [vmem:[%s15389_s29] ss:$0 sm:$0xff]  ;;  %s15392_s29 = sld [smem:[#allocation22_spill]] }
 0x84a   : > { %v5040_v61 = vpop.permute.xlu1 %5039  ;;  %v5043_v36 = vpop.permute.xlu0 %5042  ;;  %v11154_v41 = vpack.c.bf16 %v5150_v16, %v5143_v33  ;;  %v5170_v49 = vsub.f32 %v14019_v55, %v5169_v4  ;;  %v11190_v37 = vpack.c.bf16 %v5148_v48, %v5141_v63  ;;  %v11193_v7 = vpack.c.bf16 %v5162_v0, %v5155_v27 }
 0x84b   : > { %v5076_v22 = vand.u32 4294901760, %v5040_v61  ;;  %11149 = vmatpush3.bf16.msra.mxu1 %v14000_v3  ;;  %v5176_v34 = vand.u32 4294901760, %v14006_v9  ;;  %v14035_v30 = vand.u32 4294901760, %v5043_v36  ;;  %v5164_v43 = vand.u32 4294901760, %v5163_v13 }
 0x84c   : > { %11150 = vmatprep.subr.bf16.mxu1 %v15382_v38  ;;  %v5183_v29 = vand.u32 4294901760, %v14033_v10  ;;  %v5171_v45 = vand.u32 4294901760, %v5170_v49  ;;  %v11172_v12 = vpack.c.bf16 %v14006_v9, %v14019_v55 }
 0x84d   : > { %v14009_v54 = vpack.c.bf16 %v5076_v22, %v5073_v50  ;;  %v14025_v17 = vsub.f32 %v5040_v61, %v5076_v22  ;;  %v5177_v15 = vsub.f32 %v14006_v9, %v5176_v34  ;;  %v5196_v59 = vsub.f32 %v5043_v36, %v14035_v30  ;;  %v5612_v22 = vld [vmem:[%s15020_s13] sm:$0xff] }
 0x84e   : > { %v11157_v11 = vpack.c.bf16 %v5164_v43, %v5157_v28  ;;  %v5184_v5 = vsub.f32 %v14033_v10, %v5183_v29  ;;  %v11196_v35 = vpack.c.bf16 %v5176_v34, %v5169_v4  ;;  %v5651_v9 = vsel %vm828_vm2, %v5612_v22, 0 }
 0x84f   : > { %11152 = vmatpush3.bf16.msra.mxu1 %v14009_v54  ;;  %v5190_v32 = vand.u32 4294901760, %v14025_v17  ;;  %v5178_v6 = vand.u32 4294901760, %v5177_v15  ;;  %v5197_v23 = vand.u32 4294901760, %v5196_v59  ;;  %v11175_v19 = vpack.c.bf16 %v14025_v17, %v14033_v10 }
 0x850   : > { %9777 = vmatprep.subr.mxu1 %v15385_v52  ;;  %v5185_v39 = vand.u32 4294901760, %v5184_v5  ;;  %v14164_v16 = vand.u32 4294901760, %v5651_v9 }
 0x851   : > { %v5191_v20 = vsub.f32 %v14025_v17, %v5190_v32  ;;  %v11160_v18 = vpack.c.bf16 %v5178_v6, %v5171_v45  ;;  %v5198_v51 = vsub.f32 %v5196_v59, %v5197_v23  ;;  %v11199_v14 = vpack.c.bf16 %v5190_v32, %v5183_v29 }
 0x852   : > { %v14179_v43 = vsub.f32 %v5651_v9, %v14164_v16 }
 0x853   : > { %9778 = vmatpush3.msra.mxu1 %v14035_v30  ;;  %v5192_v31 = vand.u32 4294901760, %v5191_v20  ;;  %v5199_v58 = vand.u32 4294901760, %v5198_v51 }
 0x854   : > { %11153 = vmatprep.subr.bf16.mxu1 %v15382_v38  ;;  %9780 = vmatmul.mubr.f32.vlgmr.msra.gmra.mrb[10].mxu1 %v5132_v60 }
 0x855   : > { %11155 = vmatpush3.bf16.msra.mxu1 %v11154_v41  ;;  %9800 = vmatprep.mubr.msk.f32.mxu1 %vm11742_vm11, %v15385_v52  ;;  %v11163_v57 = vpack.c.bf16 %v5192_v31, %v5185_v39  ;;  %v5729_v31 = vand.u32 4294901760, %v14179_v43 }
 0x856   : > { %11156 = vmatprep.subr.bf16.mxu1 %v15382_v38 }
 0x859   : > { %11158 = vmatpush3.bf16.msra.mxu1 %v11157_v11 }
 0x85a   : > { %11159 = vmatprep.subr.bf16.mxu1 %v15382_v38 }
 0x85d   : > { %11161 = vmatpush3.bf16.msra.mxu1 %v11160_v18 }
 0x85e   : > { %11162 = vmatprep.subr.bf16.mxu1 %v15382_v38 }
 0x861   : > { %11164 = vmatpush3.bf16.msra.mxu1 %v11163_v57 }
 0x862   : > { %9798 = vmatprep.subr.mxu1 %v15385_v52 }
 0x865   : > { %9799 = vmatpush3.msra.mxu1 %v5199_v58 }
 0x866   : > { %11165 = vmatprep.subr.bf16.mxu1 %v15382_v38  ;;  %9801 = vmatmul.mubr.f32.vlgmr.msra.gmra.mrb[10].mxu1 %v13978_v62 }
 0x867   : > { %11167 = vmatpush3.bf16.msra.mxu1 %v11166_v56  ;;  %9821 = vmatprep.mubr.msk.f32.mxu1 %vm11742_vm11, %v15385_v52 }
 0x868   : > { %11168 = vmatprep.subr.bf16.mxu1 %v15382_v38 }
 0x86b   : > { %11170 = vmatpush3.bf16.msra.mxu1 %v11169_v21 }
 0x86c   : > { %11171 = vmatprep.subr.bf16.mxu1 %v15382_v38 }
 0x86f   : > { %11173 = vmatpush3.bf16.msra.mxu1 %v11172_v12 }
 0x870   : > { %11174 = vmatprep.subr.bf16.mxu1 %v15382_v38 }
 0x873   : > { %11176 = vmatpush3.bf16.msra.mxu1 %v11175_v19 }
 0x874   : > { %9819 = vmatprep.subr.mxu1 %v15385_v52 }
 0x877   : > { %9820 = vmatpush3.msra.mxu1 %v5196_v59 }
 0x878   : > { %11177 = vmatprep.subr.bf16.mxu1 %v15382_v38  ;;  %9822 = vmatmul.mubr.f32.vlgmr.msra.gmra.mrb[10].mxu1 %v13987_v25 }
 0x879   : > { %11179 = vmatpush3.bf16.msra.mxu1 %v13976_v53  ;;  %9842 = vmatprep.mubr.msk.f32.mxu1 %vm11742_vm11, %v15385_v52 }
 0x87a   : > { %11180 = vmatprep.subr.bf16.mxu1 %v15382_v38 }
 0x87d   : > { %11182 = vmatpush3.bf16.msra.mxu1 %v13989_v40 }
 0x87e   : > { %11183 = vmatprep.subr.bf16.mxu1 %v15382_v38 }
 0x881   : > { %11185 = vmatpush3.bf16.msra.mxu1 %v14000_v3 }
 0x882   : > { %11186 = vmatprep.subr.bf16.mxu1 %v15382_v38 }
 0x885   : > { %11188 = vmatpush3.bf16.msra.mxu1 %v14009_v54 }
 0x886   : > { %9840 = vmatprep.subr.mxu1 %v15385_v52 }
 0x889   : > { %9841 = vmatpush3.msra.mxu1 %v14035_v30 }
 0x88a   : > { %11189 = vmatprep.subr.bf16.mxu1 %v15382_v38  ;;  %9843 = vmatmul.mubr.f32.vlgmr.msra.gmra.mrb[10].mxu1 %v5130_v8 }
 0x88b   : > { %11191 = vmatpush3.bf16.msra.mxu1 %v11190_v37  ;;  %9863 = vmatprep.mubr.msk.f32.mxu1 %vm11742_vm11, %v15385_v52 }
 0x88c   : > { %11192 = vmatprep.subr.bf16.mxu1 %v15382_v38 }
 0x88f   : > { %11194 = vmatpush3.bf16.msra.mxu1 %v11193_v7 }
 0x890   : > { %11195 = vmatprep.subr.bf16.mxu1 %v15382_v38 }
 0x893   : > { %11197 = vmatpush3.bf16.msra.mxu1 %v11196_v35 }
 0x894   : > { %11198 = vmatprep.subr.bf16.mxu1 %v15382_v38 }
 0x897   : > { %11200 = vmatpush3.bf16.msra.mxu1 %v11199_v14 }
 0x898   : > { %9861 = vmatprep.subr.mxu1 %v15385_v52 }
 0x89b   : > { %9862 = vmatpush3.msra.mxu1 %v5197_v23 }
 0x89c   : > { %11201 = vmatprep.subr.bf16.mxu1 %v15382_v38  ;;  %9864 = vmatmul.mubr.f32.vlgmr.msra.gmra.mrb[10].mxu1 %v13978_v62 }
 0x89d   : > { %11203 = vmatpush3.bf16.msra.mxu1 %v13976_v53  ;;  %9884 = vmatprep.mubr.msk.f32.mxu1 %vm11742_vm11, %v15385_v52  ;;  %v5049_v53 = vpop.permute.xlu1 %5048 }
 0x89e   : > { %11204 = vmatprep.subr.bf16.mxu1 %v15382_v38 }
 0x8a1   : > { %11206 = vmatpush3.bf16.msra.mxu1 %v13989_v40 }
 0x8a2   : > { %11207 = vmatprep.subr.bf16.mxu1 %v15382_v38 }
 0x8a5   : > { %11209 = vmatpush3.bf16.msra.mxu1 %v14000_v3  ;;  %v5644_v3 = vld [vmem:[%s15021_s14] sm:$0xff] }
 0x8a6   : > { %11210 = vmatprep.subr.bf16.mxu1 %v15382_v38 }
 0x8a9   : > { %11212 = vmatpush3.bf16.msra.mxu1 %v14009_v54 }
 0x8aa   : > { %9882 = vmatprep.subr.mxu1 %v15385_v52 }
 0x8ad   : > { %9883 = vmatpush3.msra.mxu1 %v14035_v30 }
 0x8ae   : > { %9885 = vmatmul.mubr.f32.vlgmr.msra.gmra.mrb[10].mxu1 %v13978_v62  ;;  %11225 = vmatprep.subr.bf16.mxu1 %v15382_v38 }
 0x8af   : > { %9926 = vmatprep.mubr.msk.f32.mxu1 %vm11742_vm11, %v15385_v52 }
 0x981   : > { %v5600_v25 = vpop.f32.mrb[10].mxu1 }
 0x982   : > { %v11585_v40 = vadd.f32 %v5600_v25, %v5049_v53  ;;  %v9886_v48 = vpop.f32.mrb[11].mxu1  ;;  %v5730_v25 = vsub.f32 %v14179_v43, %v5729_v31 }
 0x984   : > { %v5604_v47 = vmax.f32 %v11585_v40, 0.0 }
 0x986   : > { %v5611_v8 = vmul.f32 %v14134_v24, %v5604_v47 }
 0x988   : > { %5614 = vrot.lane.b32.xlu0 %v5611_v8, %s11743_s4  ;;  %s11749_s4 = smov 7  }
 0x9fa   : > { %v5615_v62 = vpop.permute.xlu0 %5614 }
 0x9fb   : > { %v5617_v63 = vsel %vm5016_vm14, 0.0, %v5615_v62 }
 0x9fc   : > { %v5618_v42 = vsel %vm5018_vm15, %v5617_v63, 0.0 }
 0x9fd   : > { %5623 = vrot.lane.b32.xlu0 %v5618_v42, %s15387_s23  ;;  %5620 = vrot.lane.b32.xlu1 %v5618_v42, %s11733_s28  ;;  %v5654_v61 = vand.u32 4294901760, %v5618_v42 }
 0x9ff   : > { %v14151_v50 = vsub.f32 %v5618_v42, %v5654_v61 }
 0xa01   : > { %5629 = vrot.lane.b32.xlu0 %v5618_v42, %s15168_s5  ;;  %5626 = vrot.lane.b32.xlu1 %v5618_v42, %s11745_s1  ;;  %v5740_v1 = vand.u32 4294901760, %v14151_v50  ;;  %s11754_s5 = smov 115  }
 0xa03   : > { %v5741_v33 = vsub.f32 %v14151_v50, %v5740_v1 }
 0xa05   : > { %5635 = vrot.lane.b32.xlu0 %v5618_v42, %s15388_s22  ;;  %5632 = vrot.lane.b32.xlu1 %v5618_v42, %s15166_s27  ;;  %v5742_v6 = vand.u32 4294901760, %v5741_v33  ;;  %s11752_s22 = smov 120  }
 0xa09   : > { %5641 = vrot.lane.b32.xlu0 %v5618_v42, %s11747_s0  ;;  %5638 = vrot.lane.b32.xlu1 %v5618_v42, %s11748_s30  ;;  %s11753_s0 = smov 114  }
 0xa0d   : > { %5647 = vperm.xlu1 %11721, %v5644_v3  }
 0xa6f   : > { %v5624_v46 = vpop.permute.xlu0 %5623  ;;  %v5621_v0 = vpop.permute.xlu1 %5620 }
 0xa70   : > { %v5660_v54 = vand.u32 4294901760, %v5624_v46  ;;  %v5657_v2 = vand.u32 4294901760, %v5621_v0 }
 0xa72   : > { %v14158_v27 = vsub.f32 %v5624_v46, %v5660_v54  ;;  %v14160_v55 = vpack.c.bf16 %v5657_v2, %v5654_v61  ;;  %v14162_v36 = vsub.f32 %v5621_v0, %v5657_v2  ;;  %v5731_v61 = vand.u32 4294901760, %v5730_v25 }
 0xa73   : > { %v5630_v13 = vpop.permute.xlu0 %5629  ;;  %v5627_v34 = vpop.permute.xlu1 %5626 }
 0xa74   : > { %v5747_v17 = vand.u32 4294901760, %v14162_v36  ;;  %v5666_v60 = vand.u32 4294901760, %v5630_v13  ;;  %11215 = vmatpush3.bf16.msra.mxu0 %v14160_v55  ;;  %v5754_v44 = vand.u32 4294901760, %v14158_v27  ;;  %v5663_v4 = vand.u32 4294901760, %v5627_v34 }
 0xa75   : > { %11216 = vmatprep.subr.bf16.mxu0 %v15382_v38 }
 0xa76   : > { %v5748_v10 = vsub.f32 %v14162_v36, %v5747_v17  ;;  %v14176_v30 = vsub.f32 %v5630_v13, %v5666_v60  ;;  %v14181_v15 = vpack.c.bf16 %v5663_v4, %v5660_v54  ;;  %v14183_v32 = vsub.f32 %v5627_v34, %v5663_v4 }
 0xa77   : > { %v5636_v41 = vpop.permute.xlu0 %5635  ;;  %v5633_v28 = vpop.permute.xlu1 %5632  ;;  %v5755_v59 = vsub.f32 %v14158_v27, %v5754_v44  ;;  %v11238_v54 = vpack.c.bf16 %v14162_v36, %v14151_v50  ;;  %v6207_v36 = vld [vmem:[%s15022_s15 + $0x8] sm:$0xff] }
 0xa78   : > { %v5749_v49 = vand.u32 4294901760, %v5748_v10  ;;  %v5672_v29 = vand.u32 4294901760, %v5636_v41  ;;  %v5768_v20 = vand.u32 4294901760, %v14176_v30  ;;  %v5761_v11 = vand.u32 4294901760, %v14183_v32  ;;  %11218 = vmatpush3.bf16.msra.mxu0 %v14181_v15 }
 0xa79   : > { %v5669_v45 = vand.u32 4294901760, %v5633_v28  ;;  %11219 = vmatprep.subr.bf16.mxu0 %v15382_v38  ;;  %v5756_v19 = vand.u32 4294901760, %v5755_v59  ;;  %v11241_v34 = vpack.c.bf16 %v14183_v32, %v14158_v27  ;;  %v11262_v10 = vpack.c.bf16 %v5747_v17, %v5740_v1  ;;  %v6208_v17 = vld [vmem:[%s15022_s15 + $0x10] sm:$0xff] }
 0xa7a   : > { %v14191_v5 = vsub.f32 %v5636_v41, %v5672_v29  ;;  %v11226_v23 = vpack.c.bf16 %v5749_v49, %v5742_v6  ;;  %v5762_v18 = vsub.f32 %v14183_v32, %v5761_v11  ;;  %v5769_v37 = vsub.f32 %v14176_v30, %v5768_v20  ;;  %v6211_v32 = vld [vmem:[%s15022_s15 + $0x28] sm:$0xff] }
 0xa7b   : > { %v14198_v39 = vpack.c.bf16 %v5669_v45, %v5666_v60  ;;  %v14200_v51 = vsub.f32 %v5633_v28, %v5669_v45  ;;  %v5642_v57 = vpop.permute.xlu0 %5641  ;;  %v5639_v58 = vpop.permute.xlu1 %5638  ;;  %v11265_v50 = vpack.c.bf16 %v5761_v11, %v5754_v44  ;;  %v6256_v49 = vand.u32 4294901760, %v6211_v32 }
 0xa7c   : > { %v5782_v56 = vand.u32 4294901760, %v14191_v5  ;;  %v14203_v21 = vand.u32 4294901760, %v5642_v57  ;;  %v5675_v12 = vand.u32 4294901760, %v5639_v58  ;;  %11227 = vmatpush3.bf16.msra.mxu1 %v11226_v23  ;;  %v5763_v7 = vand.u32 4294901760, %v5762_v18 }
 0xa7d   : > { %v5775_v35 = vand.u32 4294901760, %v14200_v51  ;;  %11221 = vmatpush3.bf16.msra.mxu0 %v14198_v39  ;;  %11228 = vmatprep.subr.bf16.mxu1 %v15382_v38  ;;  %v5770_v63 = vand.u32 4294901760, %v5769_v37  ;;  %v11244_v33 = vpack.c.bf16 %v14200_v51, %v14176_v30  ;;  %v6244_v30 = vand.u32 4294901760, %v6207_v36 }
 0xa7e   : > { %v14211_v14 = vpack.c.bf16 %v5675_v12, %v5672_v29  ;;  %v14213_v53 = vsub.f32 %v5639_v58, %v5675_v12  ;;  %11222 = vmatprep.subr.bf16.mxu0 %v15382_v38  ;;  %v14223_v48 = vsub.f32 %v5642_v57, %v14203_v21  ;;  %v11229_v47 = vpack.c.bf16 %v5763_v7, %v5756_v19 }
 0xa7f   : > { %v5776_v40 = vsub.f32 %v14200_v51, %v5775_v35  ;;  %v5783_v8 = vsub.f32 %v14191_v5, %v5782_v56  ;;  %v11268_v1 = vpack.c.bf16 %v5775_v35, %v5768_v20  ;;  %v14337_v59 = vsub.f32 %v6207_v36, %v6244_v30  ;;  %v6218_v36 = vld [vmem:[%s15022_s15 + $0x60] sm:$0xf] }
 0xa80   : > { %v5789_v62 = vand.u32 4294901760, %v14213_v53  ;;  %11230 = vmatpush3.bf16.msra.mxu1 %v11229_v47  ;;  %v5796_v22 = vand.u32 4294901760, %v14223_v48  ;;  %v11247_v4 = vpack.c.bf16 %v14213_v53, %v14191_v5  ;;  %v14348_v23 = vsub.f32 %v6211_v32, %v6256_v49  ;;  %v6213_v47 = vld [vmem:[%s15022_s15 + $0x38] sm:$0xff] }
 0xa81   : > { %v5777_v42 = vand.u32 4294901760, %v5776_v40  ;;  %11224 = vmatpush3.bf16.msra.mxu0 %v14211_v14  ;;  %11231 = vmatprep.subr.bf16.mxu1 %v15382_v38  ;;  %v5784_v0 = vand.u32 4294901760, %v5783_v8 }
 0xa82   : > { %v5790_v3 = vsub.f32 %v14213_v53, %v5789_v62  ;;  %9903 = vmatprep.subr.mxu0 %v15385_v52  ;;  %v5797_v13 = vsub.f32 %v14223_v48, %v5796_v22  ;;  %v11271_v27 = vpack.c.bf16 %v5789_v62, %v5782_v56  ;;  %v6262_v62 = vand.u32 4294901760, %v6213_v47 }
 0xa83   : > { %v11232_v46 = vpack.c.bf16 %v5777_v42, %v5770_v63 }
 0xa84   : > { %v5791_v9 = vand.u32 4294901760, %v5790_v3  ;;  %v5798_v60 = vand.u32 4294901760, %v5797_v13  ;;  %v6215_v13 = vld [vmem:[%s15022_s15 + $0x48] sm:$0xff] }
 0xa85   : > { %9904 = vmatpush3.msra.mxu0 %v14203_v21  ;;  %11233 = vmatpush3.bf16.msra.mxu1 %v11232_v46 }
 0xa86   : > { %9906 = vmatmul.mubr.f32.vlgmr.msra.gmra.mrb[14].mxu0 %v5731_v61  ;;  %11237 = vmatprep.subr.bf16.mxu0 %v15382_v38  ;;  %v11235_v2 = vpack.c.bf16 %v5791_v9, %v5784_v0  ;;  %v14367_v61 = vsub.f32 %v6213_v47, %v6262_v62 }
 0xa87   : > { %11239 = vmatpush3.bf16.msra.mxu0 %v11238_v54  ;;  %11234 = vmatprep.subr.bf16.mxu1 %v15382_v38 }
 0xa88   : > { %11240 = vmatprep.subr.bf16.mxu0 %v15382_v38  ;;  %9947 = vmatprep.mubr.msk.f32.mxu0 %vm11742_vm11, %v15385_v52 }
 0xa89   : > { %11236 = vmatpush3.bf16.msra.mxu1 %v11235_v2  ;;  %v6214_v2 = vld [vmem:[%s15022_s15 + $0x40] sm:$0xff] }
 0xa8a   : > { %9924 = vmatprep.subr.mxu1 %v15385_v52 }
 0xa8b   : > { %11242 = vmatpush3.bf16.msra.mxu0 %v11241_v34  ;;  %v6216_v34 = vld [vmem:[%s15022_s15 + $0x50] sm:$0xff] }
 0xa8c   : > { %11243 = vmatprep.subr.bf16.mxu0 %v15382_v38  ;;  %v5648_v51 = vpop.permute.xlu1 %5647 }
 0xa8d   : > { %9925 = vmatpush3.msra.mxu1 %v5798_v60  ;;  %v6265_v60 = vand.u32 4294901760, %v6214_v2 }
 0xa8e   : > { %9927 = vmatmul.mubr.f32.vlgmr.msra.gmra.mrb[12].mxu1 %v14164_v16  ;;  %11249 = vmatprep.subr.bf16.mxu1 %v15382_v38 }
 0xa8f   : > { %11245 = vmatpush3.bf16.msra.mxu0 %v11244_v33  ;;  %11251 = vmatpush3.bf16.msra.mxu1 %v14160_v55  ;;  %v6268_v33 = vand.u32 4294901760, %v6215_v13 }
 0xa90   : > { %11246 = vmatprep.subr.bf16.mxu0 %v15382_v38  ;;  %11252 = vmatprep.subr.bf16.mxu1 %v15382_v38 }
 0xa91   : > { %9968 = vmatprep.mubr.msk.f32.mxu1 %vm11742_vm11, %v15385_v52 }
 0xa93   : > { %11248 = vmatpush3.bf16.msra.mxu0 %v11247_v4  ;;  %11254 = vmatpush3.bf16.msra.mxu1 %v14181_v15  ;;  %v6271_v4 = vand.u32 4294901760, %v6216_v34 }
 0xa94   : > { %9945 = vmatprep.subr.mxu0 %v15385_v52  ;;  %11255 = vmatprep.subr.bf16.mxu1 %v15382_v38 }
 0xa97   : > { %9946 = vmatpush3.msra.mxu0 %v14223_v48  ;;  %11257 = vmatpush3.bf16.msra.mxu1 %v14198_v39  ;;  %v6212_v48 = vld [vmem:[%s15022_s15 + $0x30] sm:$0xff] }
 0xa98   : > { %9948 = vmatmul.mubr.f32.vlgmr.msra.gmra.mrb[16].mxu0 %v14179_v43  ;;  %11261 = vmatprep.subr.bf16.mxu0 %v15382_v38  ;;  %v6247_v43 = vand.u32 4294901760, %v6208_v17  ;;  %v6259_v8 = vand.u32 4294901760, %v6212_v48 }
 0xa99   : > { %11263 = vmatpush3.bf16.msra.mxu0 %v11262_v10  ;;  %11258 = vmatprep.subr.bf16.mxu1 %v15382_v38 }
 0xa9a   : > { %11264 = vmatprep.subr.bf16.mxu0 %v15382_v38  ;;  %9989 = vmatprep.mubr.msk.f32.mxu0 %vm11742_vm11, %v15385_v52  ;;  %v14339_v20 = vsub.f32 %v6208_v17, %v6247_v43  ;;  %v14363_v42 = vpack.c.bf16 %v6262_v62, %v6259_v8  ;;  %v14365_v3 = vsub.f32 %v6212_v48, %v6259_v8 }
 0xa9b   : > { %11260 = vmatpush3.bf16.msra.mxu1 %v14211_v14 }
 0xa9c   : > { %9966 = vmatprep.subr.mxu1 %v15385_v52 }
 0xa9d   : > { %11266 = vmatpush3.bf16.msra.mxu0 %v11265_v50  ;;  %v14391_v50 = vpack.c.bf16 %v6268_v33, %v6265_v60 }
 0xa9e   : > { %11267 = vmatprep.subr.bf16.mxu0 %v15382_v38 }
 0xa9f   : > { %9967 = vmatpush3.msra.mxu1 %v14203_v21 }
 0xaa0   : > { %9969 = vmatmul.mubr.f32.vlgmr.msra.gmra.mrb[14].mxu1 %v5729_v31  ;;  %11273 = vmatprep.subr.bf16.mxu1 %v15382_v38 }
 0xaa1   : > { %11269 = vmatpush3.bf16.msra.mxu0 %v11268_v1  ;;  %11275 = vmatpush3.bf16.msra.mxu1 %v14160_v55  ;;  %v6206_v55 = vld [vmem:[%s15022_s15] sm:$0xff]  ;;  %v14393_v1 = vsub.f32 %v6214_v2, %v6265_v60 }
 0xaa2   : > { %11270 = vmatprep.subr.bf16.mxu0 %v15382_v38  ;;  %11276 = vmatprep.subr.bf16.mxu1 %v15382_v38  ;;  %v6241_v44 = vand.u32 4294901760, %v6206_v55 }
 0xaa3   : > { %10010 = vmatprep.mubr.msk.f32.mxu1 %vm11742_vm11, %v15385_v52 }
 0xaa4   : > { %v14333_v29 = vpack.c.bf16 %v6244_v30, %v6241_v44  ;;  %v14335_v6 = vsub.f32 %v6206_v55, %v6241_v44  ;;  %v14397_v55 = vsub.f32 %v6216_v34, %v6271_v4  ;;  %v14410_v30 = vsel %vm3595_vm13, %v6218_v36, 0 }
 0xaa5   : > { %11272 = vmatpush3.bf16.msra.mxu0 %v11271_v27  ;;  %11278 = vmatpush3.bf16.msra.mxu1 %v14181_v15  ;;  %v6210_v15 = vld [vmem:[%s15022_s15 + $0x20] sm:$0xff]  ;;  %v14395_v27 = vsub.f32 %v6215_v13, %v6268_v33 }
 0xaa6   : > { %9987 = vmatprep.subr.mxu0 %v15385_v52  ;;  %11279 = vmatprep.subr.bf16.mxu1 %v15382_v38  ;;  %v6253_v28 = vand.u32 4294901760, %v6210_v15 }
 0xaa8   : > { %v14343_v45 = vsub.f32 %v6210_v15, %v6253_v28  ;;  %v14352_v31 = vpack.c.bf16 %v6256_v49, %v6253_v28  ;;  %v14424_v49 = vand.u32 4294901760, %v14410_v30 }
 0xaa9   : > { %9988 = vmatpush3.msra.mxu0 %v5796_v22  ;;  %11281 = vmatpush3.bf16.msra.mxu1 %v14198_v39 }
 0xaaa   : > { %9990 = vmatmul.mubr.f32.vlgmr.msra.gmra.mrb[18].mxu0 %v14164_v16  ;;  %11282 = vmatprep.subr.bf16.mxu1 %v15382_v38 }
 0xaab   : > { %11285 = vmatprep.subr.bf16.mxu0 %v15382_v38  ;;  %10039 = vmatprep.mubr.msk.f32.mxu0 %vm11742_vm11, %v15385_v52 }
 0xaac   : > { %11287 = vmatpush3.bf16.msra.mxu0 %v14333_v29 }
 0xaad   : > { %11284 = vmatpush3.bf16.msra.mxu1 %v14211_v14  ;;  %11288 = vmatprep.subr.bf16.mxu0 %v15382_v38 }
 0xaae   : > { %10008 = vmatprep.subr.mxu1 %v15385_v52 }
 0xab1   : > { %10009 = vmatpush3.msra.mxu1 %v14203_v21 }
 0xab2   : > { %10011 = vmatmul.mubr.f32.vlgmr.msra.gmra.mrb[16].mxu1 %v14164_v16  ;;  %11393 = vmatprep.subr.bf16.mxu1 %v15382_v38  ;;  %v6209_v16 = vld [vmem:[%s15022_s15 + $0x18] sm:$0xff] }
 0xab3   : > { %10205 = vmatprep.mubr.msk.f32.mxu1 %vm11742_vm11, %v15385_v52  ;;  %v6250_v41 = vand.u32 4294901760, %v6209_v16 }
 0xab5   : > { %v14341_v11 = vsub.f32 %v6209_v16, %v6250_v41  ;;  %v14346_v5 = vpack.c.bf16 %v6250_v41, %v6247_v43  ;;  %v6331_v16 = vand.u32 4294901760, %v14335_v6  ;;  %v6338_v43 = vand.u32 4294901760, %v14337_v59 }
 0xab6   : > { %v6345_v41 = vand.u32 4294901760, %v14339_v20 }
 0xab7   : > { %11290 = vmatpush3.bf16.msra.mxu0 %v14346_v5  ;;  %v6332_v15 = vsub.f32 %v14335_v6, %v6331_v16  ;;  %v6339_v32 = vsub.f32 %v14337_v59, %v6338_v43  ;;  %v6352_v28 = vand.u32 4294901760, %v14341_v11 }
 0xab8   : > { %11291 = vmatprep.subr.bf16.mxu0 %v15382_v38 }
 0xabb   : > { %11293 = vmatpush3.bf16.msra.mxu0 %v14352_v31 }
 0xabc   : > { %11294 = vmatprep.subr.bf16.mxu0 %v15382_v38 }
 0xabf   : > { %11296 = vmatpush3.bf16.msra.mxu0 %v14363_v42 }
 0xac0   : > { %11297 = vmatprep.subr.bf16.mxu0 %v15382_v38 }
 0xac3   : > { %11299 = vmatpush3.bf16.msra.mxu0 %v14391_v50 }
 0xac4   : > { %11300 = vmatprep.subr.bf16.mxu0 %v15382_v38 }
 0xb59   : > { %v5733_v18 = vpop.f32.mrb[14].mxu0 }
 0xb5a   : > { %v9907_v39 = vpop.f32.mrb[15].mxu0  ;;  %v5734_v57 = vadd.f32 %v5733_v18, %v5648_v51  ;;  %v6333_v18 = vand.u32 4294901760, %v6332_v15  ;;  %v6346_v51 = vsub.f32 %v14339_v20, %v6345_v41 }
 0xb5b   : > { %v6340_v39 = vand.u32 4294901760, %v6339_v32  ;;  %v11322_v32 = vpack.c.bf16 %v14337_v59, %v14335_v6 }
 0xb61   : > { %v5849_v58 = vpop.f32.mrb[12].mxu1 }
 0xb62   : > { %v5850_v56 = vadd.f32 %v5849_v58, %v5734_v57  ;;  %v9928_v21 = vpop.f32.mrb[13].mxu1  ;;  %v6353_v57 = vsub.f32 %v14341_v11, %v6352_v28  ;;  %v11304_v58 = vpack.c.bf16 %v6340_v39, %v6333_v18  ;;  %v11325_v18 = vpack.c.bf16 %v14341_v11, %v14339_v20 }
 0xb63   : > { %v11328_v39 = vpack.c.bf16 %v14348_v23, %v14343_v45 }
 0xb64   : > { %v6354_v21 = vand.u32 4294901760, %v6353_v57  ;;  %v11334_v57 = vpack.c.bf16 %v14395_v27, %v14393_v1 }
 0xb6b   : > { %v5939_v12 = vpop.f32.mrb[16].mxu0 }
 0xb6c   : > { %v5940_v19 = vadd.f32 %v5939_v12, %v5850_v56  ;;  %v9949_v37 = vpop.f32.mrb[17].mxu0  ;;  %v6347_v56 = vand.u32 4294901760, %v6346_v51  ;;  %v6359_v12 = vand.u32 4294901760, %v14343_v45  ;;  %v11331_v51 = vpack.c.bf16 %v14367_v61, %v14365_v3 }
 0xb6e   : > { %v11307_v37 = vpack.c.bf16 %v6354_v21, %v6347_v56 }
 0xb73   : > { %v6021_v7 = vpop.f32.mrb[14].mxu1 }
 0xb74   : > { %v6022_v35 = vadd.f32 %v6021_v7, %v5940_v19  ;;  %v9970_v14 = vpop.f32.mrb[15].mxu1  ;;  %v6366_v19 = vand.u32 4294901760, %v14348_v23  ;;  %v6360_v7 = vsub.f32 %v14343_v45, %v6359_v12 }
 0xb76   : > { %v6361_v14 = vand.u32 4294901760, %v6360_v7  ;;  %v11364_v6 = vpack.c.bf16 %v6366_v19, %v6359_v12 }
 0xb7d   : > { %v6119_v53 = vpop.f32.mrb[18].mxu0 }
 0xb7e   : > { %v6120_v25 = vadd.f32 %v6119_v53, %v6022_v35  ;;  %v9991_v40 = vpop.f32.mrb[19].mxu0  ;;  %v6367_v35 = vsub.f32 %v14348_v23, %v6366_v19  ;;  %v6373_v53 = vand.u32 4294901760, %v14365_v3 }
 0xb80   : > { %v6368_v40 = vand.u32 4294901760, %v6367_v35  ;;  %v6374_v48 = vsub.f32 %v14365_v3, %v6373_v53  ;;  %v6842_v3 = vld [vmem:[%s15023_s16] sm:$0xff] }
 0xb82   : > { %v11310_v8 = vpack.c.bf16 %v6368_v40, %v6361_v14  ;;  %v6375_v62 = vand.u32 4294901760, %v6374_v48 }
 0xb85   : > { %v6199_v63 = vpop.f32.mrb[16].mxu1 }
 0xb86   : > { %v6200_v22 = vadd.f32 %v6199_v63, %v6120_v25  ;;  %v10012_v46 = vpop.f32.mrb[17].mxu1  ;;  %v6380_v25 = vand.u32 4294901760, %v14367_v61 }
 0xb87   : > { %v6394_v46 = vand.u32 4294901760, %v14395_v27 }
 0xb88   : > { %v6203_v0 = vadd.f32 %v13955_v26, %v6200_v22  ;;  %v6381_v47 = vsub.f32 %v14367_v61, %v6380_v25  ;;  %v6387_v22 = vand.u32 4294901760, %v14393_v1  ;;  %v11367_v59 = vpack.c.bf16 %v6380_v25, %v6373_v53 }
 0xb89   : > { %v6395_v2 = vsub.f32 %v14395_v27, %v6394_v46 }
 0xb8a   : > { %v6204_v9 = vmax.f32 %v6203_v0, 0.0  ;;  %v6382_v63 = vand.u32 4294901760, %v6381_v47  ;;  %v11370_v20 = vpack.c.bf16 %v6394_v46, %v6387_v22 }
 0xb8b   : > { %v6396_v34 = vand.u32 4294901760, %v6395_v2 }
 0xb8c   : > { %v14373_v54 = vmul.f32 %v14134_v24, %v6204_v9  ;;  %v6217_v24 = vld [vmem:[%s15022_s15 + $0x58] sm:$0xff]  ;;  %v11313_v0 = vpack.c.bf16 %v6382_v63, %v6375_v62  ;;  %v6388_v9 = vsub.f32 %v14393_v1, %v6387_v22  ;;  %v6883_v1 = vsel %vm828_vm2, %v6842_v3, 0 }
 0xb8d   : > { %v6274_v10 = vand.u32 4294901760, %v6217_v24 }
 0xb8e   : > { %v6220_v26 = vsel %vm6219_vm0, %v14373_v54, 0.0  ;;  %v6389_v13 = vand.u32 4294901760, %v6388_v9 }
 0xb8f   : > { %6226 = vrot.lane.b32.xlu1 %v6220_v26, %s11745_s1  ;;  %6222 = vrot.lane.b32.xlu0 %v6220_v26, %s11733_s28  ;;  %v14402_v17 = vsub.f32 %v6217_v24, %v6274_v10  ;;  %v14405_v44 = vpack.c.bf16 %v6274_v10, %v6271_v4  ;;  %s15390_s1 = smov 117  }
 0xb90   : > { %v11316_v33 = vpack.c.bf16 %v6396_v34, %v6389_v13 }
 0xb91   : > { %11302 = vmatpush3.bf16.msra.mxu0 %v14405_v44  ;;  %v6408_v60 = vand.u32 4294901760, %v14402_v17  ;;  %v11337_v56 = vpack.c.bf16 %v14402_v17, %v14397_v55 }
 0xb92   : > { %10037 = vmatprep.subr.mxu0 %v15385_v52 }
 0xb93   : > { %6230 = vrot.lane.b32.xlu0 %v6220_v26, %s15390_s1  ;;  %v6401_v26 = vand.u32 4294901760, %v14397_v55  ;;  %v6409_v4 = vsub.f32 %v14402_v17, %v6408_v60 }
 0xb95   : > { %10038 = vmatpush3.msra.mxu0 %v14424_v49  ;;  %v6402_v24 = vsub.f32 %v14397_v55, %v6401_v26  ;;  %v6410_v36 = vand.u32 4294901760, %v6409_v4  ;;  %v11373_v11 = vpack.c.bf16 %v6408_v60, %v6401_v26 }
 0xb96   : > { %11303 = vmatprep.subr.bf16.mxu0 %v15382_v38 }
 0xb97   : > { %v6403_v10 = vand.u32 4294901760, %v6402_v24 }
 0xb99   : > { %v11319_v15 = vpack.c.bf16 %v6410_v36, %v6403_v10 }
 0xc01   : > { %v6223_v21 = vpop.permute.xlu0 %6222  ;;  %v6227_v35 = vpop.permute.xlu1 %6226 }
 0xc02   : > { %v6225_v7 = vmax.f32 %v14373_v54, %v6223_v21  ;;  %v14490_v54 = vsub.f32 %v14410_v30, %v14424_v49  ;;  %v11358_v30 = vpack.c.bf16 %v6338_v43, %v6331_v16 }
 0xc04   : > { %v6229_v14 = vmax.f32 %v6225_v7, %v6227_v35  ;;  %v6415_v34 = vand.u32 4294901760, %v14490_v54 }
 0xc05   : > { %v6231_v40 = vpop.permute.xlu0 %6230 }
 0xc06   : > { %v6233_v48 = vmax.f32 %v6229_v14, %v6231_v40 }
 0xc08   : > { %v6235_v47 = vsel %vm6219_vm0, %v6233_v48, 0 }
 0xc09   : > { %v14481_v62 = vand.u32 4294901760, %v6235_v47 }
 0xc0b   : > { %v6319_v63 = vsub.f32 %v6235_v47, %v14481_v62 }
 0xc0d   : > { %v6320_v9 = vand.u32 4294901760, %v6319_v63 }
 0xc0f   : > { %v6321_v2 = vsub.f32 %v6319_v63, %v6320_v9 }
 0xc11   : > { %v6322_v13 = vand.u32 4294901760, %v6321_v2 }
 0xc13   : > { %10040 = vmatmul.mubr.f32.vlgmr.msra.gmra.mrb[20].mxu0 %v6322_v13 }
 0xc14   : > { %11305 = vmatpush3.bf16.msra.mxu0 %v11304_v58  ;;  %10068 = vmatprep.mubr.msk.f32.mxu0 %vm11742_vm11, %v15385_v52  ;;  %v6416_v58 = vsub.f32 %v14490_v54, %v6415_v34 }
 0xc15   : > { %11306 = vmatprep.subr.bf16.mxu0 %v15382_v38 }
 0xc18   : > { %11308 = vmatpush3.bf16.msra.mxu0 %v11307_v37  ;;  %v6417_v37 = vand.u32 4294901760, %v6416_v58 }
 0xc19   : > { %11309 = vmatprep.subr.bf16.mxu0 %v15382_v38 }
 0xc1c   : > { %11311 = vmatpush3.bf16.msra.mxu0 %v11310_v8  ;;  %v11361_v8 = vpack.c.bf16 %v6352_v28, %v6345_v41 }
 0xc1d   : > { %11312 = vmatprep.subr.bf16.mxu0 %v15382_v38 }
 0xc20   : > { %11314 = vmatpush3.bf16.msra.mxu0 %v11313_v0 }
 0xc21   : > { %11315 = vmatprep.subr.bf16.mxu0 %v15382_v38 }
 0xc24   : > { %11317 = vmatpush3.bf16.msra.mxu0 %v11316_v33 }
 0xc25   : > { %11318 = vmatprep.subr.bf16.mxu0 %v15382_v38 }
 0xc28   : > { %11320 = vmatpush3.bf16.msra.mxu0 %v11319_v15 }
 0xc29   : > { %10066 = vmatprep.subr.mxu0 %v15385_v52 }
 0xc2c   : > { %10067 = vmatpush3.msra.mxu0 %v6417_v37 }
 0xc2d   : > { %10069 = vmatmul.mubr.f32.vlgmr.msra.gmra.mrb[20].mxu0 %v14481_v62  ;;  %11321 = vmatprep.subr.bf16.mxu0 %v15382_v38 }
 0xc2e   : > { %11323 = vmatpush3.bf16.msra.mxu0 %v11322_v32  ;;  %10097 = vmatprep.mubr.msk.f32.mxu0 %vm11742_vm11, %v15385_v52 }
 0xc2f   : > { %11324 = vmatprep.subr.bf16.mxu0 %v15382_v38 }
 0xc32   : > { %11326 = vmatpush3.bf16.msra.mxu0 %v11325_v18 }
 0xc33   : > { %11327 = vmatprep.subr.bf16.mxu0 %v15382_v38 }
 0xc36   : > { %11329 = vmatpush3.bf16.msra.mxu0 %v11328_v39 }
 0xc37   : > { %11330 = vmatprep.subr.bf16.mxu0 %v15382_v38 }
 0xc3a   : > { %11332 = vmatpush3.bf16.msra.mxu0 %v11331_v51 }
 0xc3b   : > { %11333 = vmatprep.subr.bf16.mxu0 %v15382_v38 }
 0xc3e   : > { %11335 = vmatpush3.bf16.msra.mxu0 %v11334_v57 }
 0xc3f   : > { %11336 = vmatprep.subr.bf16.mxu0 %v15382_v38 }
 0xc42   : > { %11338 = vmatpush3.bf16.msra.mxu0 %v11337_v56 }
 0xc43   : > { %10095 = vmatprep.subr.mxu0 %v15385_v52 }
 0xc46   : > { %10096 = vmatpush3.msra.mxu0 %v14490_v54 }
 0xc47   : > { %10098 = vmatmul.mubr.f32.vlgmr.msra.gmra.mrb[20].mxu0 %v6319_v63  ;;  %11339 = vmatprep.subr.bf16.mxu0 %v15382_v38 }
 0xc48   : > { %11341 = vmatpush3.bf16.msra.mxu0 %v14333_v29  ;;  %10126 = vmatprep.mubr.msk.f32.mxu0 %vm11742_vm11, %v15385_v52 }
 0xc49   : > { %11342 = vmatprep.subr.bf16.mxu0 %v15382_v38 }
 0xc4c   : > { %11344 = vmatpush3.bf16.msra.mxu0 %v14346_v5 }
 0xc4d   : > { %11345 = vmatprep.subr.bf16.mxu0 %v15382_v38 }
 0xc50   : > { %11347 = vmatpush3.bf16.msra.mxu0 %v14352_v31 }
 0xc51   : > { %11348 = vmatprep.subr.bf16.mxu0 %v15382_v38 }
 0xc54   : > { %11350 = vmatpush3.bf16.msra.mxu0 %v14363_v42 }
 0xc55   : > { %11351 = vmatprep.subr.bf16.mxu0 %v15382_v38 }
 0xc58   : > { %11353 = vmatpush3.bf16.msra.mxu0 %v14391_v50 }
 0xc59   : > { %11354 = vmatprep.subr.bf16.mxu0 %v15382_v38 }
 0xc5c   : > { %11356 = vmatpush3.bf16.msra.mxu0 %v14405_v44 }
 0xc5d   : > { %10124 = vmatprep.subr.mxu0 %v15385_v52 }
 0xc60   : > { %10125 = vmatpush3.msra.mxu0 %v14424_v49 }
 0xc61   : > { %10127 = vmatmul.mubr.f32.vlgmr.msra.gmra.mrb[20].mxu0 %v6320_v9  ;;  %11357 = vmatprep.subr.bf16.mxu0 %v15382_v38 }
 0xc62   : > { %11359 = vmatpush3.bf16.msra.mxu0 %v11358_v30  ;;  %10155 = vmatprep.mubr.msk.f32.mxu0 %vm11742_vm11, %v15385_v52 }
 0xc63   : > { %11360 = vmatprep.subr.bf16.mxu0 %v15382_v38 }
 0xc66   : > { %11362 = vmatpush3.bf16.msra.mxu0 %v11361_v8 }
 0xc67   : > { %11363 = vmatprep.subr.bf16.mxu0 %v15382_v38 }
 0xc6a   : > { %11365 = vmatpush3.bf16.msra.mxu0 %v11364_v6 }
 0xc6b   : > { %11366 = vmatprep.subr.bf16.mxu0 %v15382_v38 }
 0xc6e   : > { %11368 = vmatpush3.bf16.msra.mxu0 %v11367_v59 }
 0xc6f   : > { %11369 = vmatprep.subr.bf16.mxu0 %v15382_v38 }
 0xc72   : > { %11371 = vmatpush3.bf16.msra.mxu0 %v11370_v20 }
 0xc73   : > { %11372 = vmatprep.subr.bf16.mxu0 %v15382_v38 }
 0xc76   : > { %11374 = vmatpush3.bf16.msra.mxu0 %v11373_v11 }
 0xc77   : > { %10153 = vmatprep.subr.mxu0 %v15385_v52 }
 0xc7a   : > { %10154 = vmatpush3.msra.mxu0 %v6415_v34 }
 0xc7b   : > { %10156 = vmatmul.mubr.f32.vlgmr.msra.gmra.mrb[20].mxu0 %v14481_v62  ;;  %11375 = vmatprep.subr.bf16.mxu0 %v15382_v38 }
 0xc7c   : > { %11377 = vmatpush3.bf16.msra.mxu0 %v14333_v29  ;;  %10184 = vmatprep.mubr.msk.f32.mxu0 %vm11742_vm11, %v15385_v52 }
 0xc7d   : > { %11378 = vmatprep.subr.bf16.mxu0 %v15382_v38 }
 0xc80   : > { %11380 = vmatpush3.bf16.msra.mxu0 %v14346_v5 }
 0xc81   : > { %11381 = vmatprep.subr.bf16.mxu0 %v15382_v38 }
 0xc84   : > { %11383 = vmatpush3.bf16.msra.mxu0 %v14352_v31 }
 0xc85   : > { %11384 = vmatprep.subr.bf16.mxu0 %v15382_v38 }
 0xc88   : > { %11386 = vmatpush3.bf16.msra.mxu0 %v14363_v42  ;;  %v6876_v42 = vld [vmem:[%s15024_s17] sm:$0xff] }
 0xc89   : > { %11387 = vmatprep.subr.bf16.mxu0 %v15382_v38 }
 0xc8c   : > { %11389 = vmatpush3.bf16.msra.mxu0 %v14391_v50 }
 0xc8d   : > { %11390 = vmatprep.subr.bf16.mxu0 %v15382_v38 }
 0xc90   : > { %11392 = vmatpush3.bf16.msra.mxu0 %v14405_v44  ;;  %v14602_v44 = vand.u32 4294901760, %v6883_v1 }
 0xc91   : > { %10182 = vmatprep.subr.mxu0 %v15385_v52 }
 0xc92   : > { %v14611_v19 = vsub.f32 %v6883_v1, %v14602_v44 }
 0xc94   : > { %10183 = vmatpush3.msra.mxu0 %v14424_v49  ;;  %v6961_v33 = vand.u32 4294901760, %v14611_v19 }
 0xc95   : > { %10185 = vmatmul.mubr.f32.vlgmr.msra.gmra.mrb[20].mxu0 %v14481_v62  ;;  %11501 = vmatprep.subr.bf16.mxu0 %v15382_v38 }
 0xc96   : > { %10394 = vmatprep.mubr.msk.f32.mxu0 %vm11742_vm11, %v15385_v52  ;;  %v6962_v56 = vsub.f32 %v14611_v19, %v6961_v33 }
 0xc98   : > { %v6963_v63 = vand.u32 4294901760, %v6962_v56 }
 0xd68   : > { %v14579_v29 = vpop.f32.mrb[20].mxu0 }
 0xd69   : > { %6844 = vrot.lane.b32.xlu1 %v14579_v29, %s11749_s4  ;;  %v10186_v45 = vpop.f32.mrb[21].mxu0 }
 0xddb   : > { %v6845_v5 = vpop.permute.xlu1 %6844 }
 0xddc   : > { %v6848_v23 = vsel %vm6847_vm1, 0.0, %v6845_v5 }
 0xddd   : > { %v6850_v31 = vsel %vm6849_vm3, %v6848_v23, 0.0 }
 0xdde   : > { %6855 = vrot.lane.b32.xlu1 %v6850_v31, %s15387_s23  ;;  %6852 = vrot.lane.b32.xlu0 %v6850_v31, %s11733_s28  ;;  %v6886_v27 = vand.u32 4294901760, %v6850_v31 }
 0xde0   : > { %v14608_v12 = vsub.f32 %v6850_v31, %v6886_v27 }
 0xde2   : > { %6861 = vrot.lane.b32.xlu1 %v6850_v31, %s11750_s3  ;;  %6858 = vrot.lane.b32.xlu0 %v6850_v31, %s11751_s24  ;;  %v6972_v24 = vand.u32 4294901760, %v14608_v12 }
 0xde4   : > { %v6973_v21 = vsub.f32 %v14608_v12, %v6972_v24 }
 0xde6   : > { %6867 = vrot.lane.b32.xlu1 %v6850_v31, %s15391_s26  ;;  %6864 = vrot.lane.b32.xlu0 %v6850_v31, %s11752_s22  ;;  %v6974_v9 = vand.u32 4294901760, %v6973_v21 }
 0xdea   : > { %6873 = vrot.lane.b32.xlu1 %v6850_v31, %s11753_s0  ;;  %6870 = vrot.lane.b32.xlu0 %v6850_v31, %s11754_s5 }
 0xdee   : > { %6879 = vperm.xlu0 %11720, %v6876_v42  }
 0xe50   : > { %v6856_v61 = vpop.permute.xlu1 %6855  ;;  %v6853_v50 = vpop.permute.xlu0 %6852 }
 0xe51   : > { %v6889_v55 = vand.u32 4294901760, %v6853_v50  ;;  %v6892_v41 = vand.u32 4294901760, %v6856_v61 }
 0xe53   : > { %v14600_v17 = vpack.c.bf16 %v6889_v55, %v6886_v27  ;;  %v14605_v28 = vsub.f32 %v6853_v50, %v6889_v55  ;;  %v14622_v4 = vsub.f32 %v6856_v61, %v6892_v41 }
 0xe54   : > { %v6862_v16 = vpop.permute.xlu1 %6861  ;;  %v6859_v43 = vpop.permute.xlu0 %6858 }
 0xe55   : > { %11395 = vmatpush3.bf16.msra.mxu1 %v14600_v17  ;;  %v6895_v49 = vand.u32 4294901760, %v6859_v43  ;;  %v6979_v22 = vand.u32 4294901760, %v14605_v28  ;;  %v6898_v46 = vand.u32 4294901760, %v6862_v16  ;;  %v6986_v7 = vand.u32 4294901760, %v14622_v4 }
 0xe56   : > { %11396 = vmatprep.subr.bf16.mxu1 %v15382_v38 }
 0xe57   : > { %v14613_v53 = vpack.c.bf16 %v6895_v49, %v6892_v41  ;;  %v14616_v0 = vsub.f32 %v6859_v43, %v6895_v49  ;;  %v6980_v18 = vsub.f32 %v14605_v28, %v6979_v22  ;;  %v14643_v35 = vsub.f32 %v6862_v16, %v6898_v46 }
 0xe58   : > { %v6865_v25 = vpop.permute.xlu0 %6864  ;;  %v6868_v26 = vpop.permute.xlu1 %6867  ;;  %v6987_v2 = vsub.f32 %v14622_v4, %v6986_v7  ;;  %v11418_v43 = vpack.c.bf16 %v14605_v28, %v14608_v12 }
 0xe59   : > { %v6901_v60 = vand.u32 4294901760, %v6865_v25  ;;  %11398 = vmatpush3.bf16.msra.mxu1 %v14613_v53  ;;  %v6904_v15 = vand.u32 4294901760, %v6868_v26  ;;  %v6993_v39 = vand.u32 4294901760, %v14616_v0  ;;  %v6981_v40 = vand.u32 4294901760, %v6980_v18 }
 0xe5a   : > { %11399 = vmatprep.subr.bf16.mxu1 %v15382_v38  ;;  %v7000_v13 = vand.u32 4294901760, %v14643_v35  ;;  %v6988_v6 = vand.u32 4294901760, %v6987_v2  ;;  %v11421_v41 = vpack.c.bf16 %v14616_v0, %v14622_v4 }
 0xe5b   : > { %v14624_v10 = vpack.c.bf16 %v6901_v60, %v6898_v46  ;;  %v14630_v51 = vsub.f32 %v6865_v25, %v6901_v60  ;;  %v6994_v48 = vsub.f32 %v14616_v0, %v6993_v39  ;;  %v14657_v54 = vsub.f32 %v6868_v26, %v6904_v15  ;;  %v14758_v0 = vld [vmem:[%s15392_s29] ss:$0 sm:$0xff] }
 0xe5c   : > { %v6871_v36 = vpop.permute.xlu0 %6870  ;;  %v6874_v14 = vpop.permute.xlu1 %6873  ;;  %v11406_v8 = vpack.c.bf16 %v6981_v40, %v6974_v9  ;;  %v7001_v59 = vsub.f32 %v14643_v35, %v7000_v13  ;;  %v11442_v46 = vpack.c.bf16 %v6979_v22, %v6972_v24  ;;  %v11445_v26 = vpack.c.bf16 %v6993_v39, %v6986_v7 }
 0xe5d   : > { %v6907_v32 = vand.u32 4294901760, %v6871_v36  ;;  %11401 = vmatpush3.bf16.msra.mxu1 %v14624_v10  ;;  %v7007_v47 = vand.u32 4294901760, %v14630_v51  ;;  %v14659_v34 = vand.u32 4294901760, %v6874_v14  ;;  %v6995_v58 = vand.u32 4294901760, %v6994_v48 }
 0xe5e   : > { %11402 = vmatprep.subr.bf16.mxu1 %v15382_v38  ;;  %v7014_v20 = vand.u32 4294901760, %v14657_v54  ;;  %v7002_v31 = vand.u32 4294901760, %v7001_v59  ;;  %v11424_v49 = vpack.c.bf16 %v14630_v51, %v14643_v35 }
 0xe5f   : > { %v14633_v57 = vpack.c.bf16 %v6907_v32, %v6904_v15  ;;  %v14649_v62 = vsub.f32 %v6871_v36, %v6907_v32  ;;  %v7008_v37 = vsub.f32 %v14630_v51, %v7007_v47  ;;  %v7027_v45 = vsub.f32 %v6874_v14, %v14659_v34  ;;  %v7443_v36 = vld [vmem:[%s15025_s18] sm:$0xff] }
 0xe60   : > { %v11409_v23 = vpack.c.bf16 %v6995_v58, %v6988_v6  ;;  %v7015_v42 = vsub.f32 %v14657_v54, %v7014_v20  ;;  %v11448_v28 = vpack.c.bf16 %v7007_v47, %v7000_v13  ;;  %v7482_v18 = vsel %vm828_vm2, %v7443_v36, 0 }
 0xe61   : > { %11404 = vmatpush3.bf16.msra.mxu1 %v14633_v57  ;;  %v7021_v30 = vand.u32 4294901760, %v14649_v62  ;;  %v7009_v11 = vand.u32 4294901760, %v7008_v37  ;;  %v7028_v3 = vand.u32 4294901760, %v7027_v45  ;;  %v11427_v25 = vpack.c.bf16 %v14649_v62, %v14657_v54 }
 0xe62   : > { %10203 = vmatprep.subr.mxu1 %v15385_v52  ;;  %v7016_v1 = vand.u32 4294901760, %v7015_v42  ;;  %v14781_v56 = vand.u32 4294901760, %v7482_v18  ;;  %vm8042_vm2 = vcmask 293888  }
 0xe63   : > { %v7022_v5 = vsub.f32 %v14649_v62, %v7021_v30  ;;  %v11412_v50 = vpack.c.bf16 %v7009_v11, %v7002_v31  ;;  %v7029_v27 = vsub.f32 %v7027_v45, %v7028_v3  ;;  %v11451_v12 = vpack.c.bf16 %v7021_v30, %v7014_v20 }
 0xe64   : > { %v14792_v47 = vsub.f32 %v7482_v18, %v14781_v56 }
 0xe65   : > { %10204 = vmatpush3.msra.mxu1 %v14659_v34  ;;  %v7023_v61 = vand.u32 4294901760, %v7022_v5  ;;  %v7030_v16 = vand.u32 4294901760, %v7029_v27 }
 0xe66   : > { %11405 = vmatprep.subr.bf16.mxu1 %v15382_v38  ;;  %10206 = vmatmul.mubr.f32.vlgmr.msra.gmra.mrb[18].mxu1 %v6963_v63  ;;  %v7560_v58 = vand.u32 4294901760, %v14792_v47 }
 0xe67   : > { %11407 = vmatpush3.bf16.msra.mxu1 %v11406_v8  ;;  %10226 = vmatprep.mubr.msk.f32.mxu1 %vm11742_vm11, %v15385_v52  ;;  %v11415_v55 = vpack.c.bf16 %v7023_v61, %v7016_v1 }
 0xe68   : > { %11408 = vmatprep.subr.bf16.mxu1 %v15382_v38  ;;  %v7561_v31 = vsub.f32 %v14792_v47, %v7560_v58 }
 0xe6b   : > { %11410 = vmatpush3.bf16.msra.mxu1 %v11409_v23 }
 0xe6c   : > { %11411 = vmatprep.subr.bf16.mxu1 %v15382_v38 }
 0xe6f   : > { %11413 = vmatpush3.bf16.msra.mxu1 %v11412_v50 }
 0xe70   : > { %11414 = vmatprep.subr.bf16.mxu1 %v15382_v38 }
 0xe73   : > { %11416 = vmatpush3.bf16.msra.mxu1 %v11415_v55 }
 0xe74   : > { %10224 = vmatprep.subr.mxu1 %v15385_v52 }
 0xe77   : > { %10225 = vmatpush3.msra.mxu1 %v7030_v16 }
 0xe78   : > { %11417 = vmatprep.subr.bf16.mxu1 %v15382_v38  ;;  %10227 = vmatmul.mubr.f32.vlgmr.msra.gmra.mrb[18].mxu1 %v14602_v44 }
 0xe79   : > { %11419 = vmatpush3.bf16.msra.mxu1 %v11418_v43  ;;  %10247 = vmatprep.mubr.msk.f32.mxu1 %vm11742_vm11, %v15385_v52  ;;  %v7562_v43 = vand.u32 4294901760, %v7561_v31 }
 0xe7a   : > { %11420 = vmatprep.subr.bf16.mxu1 %v15382_v38 }
 0xe7d   : > { %11422 = vmatpush3.bf16.msra.mxu1 %v11421_v41 }
 0xe7e   : > { %11423 = vmatprep.subr.bf16.mxu1 %v15382_v38 }
 0xe81   : > { %11425 = vmatpush3.bf16.msra.mxu1 %v11424_v49 }
 0xe82   : > { %11426 = vmatprep.subr.bf16.mxu1 %v15382_v38 }
 0xe85   : > { %11428 = vmatpush3.bf16.msra.mxu1 %v11427_v25 }
 0xe86   : > { %10245 = vmatprep.subr.mxu1 %v15385_v52 }
 0xe89   : > { %10246 = vmatpush3.msra.mxu1 %v7027_v45 }
 0xe8a   : > { %11429 = vmatprep.subr.bf16.mxu1 %v15382_v38  ;;  %10248 = vmatmul.mubr.f32.vlgmr.msra.gmra.mrb[18].mxu1 %v14611_v19 }
 0xe8b   : > { %11431 = vmatpush3.bf16.msra.mxu1 %v14600_v17  ;;  %10268 = vmatprep.mubr.msk.f32.mxu1 %vm11742_vm11, %v15385_v52 }
 0xe8c   : > { %11432 = vmatprep.subr.bf16.mxu1 %v15382_v38 }
 0xe8f   : > { %11434 = vmatpush3.bf16.msra.mxu1 %v14613_v53 }
 0xe90   : > { %11435 = vmatprep.subr.bf16.mxu1 %v15382_v38 }
 0xe93   : > { %11437 = vmatpush3.bf16.msra.mxu1 %v14624_v10 }
 0xe94   : > { %11438 = vmatprep.subr.bf16.mxu1 %v15382_v38 }
 0xe97   : > { %11440 = vmatpush3.bf16.msra.mxu1 %v14633_v57 }
 0xe98   : > { %10266 = vmatprep.subr.mxu1 %v15385_v52 }
 0xe9b   : > { %10267 = vmatpush3.msra.mxu1 %v14659_v34 }
 0xe9c   : > { %11441 = vmatprep.subr.bf16.mxu1 %v15382_v38  ;;  %10269 = vmatmul.mubr.f32.vlgmr.msra.gmra.mrb[18].mxu1 %v6961_v33 }
 0xe9d   : > { %11443 = vmatpush3.bf16.msra.mxu1 %v11442_v46  ;;  %10289 = vmatprep.mubr.msk.f32.mxu1 %vm11742_vm11, %v15385_v52 }
 0xe9e   : > { %11444 = vmatprep.subr.bf16.mxu1 %v15382_v38 }
 0xea1   : > { %11446 = vmatpush3.bf16.msra.mxu1 %v11445_v26 }
 0xea2   : > { %11447 = vmatprep.subr.bf16.mxu1 %v15382_v38 }
 0xea5   : > { %11449 = vmatpush3.bf16.msra.mxu1 %v11448_v28 }
 0xea6   : > { %11450 = vmatprep.subr.bf16.mxu1 %v15382_v38 }
 0xea9   : > { %11452 = vmatpush3.bf16.msra.mxu1 %v11451_v12 }
 0xeaa   : > { %10287 = vmatprep.subr.mxu1 %v15385_v52 }
 0xead   : > { %10288 = vmatpush3.msra.mxu1 %v7028_v3 }
 0xeae   : > { %11453 = vmatprep.subr.bf16.mxu1 %v15382_v38  ;;  %10290 = vmatmul.mubr.f32.vlgmr.msra.gmra.mrb[18].mxu1 %v14602_v44 }
 0xeaf   : > { %11455 = vmatpush3.bf16.msra.mxu1 %v14600_v17  ;;  %10310 = vmatprep.mubr.msk.f32.mxu1 %vm11742_vm11, %v15385_v52  ;;  %v6880_v17 = vpop.permute.xlu0 %6879 }
 0xeb0   : > { %11456 = vmatprep.subr.bf16.mxu1 %v15382_v38 }
 0xeb3   : > { %11458 = vmatpush3.bf16.msra.mxu1 %v14613_v53 }
 0xeb4   : > { %11459 = vmatprep.subr.bf16.mxu1 %v15382_v38 }
 0xeb7   : > { %11461 = vmatpush3.bf16.msra.mxu1 %v14624_v10  ;;  %v7475_v10 = vld [vmem:[%s15026_s19] sm:$0xff] }
 0xeb8   : > { %11462 = vmatprep.subr.bf16.mxu1 %v15382_v38 }
 0xebb   : > { %11464 = vmatpush3.bf16.msra.mxu1 %v14633_v57 }
 0xebc   : > { %10308 = vmatprep.subr.mxu1 %v15385_v52 }
 0xebf   : > { %10309 = vmatpush3.msra.mxu1 %v14659_v34 }
 0xec0   : > { %10311 = vmatmul.mubr.f32.vlgmr.msra.gmra.mrb[18].mxu1 %v14602_v44  ;;  %11465 = vmatprep.subr.bf16.mxu1 %v15382_v38 }
 0xec1   : > { %10331 = vmatprep.mubr.msk.f32.mxu1 %vm11742_vm11, %v15385_v52 }
 0xf93   : > { %v7431_v19 = vpop.f32.mrb[18].mxu1 }
 0xf94   : > { %v11586_v53 = vadd.f32 %v7431_v19, %v6880_v17  ;;  %v10312_v22 = vpop.f32.mrb[19].mxu1 }
 0xf96   : > { %v7435_v60 = vmax.f32 %v11586_v53, 0.0 }
 0xf98   : > { %v7442_v33 = vmul.f32 %v14758_v0, %v7435_v60 }
 0xf9a   : > { %7445 = vrot.lane.b32.xlu1 %v7442_v33, %s11749_s4 }
0x100c   : > { %v7446_v44 = vpop.permute.xlu1 %7445 }
0x100d   : > { %v7448_v24 = vsel %vm6847_vm1, 0.0, %v7446_v44 }
0x100e   : > { %v7449_v4 = vsel %vm6849_vm3, %v7448_v24, 0.0 }
0x100f   : > { %7454 = vrot.lane.b32.xlu1 %v7449_v4, %s15387_s23  ;;  %7451 = vrot.lane.b32.xlu0 %v7449_v4, %s11733_s28  ;;  %v7485_v39 = vand.u32 4294901760, %v7449_v4 }
0x1011   : > { %v14789_v48 = vsub.f32 %v7449_v4, %v7485_v39 }
0x1013   : > { %7460 = vrot.lane.b32.xlu1 %v7449_v4, %s11750_s3  ;;  %7457 = vrot.lane.b32.xlu0 %v7449_v4, %s11751_s24  ;;  %v7571_v37 = vand.u32 4294901760, %v14789_v48 }
0x1015   : > { %v7572_v42 = vsub.f32 %v14789_v48, %v7571_v37 }
0x1017   : > { %7466 = vrot.lane.b32.xlu1 %v7449_v4, %s15391_s26  ;;  %7463 = vrot.lane.b32.xlu0 %v7449_v4, %s11752_s22  ;;  %v7573_v41 = vand.u32 4294901760, %v7572_v42 }
0x101b   : > { %7472 = vrot.lane.b32.xlu1 %v7449_v4, %s11753_s0  ;;  %7469 = vrot.lane.b32.xlu0 %v7449_v4, %s11754_s5 }
0x101f   : > { %7478 = vperm.xlu0 %11720, %v7475_v10  }
0x1081   : > { %v7455_v15 = vpop.permute.xlu1 %7454  ;;  %v7452_v32 = vpop.permute.xlu0 %7451 }
0x1082   : > { %v7488_v51 = vand.u32 4294901760, %v7452_v32  ;;  %v7491_v35 = vand.u32 4294901760, %v7455_v15 }
0x1084   : > { %v14779_v57 = vpack.c.bf16 %v7488_v51, %v7485_v39  ;;  %v14785_v14 = vsub.f32 %v7452_v32, %v7488_v51  ;;  %v14805_v30 = vsub.f32 %v7455_v15, %v7491_v35 }
0x1085   : > { %v7461_v21 = vpop.permute.xlu1 %7460  ;;  %v7458_v7 = vpop.permute.xlu0 %7457 }
0x1086   : > { %11467 = vmatpush3.bf16.msra.mxu1 %v14779_v57  ;;  %11503 = vmatpush3.bf16.msra.mxu0 %v14779_v57  ;;  %v7494_v40 = vand.u32 4294901760, %v7458_v7  ;;  %v7578_v9 = vand.u32 4294901760, %v14785_v14  ;;  %v7497_v2 = vand.u32 4294901760, %v7461_v21  ;;  %v7585_v3 = vand.u32 4294901760, %v14805_v30 }
0x1087   : > { %11468 = vmatprep.subr.bf16.mxu1 %v15382_v38  ;;  %11504 = vmatprep.subr.bf16.mxu0 %v15382_v38 }
0x1088   : > { %v14794_v62 = vpack.c.bf16 %v7494_v40, %v7491_v35  ;;  %v14797_v13 = vsub.f32 %v7458_v7, %v7494_v40  ;;  %v7579_v11 = vsub.f32 %v14785_v14, %v7578_v9  ;;  %v14825_v61 = vsub.f32 %v7461_v21, %v7497_v2 }
0x1089   : > { %v7464_v63 = vpop.permute.xlu0 %7463  ;;  %v7467_v54 = vpop.permute.xlu1 %7466  ;;  %v7586_v49 = vsub.f32 %v14805_v30, %v7585_v3  ;;  %v11490_v7 = vpack.c.bf16 %v14785_v14, %v14789_v48 }
0x108a   : > { %v7500_v34 = vand.u32 4294901760, %v7464_v63  ;;  %11470 = vmatpush3.bf16.msra.mxu1 %v14794_v62  ;;  %11506 = vmatpush3.bf16.msra.mxu0 %v14794_v62  ;;  %v7503_v59 = vand.u32 4294901760, %v7467_v54  ;;  %v7592_v45 = vand.u32 4294901760, %v14797_v13  ;;  %v7580_v1 = vand.u32 4294901760, %v7579_v11 }
0x108b   : > { %11471 = vmatprep.subr.bf16.mxu1 %v15382_v38  ;;  %11507 = vmatprep.subr.bf16.mxu0 %v15382_v38  ;;  %v7599_v25 = vand.u32 4294901760, %v14825_v61  ;;  %v7587_v53 = vand.u32 4294901760, %v7586_v49  ;;  %v11493_v35 = vpack.c.bf16 %v14797_v13, %v14805_v30  ;;  %v8039_v49 = vld [vmem:[%s15027_s20 + $0x10] sm:$0xff] }
0x108c   : > { %v14807_v8 = vpack.c.bf16 %v7500_v34, %v7497_v2  ;;  %v14813_v5 = vsub.f32 %v7464_v63, %v7500_v34  ;;  %v7593_v27 = vsub.f32 %v14797_v13, %v7592_v45  ;;  %v14842_v46 = vsub.f32 %v7467_v54, %v7503_v59 }
0x108d   : > { %v7470_v6 = vpop.permute.xlu0 %7469  ;;  %v7473_v50 = vpop.permute.xlu1 %7472  ;;  %v11478_v19 = vpack.c.bf16 %v7580_v1, %v7573_v41  ;;  %v7600_v22 = vsub.f32 %v14825_v61, %v7599_v25  ;;  %v11514_v63 = vpack.c.bf16 %v7578_v9, %v7571_v37  ;;  %v11517_v2 = vpack.c.bf16 %v7592_v45, %v7585_v3  ;;  %v8038_v9 = vld [vmem:[%s15027_s20 + $0x8] sm:$0xff] }
0x108e   : > { %v7506_v20 = vand.u32 4294901760, %v7470_v6  ;;  %11473 = vmatpush3.bf16.msra.mxu1 %v14807_v8  ;;  %11509 = vmatpush3.bf16.msra.mxu0 %v14807_v8  ;;  %v7606_v55 = vand.u32 4294901760, %v14813_v5  ;;  %v7509_v26 = vand.u32 4294901760, %v7473_v50  ;;  %v7594_v28 = vand.u32 4294901760, %v7593_v27 }
0x108f   : > { %11474 = vmatprep.subr.bf16.mxu1 %v15382_v38  ;;  %11510 = vmatprep.subr.bf16.mxu0 %v15382_v38  ;;  %v7613_v60 = vand.u32 4294901760, %v14842_v46  ;;  %v7601_v10 = vand.u32 4294901760, %v7600_v22  ;;  %v11496_v40 = vpack.c.bf16 %v14813_v5, %v14825_v61  ;;  %v8067_v54 = vand.u32 4294901760, %v8038_v9 }
0x1090   : > { %v14817_v23 = vpack.c.bf16 %v7506_v20, %v7503_v59  ;;  %v14832_v16 = vsub.f32 %v7470_v6, %v7506_v20  ;;  %v7607_v12 = vsub.f32 %v14813_v5, %v7606_v55  ;;  %v14855_v44 = vsub.f32 %v7473_v50, %v7509_v26 }
0x1091   : > { %v11481_v4 = vpack.c.bf16 %v7594_v28, %v7587_v53  ;;  %v7614_v36 = vsub.f32 %v14842_v46, %v7613_v60  ;;  %v11520_v14 = vpack.c.bf16 %v7606_v55, %v7599_v25  ;;  %v8040_v25 = vld [vmem:[%s15027_s20 + $0x18] sm:$0xff]  ;;  %v8070_v28 = vand.u32 4294901760, %v8039_v49 }
0x1092   : > { %11476 = vmatpush3.bf16.msra.mxu1 %v14817_v23  ;;  %11512 = vmatpush3.bf16.msra.mxu0 %v14817_v23  ;;  %v7620_v17 = vand.u32 4294901760, %v14832_v16  ;;  %v7608_v33 = vand.u32 4294901760, %v7607_v12  ;;  %v7627_v15 = vand.u32 4294901760, %v14855_v44  ;;  %v8073_v12 = vand.u32 4294901760, %v8040_v25 }
0x1093   : > { %10329 = vmatprep.subr.mxu1 %v15385_v52  ;;  %10392 = vmatprep.subr.mxu0 %v15385_v52  ;;  %v7615_v39 = vand.u32 4294901760, %v7614_v36  ;;  %v8159_v53 = vsub.f32 %v8039_v49, %v8070_v28 }
0x1094   : > { %v7621_v24 = vsub.f32 %v14832_v16, %v7620_v17  ;;  %v11484_v18 = vpack.c.bf16 %v7608_v33, %v7601_v10  ;;  %v7628_v51 = vsub.f32 %v14855_v44, %v7627_v15  ;;  %v11523_v48 = vpack.c.bf16 %v7620_v17, %v7613_v60 }
0x1095   : > { %v8166_v22 = vsub.f32 %v8040_v25, %v8073_v12 }
0x1096   : > { %10330 = vmatpush3.msra.mxu1 %v7509_v26  ;;  %10393 = vmatpush3.msra.mxu0 %v7509_v26  ;;  %v7622_v32 = vand.u32 4294901760, %v7621_v24  ;;  %v7629_v21 = vand.u32 4294901760, %v7628_v51 }
0x1097   : > { %10332 = vmatmul.mubr.f32.vlgmr.msra.gmra.mrb[20].mxu1 %v7562_v43  ;;  %11477 = vmatprep.subr.bf16.mxu1 %v15382_v38  ;;  %v8167_v24 = vand.u32 4294901760, %v8166_v22 }
0x1098   : > { %11525 = vmatprep.subr.bf16.mxu0 %v15382_v38  ;;  %11479 = vmatpush3.bf16.msra.mxu1 %v11478_v19 }
0x1099   : > { %10395 = vmatmul.mubr.f32.vlgmr.msra.gmra.mrb[22].mxu0 %v7560_v58  ;;  %11480 = vmatprep.subr.bf16.mxu1 %v15382_v38  ;;  %v14937_v58 = vsub.f32 %v8038_v9, %v8067_v54 }
0x109a   : > { %11527 = vmatpush3.bf16.msra.mxu0 %v14779_v57  ;;  %10352 = vmatprep.mubr.msk.f32.mxu1 %vm11742_vm11, %v15385_v52  ;;  %v11487_v57 = vpack.c.bf16 %v7622_v32, %v7615_v39 }
0x109b   : > { %11528 = vmatprep.subr.bf16.mxu0 %v15382_v38  ;;  %10436 = vmatprep.mubr.msk.f32.mxu0 %vm11742_vm11, %v15385_v52  ;;  %v8153_v37 = vand.u32 4294901760, %v14937_v58 }
0x109c   : > { %11482 = vmatpush3.bf16.msra.mxu1 %v11481_v4 }
0x109d   : > { %11483 = vmatprep.subr.bf16.mxu1 %v15382_v38 }
0x109e   : > { %11530 = vmatpush3.bf16.msra.mxu0 %v14794_v62  ;;  %v11499_v62 = vpack.c.bf16 %v14832_v16, %v14842_v46  ;;  %v7479_v31 = vpop.permute.xlu0 %7478  ;;  %v8041_v46 = vld [vmem:[%s15027_s20 + $0x20] sm:$0xf] }
0x109f   : > { %11531 = vmatprep.subr.bf16.mxu0 %v15382_v38  ;;  %v8061_v60 = vsel %vm3595_vm13, %v8041_v46, 0 }
0x10a0   : > { %11485 = vmatpush3.bf16.msra.mxu1 %v11484_v18  ;;  %v14959_v10 = vand.u32 4294901760, %v8061_v60 }
0x10a1   : > { %11486 = vmatprep.subr.bf16.mxu1 %v15382_v38 }
0x10a2   : > { %11533 = vmatpush3.bf16.msra.mxu0 %v14807_v8  ;;  %v8154_v8 = vsub.f32 %v14937_v58, %v8153_v37 }
0x10a3   : > { %11534 = vmatprep.subr.bf16.mxu0 %v15382_v38 }
0x10a4   : > { %11488 = vmatpush3.bf16.msra.mxu1 %v11487_v57  ;;  %v8155_v59 = vand.u32 4294901760, %v8154_v8 }
0x10a5   : > { %10350 = vmatprep.subr.mxu1 %v15385_v52 }
0x10a6   : > { %11536 = vmatpush3.bf16.msra.mxu0 %v14817_v23 }
0x10a7   : > { %10434 = vmatprep.subr.mxu0 %v15385_v52 }
0x10a8   : > { %10351 = vmatpush3.msra.mxu1 %v7629_v21  ;;  %v8173_v21 = vsub.f32 %v8061_v60, %v14959_v10 }
0x10a9   : > { %10353 = vmatmul.mubr.f32.vlgmr.msra.gmra.mrb[22].mxu1 %v14781_v56  ;;  %11489 = vmatprep.subr.bf16.mxu1 %v15382_v38 }
0x10aa   : > { %10435 = vmatpush3.msra.mxu0 %v7509_v26  ;;  %11491 = vmatpush3.bf16.msra.mxu1 %v11490_v7 }
0x10ab   : > { %11492 = vmatprep.subr.bf16.mxu1 %v15382_v38  ;;  %10373 = vmatprep.mubr.msk.f32.mxu1 %vm11742_vm11, %v15385_v52 }
0x10ac   : > { %10437 = vmatmul.mubr.f32.vlgmr.msra.gmra.mrb[24].mxu0 %v14781_v56  ;;  %11537 = vmatprep.subr.bf16.mxu0 %v15382_v38 }
0x10ad   : > { %10449 = vmatprep.mubr.msk.f32.mxu0 %vm11742_vm11, %v15385_v52 }
0x10ae   : > { %11494 = vmatpush3.bf16.msra.mxu1 %v11493_v35 }
0x10af   : > { %11495 = vmatprep.subr.bf16.mxu1 %v15382_v38 }
0x10b2   : > { %11497 = vmatpush3.bf16.msra.mxu1 %v11496_v40  ;;  %v11553_v40 = vpack.c.bf16 %v8166_v22, %v8159_v53 }
0x10b3   : > { %11498 = vmatprep.subr.bf16.mxu1 %v15382_v38 }
0x10b6   : > { %11500 = vmatpush3.bf16.msra.mxu1 %v11499_v62  ;;  %v11541_v62 = vpack.c.bf16 %v8073_v12, %v8070_v28 }
0x10b7   : > { %10371 = vmatprep.subr.mxu1 %v15385_v52 }
0x10ba   : > { %10372 = vmatpush3.msra.mxu1 %v14855_v44  ;;  %v8160_v44 = vand.u32 4294901760, %v8159_v53 }
0x10bb   : > { %10374 = vmatmul.mubr.f32.vlgmr.msra.gmra.mrb[24].mxu1 %v14792_v47  ;;  %11513 = vmatprep.subr.bf16.mxu1 %v15382_v38  ;;  %v8037_v47 = vld [vmem:[%s15027_s20] sm:$0xff] }
0x10bc   : > { %11515 = vmatpush3.bf16.msra.mxu1 %v11514_v63  ;;  %10415 = vmatprep.mubr.msk.f32.mxu1 %vm11742_vm11, %v15385_v52  ;;  %v8064_v13 = vand.u32 4294901760, %v8037_v47  ;;  %v8161_v36 = vsub.f32 %v8159_v53, %v8160_v44 }
0x10bd   : > { %11516 = vmatprep.subr.bf16.mxu1 %v15382_v38 }
0x10be   : > { %v14935_v34 = vsub.f32 %v8037_v47, %v8064_v13  ;;  %v8162_v18 = vand.u32 4294901760, %v8161_v36  ;;  %v11538_v7 = vpack.c.bf16 %v8067_v54, %v8064_v13 }
0x10c0   : > { %11518 = vmatpush3.bf16.msra.mxu1 %v11517_v2  ;;  %11539 = vmatpush3.bf16.msra.mxu0 %v11538_v7  ;;  %v11565_v2 = vpack.c.bf16 %v8167_v24, %v8160_v44  ;;  %v11550_v8 = vpack.c.bf16 %v14937_v58, %v14935_v34 }
0x10c1   : > { %11519 = vmatprep.subr.bf16.mxu1 %v15382_v38  ;;  %11540 = vmatprep.subr.bf16.mxu0 %v15382_v38 }
0x10c4   : > { %11521 = vmatpush3.bf16.msra.mxu1 %v11520_v14  ;;  %11542 = vmatpush3.bf16.msra.mxu0 %v11541_v62 }
0x10c5   : > { %11522 = vmatprep.subr.bf16.mxu1 %v15382_v38  ;;  %10447 = vmatprep.subr.mxu0 %v15385_v52 }
0x10c8   : > { %11524 = vmatpush3.bf16.msra.mxu1 %v11523_v48  ;;  %10448 = vmatpush3.msra.mxu0 %v14959_v10 }
0x10c9   : > { %10413 = vmatprep.subr.mxu1 %v15385_v52 }
0x10cc   : > { %10414 = vmatpush3.msra.mxu1 %v7627_v15  ;;  %v8168_v15 = vsub.f32 %v8166_v22, %v8167_v24 }
0x10cd   : > { %10416 = vmatmul.mubr.f32.vlgmr.msra.gmra.mrb[26].mxu1 %v14781_v56  ;;  %11543 = vmatprep.subr.bf16.mxu1 %v15382_v38  ;;  %v8146_v56 = vand.u32 4294901760, %v14935_v34 }
0x10ce   : > { %10462 = vmatprep.mubr.msk.f32.mxu1 %vm11742_vm11, %v15385_v52  ;;  %v8169_v39 = vand.u32 4294901760, %v8168_v15 }
0x10cf   : > { %v8147_v30 = vsub.f32 %v14935_v34, %v8146_v56 }
0x10d0   : > { %v11547_v57 = vpack.c.bf16 %v8169_v39, %v8162_v18 }
0x10d1   : > { %v8148_v6 = vand.u32 4294901760, %v8147_v30 }
0x10d3   : > { %v11544_v20 = vpack.c.bf16 %v8155_v59, %v8148_v6 }
0x10d5   : > { %11545 = vmatpush3.bf16.msra.mxu1 %v11544_v20 }
0x10d6   : > { %11546 = vmatprep.subr.bf16.mxu1 %v15382_v38 }
0x10d9   : > { %11548 = vmatpush3.bf16.msra.mxu1 %v11547_v57 }
0x10da   : > { %10460 = vmatprep.subr.mxu1 %v15385_v52 }
0x116a   : > { %v7564_v11 = vpop.f32.mrb[20].mxu1 }
0x116b   : > { %v10333_v45 = vpop.f32.mrb[21].mxu1  ;;  %v7565_v42 = vadd.f32 %v7564_v11, %v7479_v31 }
0x116c   : > { %v7852_v5 = vpop.f32.mrb[22].mxu0 }
0x116d   : > { %v10396_v23 = vpop.f32.mrb[23].mxu0 }
0x117c   : > { %v7680_v3 = vpop.f32.mrb[22].mxu1 }
0x117d   : > { %v7681_v61 = vadd.f32 %v7680_v3, %v7565_v42  ;;  %v10354_v50 = vpop.f32.mrb[23].mxu1 }
0x117f   : > { %v8030_v1 = vpop.f32.mrb[24].mxu0 }
0x1180   : > { %v10438_v27 = vpop.f32.mrb[25].mxu0 }
0x118e   : > { %v7770_v55 = vpop.f32.mrb[24].mxu1 }
0x118f   : > { %v7771_v16 = vadd.f32 %v7770_v55, %v7681_v61  ;;  %v10375_v43 = vpop.f32.mrb[25].mxu1 }
0x1191   : > { %v7853_v41 = vadd.f32 %v7852_v5, %v7771_v16  ;;  %v11562_v5 = vpack.c.bf16 %v8153_v37, %v8146_v56 }
0x11a0   : > { %v7950_v26 = vpop.f32.mrb[26].mxu1 }
0x11a1   : > { %v7951_v17 = vadd.f32 %v7950_v26, %v7853_v41  ;;  %v10417_v19 = vpop.f32.mrb[27].mxu1 }
0x11a3   : > { %v8031_v33 = vadd.f32 %v8030_v1, %v7951_v17 }
0x11a5   : > { %v8034_v4 = vadd.f32 %v8031_v33, %v14579_v29  ;;  %v8174_v29 = vand.u32 4294901760, %v8173_v21 }
0x11a7   : > { %v8035_v32 = vmax.f32 %v8034_v4, 0.0  ;;  %v8175_v63 = vsub.f32 %v8173_v21, %v8174_v29 }
0x11a9   : > { %v8036_v51 = vmul.f32 %v14758_v0, %v8035_v32  ;;  %v8176_v0 = vand.u32 4294901760, %v8175_v63 }
0x11ab   : > { %v8043_v35 = vsel %vm8042_vm2, %v8036_v51, 0.0  ;;  %10461 = vmatpush3.msra.mxu1 %v8176_v0 }
0x11ac   : > { %8049 = vrot.lane.b32.xlu0 %v8043_v35, %s11751_s24  ;;  %8045 = vrot.lane.b32.xlu1 %v8043_v35, %s11733_s28  ;;  %s8622_s28 = sshll.u32 %s15394_s25, 3 }
0x11ad   : > { %11549 = vmatprep.subr.bf16.mxu1 %v15382_v38  ;;  %s654_s26 = scalar_lea.vmem %s15028_s21, %s8622_s28 }
0x11b0   : > { %8053 = vrot.lane.b32.xlu1 %v8043_v35, %s11750_s3 }
0x121e   : > { %v8046_v14 = vpop.permute.xlu1 %8045  ;;  %v8050_v47 = vpop.permute.xlu0 %8049 }
0x121f   : > { %v8048_v48 = vmax.f32 %v8036_v51, %v8046_v14 }
0x1221   : > { %v8052_v9 = vmax.f32 %v8048_v48, %v8050_v47 }
0x1222   : > { %v8054_v13 = vpop.permute.xlu1 %8053 }
0x1223   : > { %v8056_v54 = vmax.f32 %v8052_v9, %v8054_v13 }
0x1225   : > { %v8058_v30 = vsel %vm8042_vm2, %v8056_v54, 0 }
0x1226   : > { %v8133_v6 = vand.u32 4294901760, %v8058_v30 }
0x1228   : > { %v8134_v59 = vsub.f32 %v8058_v30, %v8133_v6  ;;  %10463 = vmatmul.mubr.f32.vlgmr.msra.gmra.mrb[28].mxu1 %v8133_v6 }
0x1229   : > { %11551 = vmatpush3.bf16.msra.mxu1 %v11550_v8  ;;  %10475 = vmatprep.mubr.msk.f32.mxu1 %vm11742_vm11, %v15385_v52 }
0x122a   : > { %v8135_v20 = vand.u32 4294901760, %v8134_v59  ;;  %11552 = vmatprep.subr.bf16.mxu1 %v15382_v38 }
0x122c   : > { %v8136_v11 = vsub.f32 %v8134_v59, %v8135_v20 }
0x122d   : > { %11554 = vmatpush3.bf16.msra.mxu1 %v11553_v40 }
0x122e   : > { %10473 = vmatprep.subr.mxu1 %v15385_v52  ;;  %v8137_v45 = vand.u32 4294901760, %v8136_v11 }
0x1230   : > { %10450 = vmatmul.mubr.f32.vlgmr.msra.gmra.mrb[26].mxu0 %v8137_v45 }
0x1231   : > { %10474 = vmatpush3.msra.mxu1 %v8173_v21 }
0x1232   : > { %10476 = vmatmul.mubr.f32.vlgmr.msra.gmra.mrb[28].mxu1 %v8134_v59  ;;  %11555 = vmatprep.subr.bf16.mxu1 %v15382_v38 }
0x1233   : > { %11557 = vmatpush3.bf16.msra.mxu1 %v11538_v7  ;;  %10488 = vmatprep.mubr.msk.f32.mxu1 %vm11742_vm11, %v15385_v52 }
0x1234   : > { %11558 = vmatprep.subr.bf16.mxu1 %v15382_v38 }
0x1237   : > { %11560 = vmatpush3.bf16.msra.mxu1 %v11541_v62 }
0x1238   : > { %10486 = vmatprep.subr.mxu1 %v15385_v52 }
0x123b   : > { %10487 = vmatpush3.msra.mxu1 %v14959_v10 }
0x123c   : > { %10489 = vmatmul.mubr.f32.vlgmr.msra.gmra.mrb[28].mxu1 %v8135_v20  ;;  %11561 = vmatprep.subr.bf16.mxu1 %v15382_v38 }
0x123d   : > { %11563 = vmatpush3.bf16.msra.mxu1 %v11562_v5  ;;  %10501 = vmatprep.mubr.msk.f32.mxu1 %vm11742_vm11, %v15385_v52 }
0x123e   : > { %11564 = vmatprep.subr.bf16.mxu1 %v15382_v38 }
0x1241   : > { %11566 = vmatpush3.bf16.msra.mxu1 %v11565_v2 }
0x1242   : > { %10499 = vmatprep.subr.mxu1 %v15385_v52 }
0x1245   : > { %10500 = vmatpush3.msra.mxu1 %v8174_v29 }
0x1246   : > { %10502 = vmatmul.mubr.f32.vlgmr.msra.gmra.mrb[28].mxu1 %v8133_v6  ;;  %11567 = vmatprep.subr.bf16.mxu1 %v15382_v38 }
0x1247   : > { %11569 = vmatpush3.bf16.msra.mxu1 %v11538_v7  ;;  %10514 = vmatprep.mubr.msk.f32.mxu1 %vm11742_vm11, %v15385_v52 }
0x1248   : > { %11570 = vmatprep.subr.bf16.mxu1 %v15382_v38 }
0x124b   : > { %11572 = vmatpush3.bf16.msra.mxu1 %v11541_v62 }
0x124c   : > { %10512 = vmatprep.subr.mxu1 %v15385_v52 }
0x124f   : > { %10513 = vmatpush3.msra.mxu1 %v14959_v10 }
0x1250   : > { %10515 = vmatmul.mubr.f32.vlgmr.msra.gmra.mrb[28].mxu1 %v8133_v6 }
0x1303   : > { %v8139_v34 = vpop.f32.mrb[26].mxu0 }
0x1304   : > { %v10451_v58 = vpop.f32.mrb[27].mxu0 }
0x1323   : > { %v8557_v56 = vpop.f32.mrb[28].mxu1 }
0x1324   : > { %v11587_v37 = vadd.f32 %v8557_v56, %v8139_v34  ;;  %v10516_v23 = vpop.f32.mrb[29].mxu1 }
0x1326   : > { %8562 = vst.msk [vmem:[%s654_s26] sm:$0xff] %vm8561_vm4, %v11587_v37 }
0x1327 PF: > { %s31_s2 = sadd.s32 1, %s11728_s2  }
0x1328   : > { %p28_p4 = scmp.ge.s32.totalorder %s31_s2, 4  }
0x132a   :  { %30 = sbr.rel (!%p28_p4) target bundleno = 7 (0x7), region = 134 }

</bundles_post_ra>
